<compile_context>
chip_gen: v7x
topology: tpu7x:2x2x1
jax: 0.10.0
libtpu: 0.0.40
codegen_flags: <defaults>
</compile_context>

<pallas_src>
import functools

import jax
import jax.numpy as jnp
from jax import lax
from jax.experimental import pallas as pl
from jax.experimental.pallas import tpu as pltpu

_VMEM_LIMIT = 32 * 1024 * 1024   # well above the double-buffered tile footprints


def _round_up(x, m):
    return (x + m - 1) // m * m


def _pick_rows_tile(m, target):
    """Row tile <= target that is (8,128)-legal and, if possible, divides m."""
    if m <= target:
        return m
    for t in range(target, 7, -8):       # multiples of 8, prefer divisors of m
        if m % t == 0:
            return t
    return target


def _lane_group(m, c, target_lanes=256):
    """Group g consecutive rows so elementwise kernels see >=128 dense lanes."""
    g = max(1, target_lanes // c)
    g = min(g, m)
    while g > 1 and m % g:
        g -= 1
    return g


# --------------------------------------------------------------------------
# Pallas kernels
# --------------------------------------------------------------------------
def _gemm_stats_kernel(a_ref, b_ref, y_ref, sum_ref, ssq_ref,
                       *, m_total, tm, need_mask):
    """Y = A @ B (bf16 in, f32 acc, bf16 out) + per-tile BN partial stats."""
    acc = jnp.dot(a_ref[...], b_ref[...], preferred_element_type=jnp.float32)
    y_ref[...] = acc.astype(y_ref.dtype)
    sum_ref[0] = jnp.sum(acc, axis=0, keepdims=True)
    ssq_ref[0] = jnp.sum(acc * acc, axis=0, keepdims=True)
    if need_mask:                          # only the ragged last tile re-masks
        @pl.when(pl.program_id(0) == pl.num_programs(0) - 1)
        def _():
            rows = pl.program_id(0) * tm + lax.broadcasted_iota(
                jnp.int32, acc.shape, 0)
            valid = rows < m_total
            yv = jnp.where(valid, acc, 0.0)
            sum_ref[0] = jnp.sum(yv, axis=0, keepdims=True)
            ssq_ref[0] = jnp.sum(yv * yv, axis=0, keepdims=True)


def _gemm_bias_tanh_kernel(a_ref, b_ref, bias_ref, o_ref):
    """Final conv: Y = tanh(A @ B + bias), fused epilogue, f32 output."""
    acc = jnp.dot(a_ref[...], b_ref[...], preferred_element_type=jnp.float32)
    o_ref[...] = jnp.tanh(acc + bias_ref[...]).astype(o_ref.dtype)


def _conv3x3_stats_kernel(x_ref, w_ref, mask_ref, y_ref, sum_ref, ssq_ref,
                          *, cin, cout, rows_out, wp):
    """In-kernel 9-tap 3x3 stride-1 conv over one flattened padded image.

    x_ref: (rows_in, Cin) flattened padded image, w_ref: (9*Cin, Cout)
    (tap-major), mask_ref: (rows_out, 1) marks the valid output columns
    (output rows keep the padded width; garbage columns are masked from the
    BN statistics and stripped by the wrapper).
    """
    acc = jnp.zeros((rows_out, cout), jnp.float32)
    for t, (di, dj) in enumerate((i, j) for i in range(3) for j in range(3)):
        off = di * wp + dj
        a = x_ref[off:off + rows_out, :]
        w_tap = w_ref[t * cin:(t + 1) * cin, :]
        acc = acc + jnp.dot(a, w_tap, preferred_element_type=jnp.float32)
    y_ref[...] = acc.astype(y_ref.dtype)
    m = mask_ref[...]
    sum_ref[...] = jnp.sum(acc * m, axis=0, keepdims=True)
    ssq_ref[...] = jnp.sum(acc * acc * m, axis=0, keepdims=True)


def _affine_act_kernel(x_ref, s_ref, t_ref, o_ref, *, act):
    y = x_ref[...].astype(jnp.float32) * s_ref[...] + t_ref[...]
    if act == "relu":
        y = jnp.maximum(y, 0.0)
    elif act == "tanh":
        y = jnp.tanh(y)
    o_ref[...] = y.astype(o_ref.dtype)


def _affine_res_kernel(x_ref, s_ref, t_ref, r_ref, o_ref):
    y = (x_ref[...].astype(jnp.float32) * s_ref[...] + t_ref[...]
         + r_ref[...].astype(jnp.float32))
    o_ref[...] = y.astype(o_ref.dtype)


# --------------------------------------------------------------------------
# Pallas wrappers
# --------------------------------------------------------------------------
def gemm_stats(a, b, tm=1024):
    """(M,K)bf16 @ (K,N)bf16 -> (M,N)bf16 plus reduced BN sum / sum-of-squares."""
    M, K = a.shape
    N = b.shape[1]
    tm_eff = _pick_rows_tile(M, tm)
    grid_m = pl.cdiv(M, tm_eff)
    need_mask = (M % tm_eff) != 0
    y, s, s2 = pl.pallas_call(
        functools.partial(_gemm_stats_kernel, m_total=M, tm=tm_eff,
                          need_mask=need_mask),
        out_shape=(jax.ShapeDtypeStruct((M, N), jnp.bfloat16),
                   jax.ShapeDtypeStruct((grid_m, 1, N), jnp.float32),
                   jax.ShapeDtypeStruct((grid_m, 1, N), jnp.float32)),
        grid=(grid_m,),
        in_specs=[pl.BlockSpec((tm_eff, K), lambda i: (i, 0)),
                  pl.BlockSpec((K, N), lambda i: (0, 0))],
        out_specs=(pl.BlockSpec((tm_eff, N), lambda i: (i, 0)),
                   pl.BlockSpec((1, 1, N), lambda i: (i, 0, 0)),
                   pl.BlockSpec((1, 1, N), lambda i: (i, 0, 0))),
        compiler_params=pltpu.CompilerParams(
            dimension_semantics=("parallel",),
            vmem_limit_bytes=_VMEM_LIMIT),
        cost_estimate=pl.CostEstimate(
            flops=2 * M * K * N, transcendentals=0,
            bytes_accessed=M * K * 2 + K * N * 2 + M * N * 2
                           + 2 * grid_m * N * 4),
    )(a, b)
    return y, jnp.sum(s, axis=(0, 1)), jnp.sum(s2, axis=(0, 1))


def gemm_bias_tanh(a, b, bias, tm=1024):
    """Fused final conv: tanh(A @ B + bias) in one pass, f32 output."""
    M, K = a.shape
    N = b.shape[1]
    tm_eff = _pick_rows_tile(M, tm)
    grid_m = pl.cdiv(M, tm_eff)
    return pl.pallas_call(
        _gemm_bias_tanh_kernel,
        out_shape=jax.ShapeDtypeStruct((M, N), jnp.float32),
        grid=(grid_m,),
        in_specs=[pl.BlockSpec((tm_eff, K), lambda i: (i, 0)),
                  pl.BlockSpec((K, N), lambda i: (0, 0)),
                  pl.BlockSpec((1, N), lambda i: (0, 0))],
        out_specs=pl.BlockSpec((tm_eff, N), lambda i: (i, 0)),
        compiler_params=pltpu.CompilerParams(
            dimension_semantics=("parallel",),
            vmem_limit_bytes=_VMEM_LIMIT),
        cost_estimate=pl.CostEstimate(
            flops=2 * M * K * N, transcendentals=M * N,
            bytes_accessed=M * K * 2 + K * N * 2 + M * N * 4 + N * 4),
    )(a, b, bias.reshape(1, N).astype(jnp.float32))


def conv3x3_stats(x_padded, w_flat):
    """3x3 stride-1 conv on an already reflect-padded NHWC bf16 activation.

    No im2col: grid over batch images; each step reads the flattened padded
    image once and accumulates nine shifted dots in-kernel, emitting fused,
    masked BN partial statistics.  Returns (N*H*W, Cout) bf16 plus (Cout,)
    sum / sum-of-squares.
    """
    n, hp, wp, cin = x_padded.shape
    h, w_ = hp - 2, wp - 2
    cout = w_flat.shape[1]
    rows_out = h * wp                         # padded-width output rows
    rows_in = _round_up(hp * wp + 2, 8)       # +2 so the (di=2,dj=2) tap fits
    x2 = x_padded.reshape(n, hp * wp, cin)
    x2 = jnp.pad(x2, ((0, 0), (0, rows_in - hp * wp), (0, 0)))
    mask = ((jnp.arange(rows_out, dtype=jnp.int32) % wp) < w_)
    mask = mask.astype(jnp.float32).reshape(rows_out, 1)
    y, s, s2 = pl.pallas_call(
        functools.partial(_conv3x3_stats_kernel, cin=cin, cout=cout,
                          rows_out=rows_out, wp=wp),
        out_shape=(jax.ShapeDtypeStruct((n, rows_out, cout), jnp.bfloat16),
                   jax.ShapeDtypeStruct((n, 1, cout), jnp.float32),
                   jax.ShapeDtypeStruct((n, 1, cout), jnp.float32)),
        grid=(n,),
        in_specs=[pl.BlockSpec((None, rows_in, cin), lambda i: (i, 0, 0)),
                  pl.BlockSpec((9 * cin, cout), lambda i: (0, 0)),
                  pl.BlockSpec((rows_out, 1), lambda i: (0, 0))],
        out_specs=(pl.BlockSpec((None, rows_out, cout), lambda i: (i, 0, 0)),
                   pl.BlockSpec((None, 1, cout), lambda i: (i, 0, 0)),
                   pl.BlockSpec((None, 1, cout), lambda i: (i, 0, 0))),
        compiler_params=pltpu.CompilerParams(
            dimension_semantics=("parallel",),
            vmem_limit_bytes=_VMEM_LIMIT),
        cost_estimate=pl.CostEstimate(
            flops=2 * 9 * n * rows_out * cin * cout, transcendentals=0,
            bytes_accessed=n * (rows_in * cin * 2 + rows_out * cout * 2
                                + 2 * cout * 4) + 9 * cin * cout * 2),
    )(x2, w_flat, mask)
    # Strip the padded-width garbage columns (l >= W) with one cheap slice.
    y = y.reshape(n, h, wp, cout)[:, :, :w_, :].reshape(n * h * w_, cout)
    return y, jnp.sum(s, axis=0).reshape(cout), jnp.sum(s2, axis=0).reshape(cout)


def affine_act(y, scale, shift, *, act, out_dtype, tm=2048):
    """out = y*scale + shift (per-channel) then activation; lane-dense tiles."""
    M, C = y.shape
    g = _lane_group(M, C)
    mg, cg = M // g, C * g
    tm_eff = _pick_rows_tile(mg, tm)
    grid_m = pl.cdiv(mg, tm_eff)
    s2 = jnp.tile(scale.astype(jnp.float32).reshape(1, C), (1, g))
    t2 = jnp.tile(shift.astype(jnp.float32).reshape(1, C), (1, g))
    out = pl.pallas_call(
        functools.partial(_affine_act_kernel, act=act),
        out_shape=jax.ShapeDtypeStruct((mg, cg), out_dtype),
        grid=(grid_m,),
        in_specs=[pl.BlockSpec((tm_eff, cg), lambda i: (i, 0)),
                  pl.BlockSpec((1, cg), lambda i: (0, 0)),
                  pl.BlockSpec((1, cg), lambda i: (0, 0))],
        out_specs=pl.BlockSpec((tm_eff, cg), lambda i: (i, 0)),
        compiler_params=pltpu.CompilerParams(
            dimension_semantics=("parallel",),
            vmem_limit_bytes=_VMEM_LIMIT),
        cost_estimate=pl.CostEstimate(
            flops=2 * M * C,
            transcendentals=(M * C if act == "tanh" else 0),
            bytes_accessed=M * C * (y.dtype.itemsize
                                    + jnp.dtype(out_dtype).itemsize) + 8 * cg),
    )(y.reshape(mg, cg), s2, t2)
    return out.reshape(M, C)


def affine_residual(y, scale, shift, res, *, out_dtype, tm=2048):
    """out = y*scale + shift + res (ResnetBlock tail); lane-dense tiles."""
    M, C = y.shape
    g = _lane_group(M, C)
    mg, cg = M // g, C * g
    tm_eff = _pick_rows_tile(mg, tm)
    grid_m = pl.cdiv(mg, tm_eff)
    s2 = jnp.tile(scale.astype(jnp.float32).reshape(1, C), (1, g))
    t2 = jnp.tile(shift.astype(jnp.float32).reshape(1, C), (1, g))
    out = pl.pallas_call(
        _affine_res_kernel,
        out_shape=jax.ShapeDtypeStruct((mg, cg), out_dtype),
        grid=(grid_m,),
        in_specs=[pl.BlockSpec((tm_eff, cg), lambda i: (i, 0)),
                  pl.BlockSpec((1, cg), lambda i: (0, 0)),
                  pl.BlockSpec((1, cg), lambda i: (0, 0)),
                  pl.BlockSpec((tm_eff, cg), lambda i: (i, 0))],
        out_specs=pl.BlockSpec((tm_eff, cg), lambda i: (i, 0)),
        compiler_params=pltpu.CompilerParams(
            dimension_semantics=("parallel",),
            vmem_limit_bytes=_VMEM_LIMIT),
        cost_estimate=pl.CostEstimate(
            flops=3 * M * C, transcendentals=0,
            bytes_accessed=M * C * (2 * y.dtype.itemsize
                                    + jnp.dtype(out_dtype).itemsize) + 8 * cg),
    )(y.reshape(mg, cg), s2, t2, res.reshape(mg, cg))
    return out.reshape(M, C)


# --------------------------------------------------------------------------
# Conv / BatchNorm glue
# --------------------------------------------------------------------------
def _im2col(x, kh, kw, stride):
    """NHWC -> (N*Ho*Wo, kh*kw*C) patch matrix (tap-major, then channel)."""
    N, H, W, C = x.shape
    Ho = (H - kh) // stride + 1
    Wo = (W - kw) // stride + 1
    cols = []
    for i in range(kh):
        for j in range(kw):
            cols.append(x[:, i:i + (Ho - 1) * stride + 1:stride,
                          j:j + (Wo - 1) * stride + 1:stride, :])
    if len(cols) == 1:
        return cols[0].reshape(N * Ho * Wo, C), (N, Ho, Wo)
    p = jnp.stack(cols, axis=3)                      # (N,Ho,Wo,taps,C)
    return p.reshape(N * Ho * Wo, kh * kw * C), (N, Ho, Wo)


def bn_scale_shift(sum_, ssq, count, gamma, beta, eps=1e-5):
    """Training-mode BatchNorm2d from fused sum / sum-of-squares (f32)."""
    mean = sum_ / count
    var = jnp.maximum(ssq / count - mean * mean, 0.0)    # biased variance
    scale = gamma * lax.rsqrt(var + eps)
    shift = beta - mean * scale
    return scale, shift


def conv_layer(x, layer, *, stride, pad, pad_mode, act):
    """Conv2d (im2col + fused GEMM/BN-stats) + BatchNorm + activation."""
    if pad > 0:
        x = jnp.pad(x, ((0, 0), (pad, pad), (pad, pad), (0, 0)), mode=pad_mode)
    kh, kw = layer["ksize"]
    a, (n, ho, wo) = _im2col(x, kh, kw, stride)
    y, s, s2 = gemm_stats(a, layer["w"])
    cout = layer["w"].shape[1]
    scale, shift = bn_scale_shift(s, s2, float(n * ho * wo),
                                  layer["g"], layer["b"])
    out = affine_act(y, scale, shift, act=act, out_dtype=jnp.bfloat16)
    return out.reshape(n, ho, wo, cout)


def final_conv_tanh(x, layer, *, pad):
    """ReflectionPad + Conv7x7(bias) + Tanh, bias/tanh fused into the GEMM."""
    x = jnp.pad(x, ((0, 0), (pad, pad), (pad, pad), (0, 0)), mode="reflect")
    kh, kw = layer["ksize"]
    a, (n, ho, wo) = _im2col(x, kh, kw, 1)
    cout = layer["w"].shape[1]
    y = gemm_bias_tanh(a, layer["w"], layer["bias"])
    return y.reshape(n, ho, wo, cout)


def resnet_block(x, p):
    """ReflectPad+Conv3x3+BN+ReLU, ReflectPad+Conv3x3+BN, then skip-add."""
    n, hh, ww, c = x.shape
    xp = jnp.pad(x, ((0, 0), (1, 1), (1, 1), (0, 0)), mode="reflect")
    y, s, s2 = conv3x3_stats(xp, p["w1"])
    scale, shift = bn_scale_shift(s, s2, float(n * hh * ww), p["g1"], p["b1"])
    h1 = affine_act(y, scale, shift, act="relu",
                    out_dtype=jnp.bfloat16).reshape(n, hh, ww, c)
    hp = jnp.pad(h1, ((0, 0), (1, 1), (1, 1), (0, 0)), mode="reflect")
    y, s, s2 = conv3x3_stats(hp, p["w2"])
    scale, shift = bn_scale_shift(s, s2, float(n * hh * ww), p["g2"], p["b2"])
    out = affine_residual(y, scale, shift, x.reshape(-1, c),
                          out_dtype=jnp.bfloat16)
    return out.reshape(n, hh, ww, c)


def convtranspose_bn_relu(x, layer):
    """ConvTranspose2d(k=3,s=2,p=1,op=1) + BN + ReLU as ONE fused sub-pixel GEMM.

    out[2m+pi, 2l+pj] = sum_{di<=pi, dj<=pj} x_pad[m+di, l+dj] . W[1+pi-2di, 1+pj-2dj]
    with x_pad zero-padded on the bottom/right. All four phases share one
    4-tap patch matrix against a (4*Cin, 4*Cout) phase-blocked weight.
    """
    n, h, w_, ci = x.shape
    co = layer["cout"]
    xp = jnp.pad(x, ((0, 0), (0, 1), (0, 1), (0, 0)))
    taps = [xp[:, di:di + h, dj:dj + w_, :]
            for di in range(2) for dj in range(2)]
    a = jnp.stack(taps, axis=3).reshape(n * h * w_, 4 * ci)
    y, s, s2 = gemm_stats(a, layer["w_fused"])           # (M, 4*co) bf16
    tot_s = s.reshape(4, co).sum(axis=0)
    tot_s2 = s2.reshape(4, co).sum(axis=0)
    scale, shift = bn_scale_shift(tot_s, tot_s2, float(4 * n * h * w_),
                                  layer["g"], layer["b"])
    out = affine_act(y, jnp.tile(scale, (4,)), jnp.tile(shift, (4,)),
                     act="relu", out_dtype=jnp.bfloat16)
    out = out.reshape(n, h, w_, 2, 2, co)                 # (.., pi, pj, co)
    out = jnp.transpose(out, (0, 1, 3, 2, 4, 5)).reshape(n, 2 * h, 2 * w_, co)
    return out


# --------------------------------------------------------------------------
# Full generator forward
# --------------------------------------------------------------------------
def resnet_generator(x_nchw, params):
    x = jnp.transpose(x_nchw, (0, 2, 3, 1)).astype(jnp.bfloat16)  # NCHW->NHWC
    # stem: ReflectionPad2d(3) + Conv7x7 + BN + ReLU
    x = conv_layer(x, params["stem"], stride=1, pad=3, pad_mode="reflect",
                   act="relu")
    # 2x downsample: Conv3x3 stride2 pad1 (zero) + BN + ReLU
    for d in params["down"]:
        x = conv_layer(x, d, stride=2, pad=1, pad_mode="constant", act="relu")
    # n_blocks ResnetBlocks (reflect padding, no dropout)
    for blk in params["blocks"]:
        x = resnet_block(x, blk)
    # 2x upsample: ConvTranspose3x3 stride2 pad1 outpad1 + BN + ReLU
    for u in params["up"]:
        x = convtranspose_bn_relu(x, u)
    # ReflectionPad2d(3) + Conv7x7 (bias) + Tanh (fused epilogue)
    x = final_conv_tanh(x, params["final"], pad=3)
    return jnp.transpose(x, (0, 3, 1, 2))                          # NHWC->NCHW


# --------------------------------------------------------------------------
# Parameters (pre-flattened bf16 GEMM weights)
# --------------------------------------------------------------------------
def _flat_conv_weight(w_oihw):
    co, ci, kh, kw = w_oihw.shape
    return (jnp.transpose(w_oihw, (2, 3, 1, 0))
            .reshape(kh * kw * ci, co).astype(jnp.bfloat16))


def _fused_convT_weight(wt):
    """PyTorch ConvTranspose2d weight (Cin,Cout,3,3) -> (4*Cin, 4*Cout) GEMM.

    Row blocks = taps (di,dj) of the bottom/right-padded input; column blocks
    = the four sub-pixel output phases (pi,pj); unused combos are zero.
    """
    ci, co = wt.shape[0], wt.shape[1]
    zeros = jnp.zeros((ci, co), jnp.float32)
    row_blocks = []
    for di in range(2):
        for dj in range(2):
            cols = []
            for pi in range(2):
                for pj in range(2):
                    if di <= pi and dj <= pj:
                        cols.append(wt[:, :, 1 + pi - 2 * di, 1 + pj - 2 * dj])
                    else:
                        cols.append(zeros)
            row_blocks.append(jnp.concatenate(cols, axis=1))
    return jnp.concatenate(row_blocks, axis=0).astype(jnp.bfloat16)


def init_params(key, input_nc=3, output_nc=3, ngf=8, n_blocks=2):
    keys = iter(jax.random.split(key, 64))

    def w(shape):
        return jax.random.normal(next(keys), shape, jnp.float32) * 0.05

    p = {}
    p["stem"] = dict(w=_flat_conv_weight(w((ngf, input_nc, 7, 7))), ksize=(7, 7),
                     g=jnp.ones((ngf,), jnp.float32),
                     b=jnp.zeros((ngf,), jnp.float32))
    p["down"] = []
    for i in range(2):
        ci, co = ngf * 2 ** i, ngf * 2 ** (i + 1)
        p["down"].append(dict(w=_flat_conv_weight(w((co, ci, 3, 3))),
                              ksize=(3, 3),
                              g=jnp.ones((co,), jnp.float32),
                              b=jnp.zeros((co,), jnp.float32)))
    c = ngf * 4
    p["blocks"] = [dict(w1=_flat_conv_weight(w((c, c, 3, 3))),
                        g1=jnp.ones((c,), jnp.float32),
                        b1=jnp.zeros((c,), jnp.float32),
                        w2=_flat_conv_weight(w((c, c, 3, 3))),
                        g2=jnp.ones((c,), jnp.float32),
                        b2=jnp.zeros((c,), jnp.float32))
                   for _ in range(n_blocks)]
    p["up"] = []
    for i in range(2):
        ci, co = ngf * 2 ** (2 - i), ngf * 2 ** (2 - i) // 2
        wt = w((ci, co, 3, 3))   # PyTorch ConvTranspose2d layout (Cin,Cout,kh,kw)
        p["up"].append(dict(w_fused=_fused_convT_weight(wt), cout=co,
                            g=jnp.ones((co,), jnp.float32),
                            b=jnp.zeros((co,), jnp.float32)))
    p["final"] = dict(w=_flat_conv_weight(w((output_nc, ngf, 7, 7))),
                      ksize=(7, 7),
                      bias=jnp.zeros((output_nc,), jnp.float32))
    return p


if __name__ == "__main__":
    key = jax.random.PRNGKey(0)
    k_param, k_x = jax.random.split(key)
    params = init_params(k_param, input_nc=3, output_nc=3, ngf=8, n_blocks=2)
    x = jax.random.normal(k_x, (2, 3, 16, 16), jnp.float32)   # NCHW, like PyTorch

    fwd = jax.jit(lambda xx: resnet_generator(xx, params))
    out = fwd(x)
    jax.block_until_ready(out)

    assert out.shape == (2, 3, 16, 16), out.shape
    assert bool(jnp.all(jnp.isfinite(out)))
    assert bool(jnp.all(jnp.abs(out) <= 1.0 + 1e-6))   # tanh output range
    print("KERNEL_OK")
</pallas_src>

<mosaic_0001>
module attributes {stable_mosaic.version = 11 : i64} {
  func.func @_gemm_stats_kernel(%arg0: i32, %arg1: memref<512x147xbf16, #tpu.memory_space<vmem>>, %arg2: memref<147x8xbf16, #tpu.memory_space<vmem>>, %arg3: memref<512x8xbf16, #tpu.memory_space<vmem>>, %arg4: memref<1x1x8xf32, #tpu.memory_space<vmem>>, %arg5: memref<1x1x8xf32, #tpu.memory_space<vmem>>) attributes {dimension_semantics = [#tpu.dimension_semantics<parallel>], iteration_bounds = array<i64: 1>, scalar_prefetch = 0 : i64, scratch_operands = 0 : i64, tpu.core_type = #tpu.core_type<tc>, window_params = [{transform_indices = @transform_0, window_bounds = array<i64: 512, 147>}, {pipeline_mode = #tpu.pipeline_mode<synchronous>, transform_indices = @transform_1, window_bounds = array<i64: 147, 8>}, {transform_indices = @transform_2, window_bounds = array<i64: 512, 8>}, {transform_indices = @transform_3, window_bounds = array<i64: 1, 1, 8>}, {transform_indices = @transform_4, window_bounds = array<i64: 1, 1, 8>}]} {
    %c0 = arith.constant 0 : index
    %c0_0 = arith.constant 0 : index
    %0 = vector.load %arg1[%c0, %c0_0] : memref<512x147xbf16, #tpu.memory_space<vmem>>, vector<512x147xbf16>
    %c0_1 = arith.constant 0 : index
    %c0_2 = arith.constant 0 : index
    %1 = vector.load %arg2[%c0_1, %c0_2] : memref<147x8xbf16, #tpu.memory_space<vmem>>, vector<147x8xbf16>
    %cst = arith.constant dense<0.000000e+00> : vector<512x8xf32>
    %2 = tpu.matmul %0, %1, %cst {dimension_numbers = #tpu.dot_dimension_numbers<[1], [0], [0], [1], [0, 0, 1, 1], [], []>} : vector<512x147xbf16>, vector<147x8xbf16>, vector<512x8xf32> -> vector<512x8xf32>
    %3 = arith.truncf %2 : vector<512x8xf32> to vector<512x8xbf16>
    %c0_3 = arith.constant 0 : index
    %c0_4 = arith.constant 0 : index
    %4 = vector.load %arg3[%c0_3, %c0_4] : memref<512x8xbf16, #tpu.memory_space<vmem>>, vector<512x8xbf16>
    tpu.vector_store %arg3[%c0_3, %c0_4], %3 {strides = array<i32>} : memref<512x8xbf16, #tpu.memory_space<vmem>>, vector<512x8xbf16>,
    %cst_5 = arith.constant dense<0.000000e+00> : vector<8xf32>
    %5 = vector.multi_reduction <add>, %2, %cst_5 [0] : vector<512x8xf32> to vector<8xf32>
    %6 = vector.shape_cast %5 : vector<8xf32> to vector<1x8xf32>
    %c0_6 = arith.constant 0 : index
    %c0_7 = arith.constant 0 : index
    %c0_8 = arith.constant 0 : index
    %7 = vector.load %arg4[%c0_6, %c0_7, %c0_8] : memref<1x1x8xf32, #tpu.memory_space<vmem>>, vector<1x1x8xf32>
    %8 = vector.shape_cast %7 : vector<1x1x8xf32> to vector<1x8xf32>
    %9 = vector.shape_cast %6 : vector<1x8xf32> to vector<1x1x8xf32>
    tpu.vector_store %arg4[%c0_6, %c0_7, %c0_8], %9 {strides = array<i32>} : memref<1x1x8xf32, #tpu.memory_space<vmem>>, vector<1x1x8xf32>,
    %10 = arith.mulf %2, %2 : vector<512x8xf32>
    %cst_9 = arith.constant dense<0.000000e+00> : vector<8xf32>
    %11 = vector.multi_reduction <add>, %10, %cst_9 [0] : vector<512x8xf32> to vector<8xf32>
    %12 = vector.shape_cast %11 : vector<8xf32> to vector<1x8xf32>
    %c0_10 = arith.constant 0 : index
    %c0_11 = arith.constant 0 : index
    %c0_12 = arith.constant 0 : index
    %13 = vector.load %arg5[%c0_10, %c0_11, %c0_12] : memref<1x1x8xf32, #tpu.memory_space<vmem>>, vector<1x1x8xf32>
    %14 = vector.shape_cast %13 : vector<1x1x8xf32> to vector<1x8xf32>
    %15 = vector.shape_cast %12 : vector<1x8xf32> to vector<1x1x8xf32>
    tpu.vector_store %arg5[%c0_10, %c0_11, %c0_12], %15 {strides = array<i32>} : memref<1x1x8xf32, #tpu.memory_space<vmem>>, vector<1x1x8xf32>,
    return
  }
  func.func @transform_0(%arg0: i32) -> (i32, i32) {
    %c0_i32 = arith.constant 0 : i32
    %c0_i32_0 = arith.constant 0 : i32
    return %arg0, %c0_i32 : i32, i32
  }
  func.func @transform_1(%arg0: i32) -> (i32, i32) {
    %c0_i32 = arith.constant 0 : i32
    %c0_i32_0 = arith.constant 0 : i32
    %c0_i32_1 = arith.constant 0 : i32
    return %c0_i32, %c0_i32_0 : i32, i32
  }
  func.func @transform_2(%arg0: i32) -> (i32, i32) {
    %c0_i32 = arith.constant 0 : i32
    %c0_i32_0 = arith.constant 0 : i32
    return %arg0, %c0_i32 : i32, i32
  }
  func.func @transform_3(%arg0: i32) -> (i32, i32, i32) {
    %c0_i32 = arith.constant 0 : i32
    %c0_i32_0 = arith.constant 0 : i32
    %c0_i32_1 = arith.constant 0 : i32
    return %arg0, %c0_i32, %c0_i32_0 : i32, i32, i32
  }
  func.func @transform_4(%arg0: i32) -> (i32, i32, i32) {
    %c0_i32 = arith.constant 0 : i32
    %c0_i32_0 = arith.constant 0 : i32
    %c0_i32_1 = arith.constant 0 : i32
    return %arg0, %c0_i32, %c0_i32_0 : i32, i32, i32
  }
}

module attributes {stable_mosaic.version = 11 : i64} {
  func.func @_affine_act_kernel(%arg0: i32, %arg1: memref<16x256xbf16, #tpu.memory_space<vmem>>, %arg2: memref<1x256xf32, #tpu.memory_space<vmem>>, %arg3: memref<1x256xf32, #tpu.memory_space<vmem>>, %arg4: memref<16x256xbf16, #tpu.memory_space<vmem>>) attributes {dimension_semantics = [#tpu.dimension_semantics<parallel>], iteration_bounds = array<i64: 1>, scalar_prefetch = 0 : i64, scratch_operands = 0 : i64, tpu.core_type = #tpu.core_type<tc>, window_params = [{transform_indices = @transform_0, window_bounds = array<i64: 16, 256>}, {pipeline_mode = #tpu.pipeline_mode<synchronous>, transform_indices = @transform_1, window_bounds = array<i64: 1, 256>}, {pipeline_mode = #tpu.pipeline_mode<synchronous>, transform_indices = @transform_2, window_bounds = array<i64: 1, 256>}, {transform_indices = @transform_3, window_bounds = array<i64: 16, 256>}]} {
    %c0 = arith.constant 0 : index
    %c0_0 = arith.constant 0 : index
    %0 = vector.load %arg1[%c0, %c0_0] : memref<16x256xbf16, #tpu.memory_space<vmem>>, vector<16x256xbf16>
    %1 = arith.extf %0 : vector<16x256xbf16> to vector<16x256xf32>
    %c0_1 = arith.constant 0 : index
    %c0_2 = arith.constant 0 : index
    %2 = vector.load %arg2[%c0_1, %c0_2] : memref<1x256xf32, #tpu.memory_space<vmem>>, vector<1x256xf32>
    %3 = vector.broadcast %2 : vector<1x256xf32> to vector<16x256xf32>
    %4 = arith.mulf %1, %3 : vector<16x256xf32>
    %c0_3 = arith.constant 0 : index
    %c0_4 = arith.constant 0 : index
    %5 = vector.load %arg3[%c0_3, %c0_4] : memref<1x256xf32, #tpu.memory_space<vmem>>, vector<1x256xf32>
    %6 = vector.broadcast %5 : vector<1x256xf32> to vector<16x256xf32>
    %7 = arith.addf %4, %6 : vector<16x256xf32>
    %cst = arith.constant 0.000000e+00 : f32
    %8 = vector.broadcast %cst : f32 to vector<16x256xf32>
    %9 = arith.maximumf %7, %8 : vector<16x256xf32>
    %10 = arith.truncf %9 : vector<16x256xf32> to vector<16x256xbf16>
    %c0_5 = arith.constant 0 : index
    %c0_6 = arith.constant 0 : index
    %11 = vector.load %arg4[%c0_5, %c0_6] : memref<16x256xbf16, #tpu.memory_space<vmem>>, vector<16x256xbf16>
    tpu.vector_store %arg4[%c0_5, %c0_6], %10 {strides = array<i32>} : memref<16x256xbf16, #tpu.memory_space<vmem>>, vector<16x256xbf16>,
    return
  }
  func.func @transform_0(%arg0: i32) -> (i32, i32) {
    %c0_i32 = arith.constant 0 : i32
    %c0_i32_0 = arith.constant 0 : i32
    return %arg0, %c0_i32 : i32, i32
  }
  func.func @transform_1(%arg0: i32) -> (i32, i32) {
    %c0_i32 = arith.constant 0 : i32
    %c0_i32_0 = arith.constant 0 : i32
    %c0_i32_1 = arith.constant 0 : i32
    return %c0_i32, %c0_i32_0 : i32, i32
  }
  func.func @transform_2(%arg0: i32) -> (i32, i32) {
    %c0_i32 = arith.constant 0 : i32
    %c0_i32_0 = arith.constant 0 : i32
    %c0_i32_1 = arith.constant 0 : i32
    return %c0_i32, %c0_i32_0 : i32, i32
  }
  func.func @transform_3(%arg0: i32) -> (i32, i32) {
    %c0_i32 = arith.constant 0 : i32
    %c0_i32_0 = arith.constant 0 : i32
    return %arg0, %c0_i32 : i32, i32
  }
}

module attributes {stable_mosaic.version = 11 : i64} {
  func.func @_gemm_stats_kernel(%arg0: i32, %arg1: memref<128x72xbf16, #tpu.memory_space<vmem>>, %arg2: memref<72x16xbf16, #tpu.memory_space<vmem>>, %arg3: memref<128x16xbf16, #tpu.memory_space<vmem>>, %arg4: memref<1x1x16xf32, #tpu.memory_space<vmem>>, %arg5: memref<1x1x16xf32, #tpu.memory_space<vmem>>) attributes {dimension_semantics = [#tpu.dimension_semantics<parallel>], iteration_bounds = array<i64: 1>, scalar_prefetch = 0 : i64, scratch_operands = 0 : i64, tpu.core_type = #tpu.core_type<tc>, window_params = [{transform_indices = @transform_0, window_bounds = array<i64: 128, 72>}, {pipeline_mode = #tpu.pipeline_mode<synchronous>, transform_indices = @transform_1, window_bounds = array<i64: 72, 16>}, {transform_indices = @transform_2, window_bounds = array<i64: 128, 16>}, {transform_indices = @transform_3, window_bounds = array<i64: 1, 1, 16>}, {transform_indices = @transform_4, window_bounds = array<i64: 1, 1, 16>}]} {
    %c0 = arith.constant 0 : index
    %c0_0 = arith.constant 0 : index
    %0 = vector.load %arg1[%c0, %c0_0] : memref<128x72xbf16, #tpu.memory_space<vmem>>, vector<128x72xbf16>
    %c0_1 = arith.constant 0 : index
    %c0_2 = arith.constant 0 : index
    %1 = vector.load %arg2[%c0_1, %c0_2] : memref<72x16xbf16, #tpu.memory_space<vmem>>, vector<72x16xbf16>
    %cst = arith.constant dense<0.000000e+00> : vector<128x16xf32>
    %2 = tpu.matmul %0, %1, %cst {dimension_numbers = #tpu.dot_dimension_numbers<[1], [0], [0], [1], [0, 0, 1, 1], [], []>} : vector<128x72xbf16>, vector<72x16xbf16>, vector<128x16xf32> -> vector<128x16xf32>
    %3 = arith.truncf %2 : vector<128x16xf32> to vector<128x16xbf16>
    %c0_3 = arith.constant 0 : index
    %c0_4 = arith.constant 0 : index
    %4 = vector.load %arg3[%c0_3, %c0_4] : memref<128x16xbf16, #tpu.memory_space<vmem>>, vector<128x16xbf16>
    tpu.vector_store %arg3[%c0_3, %c0_4], %3 {strides = array<i32>} : memref<128x16xbf16, #tpu.memory_space<vmem>>, vector<128x16xbf16>,
    %cst_5 = arith.constant dense<0.000000e+00> : vector<16xf32>
    %5 = vector.multi_reduction <add>, %2, %cst_5 [0] : vector<128x16xf32> to vector<16xf32>
    %6 = vector.shape_cast %5 : vector<16xf32> to vector<1x16xf32>
    %c0_6 = arith.constant 0 : index
    %c0_7 = arith.constant 0 : index
    %c0_8 = arith.constant 0 : index
    %7 = vector.load %arg4[%c0_6, %c0_7, %c0_8] : memref<1x1x16xf32, #tpu.memory_space<vmem>>, vector<1x1x16xf32>
    %8 = vector.shape_cast %7 : vector<1x1x16xf32> to vector<1x16xf32>
    %9 = vector.shape_cast %6 : vector<1x16xf32> to vector<1x1x16xf32>
    tpu.vector_store %arg4[%c0_6, %c0_7, %c0_8], %9 {strides = array<i32>} : memref<1x1x16xf32, #tpu.memory_space<vmem>>, vector<1x1x16xf32>,
    %10 = arith.mulf %2, %2 : vector<128x16xf32>
    %cst_9 = arith.constant dense<0.000000e+00> : vector<16xf32>
    %11 = vector.multi_reduction <add>, %10, %cst_9 [0] : vector<128x16xf32> to vector<16xf32>
    %12 = vector.shape_cast %11 : vector<16xf32> to vector<1x16xf32>
    %c0_10 = arith.constant 0 : index
    %c0_11 = arith.constant 0 : index
    %c0_12 = arith.constant 0 : index
    %13 = vector.load %arg5[%c0_10, %c0_11, %c0_12] : memref<1x1x16xf32, #tpu.memory_space<vmem>>, vector<1x1x16xf32>
    %14 = vector.shape_cast %13 : vector<1x1x16xf32> to vector<1x16xf32>
    %15 = vector.shape_cast %12 : vector<1x16xf32> to vector<1x1x16xf32>
    tpu.vector_store %arg5[%c0_10, %c0_11, %c0_12], %15 {strides = array<i32>} : memref<1x1x16xf32, #tpu.memory_space<vmem>>, vector<1x1x16xf32>,
    return
  }
  func.func @transform_0(%arg0: i32) -> (i32, i32) {
    %c0_i32 = arith.constant 0 : i32
    %c0_i32_0 = arith.constant 0 : i32
    return %arg0, %c0_i32 : i32, i32
  }
  func.func @transform_1(%arg0: i32) -> (i32, i32) {
    %c0_i32 = arith.constant 0 : i32
    %c0_i32_0 = arith.constant 0 : i32
    %c0_i32_1 = arith.constant 0 : i32
    return %c0_i32, %c0_i32_0 : i32, i32
  }
  func.func @transform_2(%arg0: i32) -> (i32, i32) {
    %c0_i32 = arith.constant 0 : i32
    %c0_i32_0 = arith.constant 0 : i32
    return %arg0, %c0_i32 : i32, i32
  }
  func.func @transform_3(%arg0: i32) -> (i32, i32, i32) {
    %c0_i32 = arith.constant 0 : i32
    %c0_i32_0 = arith.constant 0 : i32
    %c0_i32_1 = arith.constant 0 : i32
    return %arg0, %c0_i32, %c0_i32_0 : i32, i32, i32
  }
  func.func @transform_4(%arg0: i32) -> (i32, i32, i32) {
    %c0_i32 = arith.constant 0 : i32
    %c0_i32_0 = arith.constant 0 : i32
    %c0_i32_1 = arith.constant 0 : i32
    return %arg0, %c0_i32, %c0_i32_0 : i32, i32, i32
  }
}

module attributes {stable_mosaic.version = 11 : i64} {
  func.func @_affine_act_kernel(%arg0: i32, %arg1: memref<8x256xbf16, #tpu.memory_space<vmem>>, %arg2: memref<1x256xf32, #tpu.memory_space<vmem>>, %arg3: memref<1x256xf32, #tpu.memory_space<vmem>>, %arg4: memref<8x256xbf16, #tpu.memory_space<vmem>>) attributes {dimension_semantics = [#tpu.dimension_semantics<parallel>], iteration_bounds = array<i64: 1>, scalar_prefetch = 0 : i64, scratch_operands = 0 : i64, tpu.core_type = #tpu.core_type<tc>, window_params = [{transform_indices = @transform_0, window_bounds = array<i64: 8, 256>}, {pipeline_mode = #tpu.pipeline_mode<synchronous>, transform_indices = @transform_1, window_bounds = array<i64: 1, 256>}, {pipeline_mode = #tpu.pipeline_mode<synchronous>, transform_indices = @transform_2, window_bounds = array<i64: 1, 256>}, {transform_indices = @transform_3, window_bounds = array<i64: 8, 256>}]} {
    %c0 = arith.constant 0 : index
    %c0_0 = arith.constant 0 : index
    %0 = vector.load %arg1[%c0, %c0_0] : memref<8x256xbf16, #tpu.memory_space<vmem>>, vector<8x256xbf16>
    %1 = arith.extf %0 : vector<8x256xbf16> to vector<8x256xf32>
    %c0_1 = arith.constant 0 : index
    %c0_2 = arith.constant 0 : index
    %2 = vector.load %arg2[%c0_1, %c0_2] : memref<1x256xf32, #tpu.memory_space<vmem>>, vector<1x256xf32>
    %3 = vector.broadcast %2 : vector<1x256xf32> to vector<8x256xf32>
    %4 = arith.mulf %1, %3 : vector<8x256xf32>
    %c0_3 = arith.constant 0 : index
    %c0_4 = arith.constant 0 : index
    %5 = vector.load %arg3[%c0_3, %c0_4] : memref<1x256xf32, #tpu.memory_space<vmem>>, vector<1x256xf32>
    %6 = vector.broadcast %5 : vector<1x256xf32> to vector<8x256xf32>
    %7 = arith.addf %4, %6 : vector<8x256xf32>
    %cst = arith.constant 0.000000e+00 : f32
    %8 = vector.broadcast %cst : f32 to vector<8x256xf32>
    %9 = arith.maximumf %7, %8 : vector<8x256xf32>
    %10 = arith.truncf %9 : vector<8x256xf32> to vector<8x256xbf16>
    %c0_5 = arith.constant 0 : index
    %c0_6 = arith.constant 0 : index
    %11 = vector.load %arg4[%c0_5, %c0_6] : memref<8x256xbf16, #tpu.memory_space<vmem>>, vector<8x256xbf16>
    tpu.vector_store %arg4[%c0_5, %c0_6], %10 {strides = array<i32>} : memref<8x256xbf16, #tpu.memory_space<vmem>>, vector<8x256xbf16>,
    return
  }
  func.func @transform_0(%arg0: i32) -> (i32, i32) {
    %c0_i32 = arith.constant 0 : i32
    %c0_i32_0 = arith.constant 0 : i32
    return %arg0, %c0_i32 : i32, i32
  }
  func.func @transform_1(%arg0: i32) -> (i32, i32) {
    %c0_i32 = arith.constant 0 : i32
    %c0_i32_0 = arith.constant 0 : i32
    %c0_i32_1 = arith.constant 0 : i32
    return %c0_i32, %c0_i32_0 : i32, i32
  }
  func.func @transform_2(%arg0: i32) -> (i32, i32) {
    %c0_i32 = arith.constant 0 : i32
    %c0_i32_0 = arith.constant 0 : i32
    %c0_i32_1 = arith.constant 0 : i32
    return %c0_i32, %c0_i32_0 : i32, i32
  }
  func.func @transform_3(%arg0: i32) -> (i32, i32) {
    %c0_i32 = arith.constant 0 : i32
    %c0_i32_0 = arith.constant 0 : i32
    return %arg0, %c0_i32 : i32, i32
  }
}

module attributes {stable_mosaic.version = 11 : i64} {
  func.func @_gemm_stats_kernel(%arg0: i32, %arg1: memref<32x144xbf16, #tpu.memory_space<vmem>>, %arg2: memref<144x32xbf16, #tpu.memory_space<vmem>>, %arg3: memref<32x32xbf16, #tpu.memory_space<vmem>>, %arg4: memref<1x1x32xf32, #tpu.memory_space<vmem>>, %arg5: memref<1x1x32xf32, #tpu.memory_space<vmem>>) attributes {dimension_semantics = [#tpu.dimension_semantics<parallel>], iteration_bounds = array<i64: 1>, scalar_prefetch = 0 : i64, scratch_operands = 0 : i64, tpu.core_type = #tpu.core_type<tc>, window_params = [{transform_indices = @transform_0, window_bounds = array<i64: 32, 144>}, {pipeline_mode = #tpu.pipeline_mode<synchronous>, transform_indices = @transform_1, window_bounds = array<i64: 144, 32>}, {transform_indices = @transform_2, window_bounds = array<i64: 32, 32>}, {transform_indices = @transform_3, window_bounds = array<i64: 1, 1, 32>}, {transform_indices = @transform_4, window_bounds = array<i64: 1, 1, 32>}]} {
    %c0 = arith.constant 0 : index
    %c0_0 = arith.constant 0 : index
    %0 = vector.load %arg1[%c0, %c0_0] : memref<32x144xbf16, #tpu.memory_space<vmem>>, vector<32x144xbf16>
    %c0_1 = arith.constant 0 : index
    %c0_2 = arith.constant 0 : index
    %1 = vector.load %arg2[%c0_1, %c0_2] : memref<144x32xbf16, #tpu.memory_space<vmem>>, vector<144x32xbf16>
    %cst = arith.constant dense<0.000000e+00> : vector<32x32xf32>
    %2 = tpu.matmul %0, %1, %cst {dimension_numbers = #tpu.dot_dimension_numbers<[1], [0], [0], [1], [0, 0, 1, 1], [], []>} : vector<32x144xbf16>, vector<144x32xbf16>, vector<32x32xf32> -> vector<32x32xf32>
    %3 = arith.truncf %2 : vector<32x32xf32> to vector<32x32xbf16>
    %c0_3 = arith.constant 0 : index
    %c0_4 = arith.constant 0 : index
    %4 = vector.load %arg3[%c0_3, %c0_4] : memref<32x32xbf16, #tpu.memory_space<vmem>>, vector<32x32xbf16>
    tpu.vector_store %arg3[%c0_3, %c0_4], %3 {strides = array<i32>} : memref<32x32xbf16, #tpu.memory_space<vmem>>, vector<32x32xbf16>,
    %cst_5 = arith.constant dense<0.000000e+00> : vector<32xf32>
    %5 = vector.multi_reduction <add>, %2, %cst_5 [0] : vector<32x32xf32> to vector<32xf32>
    %6 = vector.shape_cast %5 : vector<32xf32> to vector<1x32xf32>
    %c0_6 = arith.constant 0 : index
    %c0_7 = arith.constant 0 : index
    %c0_8 = arith.constant 0 : index
    %7 = vector.load %arg4[%c0_6, %c0_7, %c0_8] : memref<1x1x32xf32, #tpu.memory_space<vmem>>, vector<1x1x32xf32>
    %8 = vector.shape_cast %7 : vector<1x1x32xf32> to vector<1x32xf32>
    %9 = vector.shape_cast %6 : vector<1x32xf32> to vector<1x1x32xf32>
    tpu.vector_store %arg4[%c0_6, %c0_7, %c0_8], %9 {strides = array<i32>} : memref<1x1x32xf32, #tpu.memory_space<vmem>>, vector<1x1x32xf32>,
    %10 = arith.mulf %2, %2 : vector<32x32xf32>
    %cst_9 = arith.constant dense<0.000000e+00> : vector<32xf32>
    %11 = vector.multi_reduction <add>, %10, %cst_9 [0] : vector<32x32xf32> to vector<32xf32>
    %12 = vector.shape_cast %11 : vector<32xf32> to vector<1x32xf32>
    %c0_10 = arith.constant 0 : index
    %c0_11 = arith.constant 0 : index
    %c0_12 = arith.constant 0 : index
    %13 = vector.load %arg5[%c0_10, %c0_11, %c0_12] : memref<1x1x32xf32, #tpu.memory_space<vmem>>, vector<1x1x32xf32>
    %14 = vector.shape_cast %13 : vector<1x1x32xf32> to vector<1x32xf32>
    %15 = vector.shape_cast %12 : vector<1x32xf32> to vector<1x1x32xf32>
    tpu.vector_store %arg5[%c0_10, %c0_11, %c0_12], %15 {strides = array<i32>} : memref<1x1x32xf32, #tpu.memory_space<vmem>>, vector<1x1x32xf32>,
    return
  }
  func.func @transform_0(%arg0: i32) -> (i32, i32) {
    %c0_i32 = arith.constant 0 : i32
    %c0_i32_0 = arith.constant 0 : i32
    return %arg0, %c0_i32 : i32, i32
  }
  func.func @transform_1(%arg0: i32) -> (i32, i32) {
    %c0_i32 = arith.constant 0 : i32
    %c0_i32_0 = arith.constant 0 : i32
    %c0_i32_1 = arith.constant 0 : i32
    return %c0_i32, %c0_i32_0 : i32, i32
  }
  func.func @transform_2(%arg0: i32) -> (i32, i32) {
    %c0_i32 = arith.constant 0 : i32
    %c0_i32_0 = arith.constant 0 : i32
    return %arg0, %c0_i32 : i32, i32
  }
  func.func @transform_3(%arg0: i32) -> (i32, i32, i32) {
    %c0_i32 = arith.constant 0 : i32
    %c0_i32_0 = arith.constant 0 : i32
    %c0_i32_1 = arith.constant 0 : i32
    return %arg0, %c0_i32, %c0_i32_0 : i32, i32, i32
  }
  func.func @transform_4(%arg0: i32) -> (i32, i32, i32) {
    %c0_i32 = arith.constant 0 : i32
    %c0_i32_0 = arith.constant 0 : i32
    %c0_i32_1 = arith.constant 0 : i32
    return %arg0, %c0_i32, %c0_i32_0 : i32, i32, i32
  }
}

module attributes {stable_mosaic.version = 11 : i64} {
  func.func @_affine_act_kernel(%arg0: i32, %arg1: memref<4x256xbf16, #tpu.memory_space<vmem>>, %arg2: memref<1x256xf32, #tpu.memory_space<vmem>>, %arg3: memref<1x256xf32, #tpu.memory_space<vmem>>, %arg4: memref<4x256xbf16, #tpu.memory_space<vmem>>) attributes {dimension_semantics = [#tpu.dimension_semantics<parallel>], iteration_bounds = array<i64: 1>, scalar_prefetch = 0 : i64, scratch_operands = 0 : i64, tpu.core_type = #tpu.core_type<tc>, window_params = [{transform_indices = @transform_0, window_bounds = array<i64: 4, 256>}, {pipeline_mode = #tpu.pipeline_mode<synchronous>, transform_indices = @transform_1, window_bounds = array<i64: 1, 256>}, {pipeline_mode = #tpu.pipeline_mode<synchronous>, transform_indices = @transform_2, window_bounds = array<i64: 1, 256>}, {transform_indices = @transform_3, window_bounds = array<i64: 4, 256>}]} {
    %c0 = arith.constant 0 : index
    %c0_0 = arith.constant 0 : index
    %0 = vector.load %arg1[%c0, %c0_0] : memref<4x256xbf16, #tpu.memory_space<vmem>>, vector<4x256xbf16>
    %1 = arith.extf %0 : vector<4x256xbf16> to vector<4x256xf32>
    %c0_1 = arith.constant 0 : index
    %c0_2 = arith.constant 0 : index
    %2 = vector.load %arg2[%c0_1, %c0_2] : memref<1x256xf32, #tpu.memory_space<vmem>>, vector<1x256xf32>
    %3 = vector.broadcast %2 : vector<1x256xf32> to vector<4x256xf32>
    %4 = arith.mulf %1, %3 : vector<4x256xf32>
    %c0_3 = arith.constant 0 : index
    %c0_4 = arith.constant 0 : index
    %5 = vector.load %arg3[%c0_3, %c0_4] : memref<1x256xf32, #tpu.memory_space<vmem>>, vector<1x256xf32>
    %6 = vector.broadcast %5 : vector<1x256xf32> to vector<4x256xf32>
    %7 = arith.addf %4, %6 : vector<4x256xf32>
    %cst = arith.constant 0.000000e+00 : f32
    %8 = vector.broadcast %cst : f32 to vector<4x256xf32>
    %9 = arith.maximumf %7, %8 : vector<4x256xf32>
    %10 = arith.truncf %9 : vector<4x256xf32> to vector<4x256xbf16>
    %c0_5 = arith.constant 0 : index
    %c0_6 = arith.constant 0 : index
    %11 = vector.load %arg4[%c0_5, %c0_6] : memref<4x256xbf16, #tpu.memory_space<vmem>>, vector<4x256xbf16>
    tpu.vector_store %arg4[%c0_5, %c0_6], %10 {strides = array<i32>} : memref<4x256xbf16, #tpu.memory_space<vmem>>, vector<4x256xbf16>,
    return
  }
  func.func @transform_0(%arg0: i32) -> (i32, i32) {
    %c0_i32 = arith.constant 0 : i32
    %c0_i32_0 = arith.constant 0 : i32
    return %arg0, %c0_i32 : i32, i32
  }
  func.func @transform_1(%arg0: i32) -> (i32, i32) {
    %c0_i32 = arith.constant 0 : i32
    %c0_i32_0 = arith.constant 0 : i32
    %c0_i32_1 = arith.constant 0 : i32
    return %c0_i32, %c0_i32_0 : i32, i32
  }
  func.func @transform_2(%arg0: i32) -> (i32, i32) {
    %c0_i32 = arith.constant 0 : i32
    %c0_i32_0 = arith.constant 0 : i32
    %c0_i32_1 = arith.constant 0 : i32
    return %c0_i32, %c0_i32_0 : i32, i32
  }
  func.func @transform_3(%arg0: i32) -> (i32, i32) {
    %c0_i32 = arith.constant 0 : i32
    %c0_i32_0 = arith.constant 0 : i32
    return %arg0, %c0_i32 : i32, i32
  }
}

module attributes {stable_mosaic.version = 11 : i64} {
  func.func @_conv3x3_stats_kernel(%arg0: i32, %arg1: memref<1x40x32xbf16, #tpu.memory_space<vmem>>, %arg2: memref<288x32xbf16, #tpu.memory_space<vmem>>, %arg3: memref<24x1xf32, #tpu.memory_space<vmem>>, %arg4: memref<1x24x32xbf16, #tpu.memory_space<vmem>>, %arg5: memref<1x1x32xf32, #tpu.memory_space<vmem>>, %arg6: memref<1x1x32xf32, #tpu.memory_space<vmem>>) attributes {dimension_semantics = [#tpu.dimension_semantics<parallel>], iteration_bounds = array<i64: 2>, scalar_prefetch = 0 : i64, scratch_operands = 0 : i64, tpu.core_type = #tpu.core_type<tc>, window_params = [{transform_indices = @transform_0, window_bounds = array<i64: 1, 40, 32>}, {pipeline_mode = #tpu.pipeline_mode<synchronous>, transform_indices = @transform_1, window_bounds = array<i64: 288, 32>}, {pipeline_mode = #tpu.pipeline_mode<synchronous>, transform_indices = @transform_2, window_bounds = array<i64: 24, 1>}, {transform_indices = @transform_3, window_bounds = array<i64: 1, 24, 32>}, {transform_indices = @transform_4, window_bounds = array<i64: 1, 1, 32>}, {transform_indices = @transform_5, window_bounds = array<i64: 1, 1, 32>}]} {
    %cst = arith.constant 0.000000e+00 : f32
    %0 = vector.broadcast %cst : f32 to vector<24x32xf32>
    %c0 = arith.constant 0 : index
    %c0_0 = arith.constant 0 : index
    %c0_1 = arith.constant 0 : index
    %1 = vector.load %arg1[%c0, %c0_0, %c0_1] : memref<1x40x32xbf16, #tpu.memory_space<vmem>>, vector<1x24x32xbf16>
    %2 = vector.shape_cast %1 : vector<1x24x32xbf16> to vector<24x32xbf16>
    %c0_2 = arith.constant 0 : index
    %c0_3 = arith.constant 0 : index
    %3 = vector.load %arg2[%c0_2, %c0_3] : memref<288x32xbf16, #tpu.memory_space<vmem>>, vector<32x32xbf16>
    %cst_4 = arith.constant dense<0.000000e+00> : vector<24x32xf32>
    %4 = tpu.matmul %2, %3, %cst_4 {dimension_numbers = #tpu.dot_dimension_numbers<[1], [0], [0], [1], [0, 0, 1, 1], [], []>} : vector<24x32xbf16>, vector<32x32xbf16>, vector<24x32xf32> -> vector<24x32xf32>
    %5 = arith.addf %0, %4 : vector<24x32xf32>
    %c0_5 = arith.constant 0 : index
    %c1 = arith.constant 1 : index
    %c0_6 = arith.constant 0 : index
    %6 = vector.load %arg1[%c0_5, %c1, %c0_6] : memref<1x40x32xbf16, #tpu.memory_space<vmem>>, vector<1x24x32xbf16>
    %7 = vector.shape_cast %6 : vector<1x24x32xbf16> to vector<24x32xbf16>
    %c32 = arith.constant 32 : index
    %c0_7 = arith.constant 0 : index
    %8 = vector.load %arg2[%c32, %c0_7] : memref<288x32xbf16, #tpu.memory_space<vmem>>, vector<32x32xbf16>
    %cst_8 = arith.constant dense<0.000000e+00> : vector<24x32xf32>
    %9 = tpu.matmul %7, %8, %cst_8 {dimension_numbers = #tpu.dot_dimension_numbers<[1], [0], [0], [1], [0, 0, 1, 1], [], []>} : vector<24x32xbf16>, vector<32x32xbf16>, vector<24x32xf32> -> vector<24x32xf32>
    %10 = arith.addf %5, %9 : vector<24x32xf32>
    %c0_9 = arith.constant 0 : index
    %c2 = arith.constant 2 : index
    %c0_10 = arith.constant 0 : index
    %11 = vector.load %arg1[%c0_9, %c2, %c0_10] : memref<1x40x32xbf16, #tpu.memory_space<vmem>>, vector<1x24x32xbf16>
    %12 = vector.shape_cast %11 : vector<1x24x32xbf16> to vector<24x32xbf16>
    %c64 = arith.constant 64 : index
    %c0_11 = arith.constant 0 : index
    %13 = vector.load %arg2[%c64, %c0_11] : memref<288x32xbf16, #tpu.memory_space<vmem>>, vector<32x32xbf16>
    %cst_12 = arith.constant dense<0.000000e+00> : vector<24x32xf32>
    %14 = tpu.matmul %12, %13, %cst_12 {dimension_numbers = #tpu.dot_dimension_numbers<[1], [0], [0], [1], [0, 0, 1, 1], [], []>} : vector<24x32xbf16>, vector<32x32xbf16>, vector<24x32xf32> -> vector<24x32xf32>
    %15 = arith.addf %10, %14 : vector<24x32xf32>
    %c0_13 = arith.constant 0 : index
    %c6 = arith.constant 6 : index
    %c0_14 = arith.constant 0 : index
    %16 = vector.load %arg1[%c0_13, %c6, %c0_14] : memref<1x40x32xbf16, #tpu.memory_space<vmem>>, vector<1x24x32xbf16>
    %17 = vector.shape_cast %16 : vector<1x24x32xbf16> to vector<24x32xbf16>
    %c96 = arith.constant 96 : index
    %c0_15 = arith.constant 0 : index
    %18 = vector.load %arg2[%c96, %c0_15] : memref<288x32xbf16, #tpu.memory_space<vmem>>, vector<32x32xbf16>
    %cst_16 = arith.constant dense<0.000000e+00> : vector<24x32xf32>
    %19 = tpu.matmul %17, %18, %cst_16 {dimension_numbers = #tpu.dot_dimension_numbers<[1], [0], [0], [1], [0, 0, 1, 1], [], []>} : vector<24x32xbf16>, vector<32x32xbf16>, vector<24x32xf32> -> vector<24x32xf32>
    %20 = arith.addf %15, %19 : vector<24x32xf32>
    %c0_17 = arith.constant 0 : index
    %c7 = arith.constant 7 : index
    %c0_18 = arith.constant 0 : index
    %21 = vector.load %arg1[%c0_17, %c7, %c0_18] : memref<1x40x32xbf16, #tpu.memory_space<vmem>>, vector<1x24x32xbf16>
    %22 = vector.shape_cast %21 : vector<1x24x32xbf16> to vector<24x32xbf16>
    %c128 = arith.constant 128 : index
    %c0_19 = arith.constant 0 : index
    %23 = vector.load %arg2[%c128, %c0_19] : memref<288x32xbf16, #tpu.memory_space<vmem>>, vector<32x32xbf16>
    %cst_20 = arith.constant dense<0.000000e+00> : vector<24x32xf32>
    %24 = tpu.matmul %22, %23, %cst_20 {dimension_numbers = #tpu.dot_dimension_numbers<[1], [0], [0], [1], [0, 0, 1, 1], [], []>} : vector<24x32xbf16>, vector<32x32xbf16>, vector<24x32xf32> -> vector<24x32xf32>
    %25 = arith.addf %20, %24 : vector<24x32xf32>
    %c0_21 = arith.constant 0 : index
    %c8 = arith.constant 8 : index
    %c0_22 = arith.constant 0 : index
    %26 = vector.load %arg1[%c0_21, %c8, %c0_22] : memref<1x40x32xbf16, #tpu.memory_space<vmem>>, vector<1x24x32xbf16>
    %27 = vector.shape_cast %26 : vector<1x24x32xbf16> to vector<24x32xbf16>
    %c160 = arith.constant 160 : index
    %c0_23 = arith.constant 0 : index
    %28 = vector.load %arg2[%c160, %c0_23] : memref<288x32xbf16, #tpu.memory_space<vmem>>, vector<32x32xbf16>
    %cst_24 = arith.constant dense<0.000000e+00> : vector<24x32xf32>
    %29 = tpu.matmul %27, %28, %cst_24 {dimension_numbers = #tpu.dot_dimension_numbers<[1], [0], [0], [1], [0, 0, 1, 1], [], []>} : vector<24x32xbf16>, vector<32x32xbf16>, vector<24x32xf32> -> vector<24x32xf32>
    %30 = arith.addf %25, %29 : vector<24x32xf32>
    %c0_25 = arith.constant 0 : index
    %c12 = arith.constant 12 : index
    %c0_26 = arith.constant 0 : index
    %31 = vector.load %arg1[%c0_25, %c12, %c0_26] : memref<1x40x32xbf16, #tpu.memory_space<vmem>>, vector<1x24x32xbf16>
    %32 = vector.shape_cast %31 : vector<1x24x32xbf16> to vector<24x32xbf16>
    %c192 = arith.constant 192 : index
    %c0_27 = arith.constant 0 : index
    %33 = vector.load %arg2[%c192, %c0_27] : memref<288x32xbf16, #tpu.memory_space<vmem>>, vector<32x32xbf16>
    %cst_28 = arith.constant dense<0.000000e+00> : vector<24x32xf32>
    %34 = tpu.matmul %32, %33, %cst_28 {dimension_numbers = #tpu.dot_dimension_numbers<[1], [0], [0], [1], [0, 0, 1, 1], [], []>} : vector<24x32xbf16>, vector<32x32xbf16>, vector<24x32xf32> -> vector<24x32xf32>
    %35 = arith.addf %30, %34 : vector<24x32xf32>
    %c0_29 = arith.constant 0 : index
    %c13 = arith.constant 13 : index
    %c0_30 = arith.constant 0 : index
    %36 = vector.load %arg1[%c0_29, %c13, %c0_30] : memref<1x40x32xbf16, #tpu.memory_space<vmem>>, vector<1x24x32xbf16>
    %37 = vector.shape_cast %36 : vector<1x24x32xbf16> to vector<24x32xbf16>
    %c224 = arith.constant 224 : index
    %c0_31 = arith.constant 0 : index
    %38 = vector.load %arg2[%c224, %c0_31] : memref<288x32xbf16, #tpu.memory_space<vmem>>, vector<32x32xbf16>
    %cst_32 = arith.constant dense<0.000000e+00> : vector<24x32xf32>
    %39 = tpu.matmul %37, %38, %cst_32 {dimension_numbers = #tpu.dot_dimension_numbers<[1], [0], [0], [1], [0, 0, 1, 1], [], []>} : vector<24x32xbf16>, vector<32x32xbf16>, vector<24x32xf32> -> vector<24x32xf32>
    %40 = arith.addf %35, %39 : vector<24x32xf32>
    %c0_33 = arith.constant 0 : index
    %c14 = arith.constant 14 : index
    %c0_34 = arith.constant 0 : index
    %41 = vector.load %arg1[%c0_33, %c14, %c0_34] : memref<1x40x32xbf16, #tpu.memory_space<vmem>>, vector<1x24x32xbf16>
    %42 = vector.shape_cast %41 : vector<1x24x32xbf16> to vector<24x32xbf16>
    %c256 = arith.constant 256 : index
    %c0_35 = arith.constant 0 : index
    %43 = vector.load %arg2[%c256, %c0_35] : memref<288x32xbf16, #tpu.memory_space<vmem>>, vector<32x32xbf16>
    %cst_36 = arith.constant dense<0.000000e+00> : vector<24x32xf32>
    %44 = tpu.matmul %42, %43, %cst_36 {dimension_numbers = #tpu.dot_dimension_numbers<[1], [0], [0], [1], [0, 0, 1, 1], [], []>} : vector<24x32xbf16>, vector<32x32xbf16>, vector<24x32xf32> -> vector<24x32xf32>
    %45 = arith.addf %40, %44 : vector<24x32xf32>
    %46 = arith.truncf %45 : vector<24x32xf32> to vector<24x32xbf16>
    %c0_37 = arith.constant 0 : index
    %c0_38 = arith.constant 0 : index
    %c0_39 = arith.constant 0 : index
    %47 = vector.load %arg4[%c0_37, %c0_38, %c0_39] : memref<1x24x32xbf16, #tpu.memory_space<vmem>>, vector<1x24x32xbf16>
    %48 = vector.shape_cast %47 : vector<1x24x32xbf16> to vector<24x32xbf16>
    %49 = vector.shape_cast %46 : vector<24x32xbf16> to vector<1x24x32xbf16>
    tpu.vector_store %arg4[%c0_37, %c0_38, %c0_39], %49 {strides = array<i32>} : memref<1x24x32xbf16, #tpu.memory_space<vmem>>, vector<1x24x32xbf16>,
    %c0_40 = arith.constant 0 : index
    %c0_41 = arith.constant 0 : index
    %50 = vector.load %arg3[%c0_40, %c0_41] : memref<24x1xf32, #tpu.memory_space<vmem>>, vector<24x1xf32>
    %51 = vector.broadcast %50 : vector<24x1xf32> to vector<24x32xf32>
    %52 = arith.mulf %45, %51 : vector<24x32xf32>
    %cst_42 = arith.constant dense<0.000000e+00> : vector<32xf32>
    %53 = vector.multi_reduction <add>, %52, %cst_42 [0] : vector<24x32xf32> to vector<32xf32>
    %54 = vector.shape_cast %53 : vector<32xf32> to vector<1x32xf32>
    %c0_43 = arith.constant 0 : index
    %c0_44 = arith.constant 0 : index
    %c0_45 = arith.constant 0 : index
    %55 = vector.load %arg5[%c0_43, %c0_44, %c0_45] : memref<1x1x32xf32, #tpu.memory_space<vmem>>, vector<1x1x32xf32>
    %56 = vector.shape_cast %55 : vector<1x1x32xf32> to vector<1x32xf32>
    %57 = vector.shape_cast %54 : vector<1x32xf32> to vector<1x1x32xf32>
    tpu.vector_store %arg5[%c0_43, %c0_44, %c0_45], %57 {strides = array<i32>} : memref<1x1x32xf32, #tpu.memory_space<vmem>>, vector<1x1x32xf32>,
    %58 = arith.mulf %45, %45 : vector<24x32xf32>
    %59 = vector.broadcast %50 : vector<24x1xf32> to vector<24x32xf32>
    %60 = arith.mulf %58, %59 : vector<24x32xf32>
    %cst_46 = arith.constant dense<0.000000e+00> : vector<32xf32>
    %61 = vector.multi_reduction <add>, %60, %cst_46 [0] : vector<24x32xf32> to vector<32xf32>
    %62 = vector.shape_cast %61 : vector<32xf32> to vector<1x32xf32>
    %c0_47 = arith.constant 0 : index
    %c0_48 = arith.constant 0 : index
    %c0_49 = arith.constant 0 : index
    %63 = vector.load %arg6[%c0_47, %c0_48, %c0_49] : memref<1x1x32xf32, #tpu.memory_space<vmem>>, vector<1x1x32xf32>
    %64 = vector.shape_cast %63 : vector<1x1x32xf32> to vector<1x32xf32>
    %65 = vector.shape_cast %62 : vector<1x32xf32> to vector<1x1x32xf32>
    tpu.vector_store %arg6[%c0_47, %c0_48, %c0_49], %65 {strides = array<i32>} : memref<1x1x32xf32, #tpu.memory_space<vmem>>, vector<1x1x32xf32>,
    return
  }
  func.func @transform_0(%arg0: i32) -> (i32, i32, i32) {
    %c0_i32 = arith.constant 0 : i32
    %c0_i32_0 = arith.constant 0 : i32
    %c0_i32_1 = arith.constant 0 : i32
    return %arg0, %c0_i32, %c0_i32_0 : i32, i32, i32
  }
  func.func @transform_1(%arg0: i32) -> (i32, i32) {
    %c0_i32 = arith.constant 0 : i32
    %c0_i32_0 = arith.constant 0 : i32
    %c0_i32_1 = arith.constant 0 : i32
    return %c0_i32, %c0_i32_0 : i32, i32
  }
  func.func @transform_2(%arg0: i32) -> (i32, i32) {
    %c0_i32 = arith.constant 0 : i32
    %c0_i32_0 = arith.constant 0 : i32
    %c0_i32_1 = arith.constant 0 : i32
    return %c0_i32, %c0_i32_0 : i32, i32
  }
  func.func @transform_3(%arg0: i32) -> (i32, i32, i32) {
    %c0_i32 = arith.constant 0 : i32
    %c0_i32_0 = arith.constant 0 : i32
    %c0_i32_1 = arith.constant 0 : i32
    return %arg0, %c0_i32, %c0_i32_0 : i32, i32, i32
  }
  func.func @transform_4(%arg0: i32) -> (i32, i32, i32) {
    %c0_i32 = arith.constant 0 : i32
    %c0_i32_0 = arith.constant 0 : i32
    %c0_i32_1 = arith.constant 0 : i32
    return %arg0, %c0_i32, %c0_i32_0 : i32, i32, i32
  }
  func.func @transform_5(%arg0: i32) -> (i32, i32, i32) {
    %c0_i32 = arith.constant 0 : i32
    %c0_i32_0 = arith.constant 0 : i32
    %c0_i32_1 = arith.constant 0 : i32
    return %arg0, %c0_i32, %c0_i32_0 : i32, i32, i32
  }
}

module attributes {stable_mosaic.version = 11 : i64} {
  func.func @_affine_res_kernel(%arg0: i32, %arg1: memref<4x256xbf16, #tpu.memory_space<vmem>>, %arg2: memref<1x256xf32, #tpu.memory_space<vmem>>, %arg3: memref<1x256xf32, #tpu.memory_space<vmem>>, %arg4: memref<4x256xbf16, #tpu.memory_space<vmem>>, %arg5: memref<4x256xbf16, #tpu.memory_space<vmem>>) attributes {dimension_semantics = [#tpu.dimension_semantics<parallel>], iteration_bounds = array<i64: 1>, scalar_prefetch = 0 : i64, scratch_operands = 0 : i64, tpu.core_type = #tpu.core_type<tc>, window_params = [{transform_indices = @transform_0, window_bounds = array<i64: 4, 256>}, {pipeline_mode = #tpu.pipeline_mode<synchronous>, transform_indices = @transform_1, window_bounds = array<i64: 1, 256>}, {pipeline_mode = #tpu.pipeline_mode<synchronous>, transform_indices = @transform_2, window_bounds = array<i64: 1, 256>}, {transform_indices = @transform_3, window_bounds = array<i64: 4, 256>}, {transform_indices = @transform_4, window_bounds = array<i64: 4, 256>}]} {
    %c0 = arith.constant 0 : index
    %c0_0 = arith.constant 0 : index
    %0 = vector.load %arg1[%c0, %c0_0] : memref<4x256xbf16, #tpu.memory_space<vmem>>, vector<4x256xbf16>
    %1 = arith.extf %0 : vector<4x256xbf16> to vector<4x256xf32>
    %c0_1 = arith.constant 0 : index
    %c0_2 = arith.constant 0 : index
    %2 = vector.load %arg2[%c0_1, %c0_2] : memref<1x256xf32, #tpu.memory_space<vmem>>, vector<1x256xf32>
    %3 = vector.broadcast %2 : vector<1x256xf32> to vector<4x256xf32>
    %4 = arith.mulf %1, %3 : vector<4x256xf32>
    %c0_3 = arith.constant 0 : index
    %c0_4 = arith.constant 0 : index
    %5 = vector.load %arg3[%c0_3, %c0_4] : memref<1x256xf32, #tpu.memory_space<vmem>>, vector<1x256xf32>
    %6 = vector.broadcast %5 : vector<1x256xf32> to vector<4x256xf32>
    %7 = arith.addf %4, %6 : vector<4x256xf32>
    %c0_5 = arith.constant 0 : index
    %c0_6 = arith.constant 0 : index
    %8 = vector.load %arg4[%c0_5, %c0_6] : memref<4x256xbf16, #tpu.memory_space<vmem>>, vector<4x256xbf16>
    %9 = arith.extf %8 : vector<4x256xbf16> to vector<4x256xf32>
    %10 = arith.addf %7, %9 : vector<4x256xf32>
    %11 = arith.truncf %10 : vector<4x256xf32> to vector<4x256xbf16>
    %c0_7 = arith.constant 0 : index
    %c0_8 = arith.constant 0 : index
    %12 = vector.load %arg5[%c0_7, %c0_8] : memref<4x256xbf16, #tpu.memory_space<vmem>>, vector<4x256xbf16>
    tpu.vector_store %arg5[%c0_7, %c0_8], %11 {strides = array<i32>} : memref<4x256xbf16, #tpu.memory_space<vmem>>, vector<4x256xbf16>,
    return
  }
  func.func @transform_0(%arg0: i32) -> (i32, i32) {
    %c0_i32 = arith.constant 0 : i32
    %c0_i32_0 = arith.constant 0 : i32
    return %arg0, %c0_i32 : i32, i32
  }
  func.func @transform_1(%arg0: i32) -> (i32, i32) {
    %c0_i32 = arith.constant 0 : i32
    %c0_i32_0 = arith.constant 0 : i32
    %c0_i32_1 = arith.constant 0 : i32
    return %c0_i32, %c0_i32_0 : i32, i32
  }
  func.func @transform_2(%arg0: i32) -> (i32, i32) {
    %c0_i32 = arith.constant 0 : i32
    %c0_i32_0 = arith.constant 0 : i32
    %c0_i32_1 = arith.constant 0 : i32
    return %c0_i32, %c0_i32_0 : i32, i32
  }
  func.func @transform_3(%arg0: i32) -> (i32, i32) {
    %c0_i32 = arith.constant 0 : i32
    %c0_i32_0 = arith.constant 0 : i32
    return %arg0, %c0_i32 : i32, i32
  }
  func.func @transform_4(%arg0: i32) -> (i32, i32) {
    %c0_i32 = arith.constant 0 : i32
    %c0_i32_0 = arith.constant 0 : i32
    return %arg0, %c0_i32 : i32, i32
  }
}

module attributes {stable_mosaic.version = 11 : i64} {
  func.func @_gemm_stats_kernel(%arg0: i32, %arg1: memref<32x128xbf16, #tpu.memory_space<vmem>>, %arg2: memref<128x64xbf16, #tpu.memory_space<vmem>>, %arg3: memref<32x64xbf16, #tpu.memory_space<vmem>>, %arg4: memref<1x1x64xf32, #tpu.memory_space<vmem>>, %arg5: memref<1x1x64xf32, #tpu.memory_space<vmem>>) attributes {dimension_semantics = [#tpu.dimension_semantics<parallel>], iteration_bounds = array<i64: 1>, scalar_prefetch = 0 : i64, scratch_operands = 0 : i64, tpu.core_type = #tpu.core_type<tc>, window_params = [{transform_indices = @transform_0, window_bounds = array<i64: 32, 128>}, {pipeline_mode = #tpu.pipeline_mode<synchronous>, transform_indices = @transform_1, window_bounds = array<i64: 128, 64>}, {transform_indices = @transform_2, window_bounds = array<i64: 32, 64>}, {transform_indices = @transform_3, window_bounds = array<i64: 1, 1, 64>}, {transform_indices = @transform_4, window_bounds = array<i64: 1, 1, 64>}]} {
    %c0 = arith.constant 0 : index
    %c0_0 = arith.constant 0 : index
    %0 = vector.load %arg1[%c0, %c0_0] : memref<32x128xbf16, #tpu.memory_space<vmem>>, vector<32x128xbf16>
    %c0_1 = arith.constant 0 : index
    %c0_2 = arith.constant 0 : index
    %1 = vector.load %arg2[%c0_1, %c0_2] : memref<128x64xbf16, #tpu.memory_space<vmem>>, vector<128x64xbf16>
    %cst = arith.constant dense<0.000000e+00> : vector<32x64xf32>
    %2 = tpu.matmul %0, %1, %cst {dimension_numbers = #tpu.dot_dimension_numbers<[1], [0], [0], [1], [0, 0, 1, 1], [], []>} : vector<32x128xbf16>, vector<128x64xbf16>, vector<32x64xf32> -> vector<32x64xf32>
    %3 = arith.truncf %2 : vector<32x64xf32> to vector<32x64xbf16>
    %c0_3 = arith.constant 0 : index
    %c0_4 = arith.constant 0 : index
    %4 = vector.load %arg3[%c0_3, %c0_4] : memref<32x64xbf16, #tpu.memory_space<vmem>>, vector<32x64xbf16>
    tpu.vector_store %arg3[%c0_3, %c0_4], %3 {strides = array<i32>} : memref<32x64xbf16, #tpu.memory_space<vmem>>, vector<32x64xbf16>,
    %cst_5 = arith.constant dense<0.000000e+00> : vector<64xf32>
    %5 = vector.multi_reduction <add>, %2, %cst_5 [0] : vector<32x64xf32> to vector<64xf32>
    %6 = vector.shape_cast %5 : vector<64xf32> to vector<1x64xf32>
    %c0_6 = arith.constant 0 : index
    %c0_7 = arith.constant 0 : index
    %c0_8 = arith.constant 0 : index
    %7 = vector.load %arg4[%c0_6, %c0_7, %c0_8] : memref<1x1x64xf32, #tpu.memory_space<vmem>>, vector<1x1x64xf32>
    %8 = vector.shape_cast %7 : vector<1x1x64xf32> to vector<1x64xf32>
    %9 = vector.shape_cast %6 : vector<1x64xf32> to vector<1x1x64xf32>
    tpu.vector_store %arg4[%c0_6, %c0_7, %c0_8], %9 {strides = array<i32>} : memref<1x1x64xf32, #tpu.memory_space<vmem>>, vector<1x1x64xf32>,
    %10 = arith.mulf %2, %2 : vector<32x64xf32>
    %cst_9 = arith.constant dense<0.000000e+00> : vector<64xf32>
    %11 = vector.multi_reduction <add>, %10, %cst_9 [0] : vector<32x64xf32> to vector<64xf32>
    %12 = vector.shape_cast %11 : vector<64xf32> to vector<1x64xf32>
    %c0_10 = arith.constant 0 : index
    %c0_11 = arith.constant 0 : index
    %c0_12 = arith.constant 0 : index
    %13 = vector.load %arg5[%c0_10, %c0_11, %c0_12] : memref<1x1x64xf32, #tpu.memory_space<vmem>>, vector<1x1x64xf32>
    %14 = vector.shape_cast %13 : vector<1x1x64xf32> to vector<1x64xf32>
    %15 = vector.shape_cast %12 : vector<1x64xf32> to vector<1x1x64xf32>
    tpu.vector_store %arg5[%c0_10, %c0_11, %c0_12], %15 {strides = array<i32>} : memref<1x1x64xf32, #tpu.memory_space<vmem>>, vector<1x1x64xf32>,
    return
  }
  func.func @transform_0(%arg0: i32) -> (i32, i32) {
    %c0_i32 = arith.constant 0 : i32
    %c0_i32_0 = arith.constant 0 : i32
    return %arg0, %c0_i32 : i32, i32
  }
  func.func @transform_1(%arg0: i32) -> (i32, i32) {
    %c0_i32 = arith.constant 0 : i32
    %c0_i32_0 = arith.constant 0 : i32
    %c0_i32_1 = arith.constant 0 : i32
    return %c0_i32, %c0_i32_0 : i32, i32
  }
  func.func @transform_2(%arg0: i32) -> (i32, i32) {
    %c0_i32 = arith.constant 0 : i32
    %c0_i32_0 = arith.constant 0 : i32
    return %arg0, %c0_i32 : i32, i32
  }
  func.func @transform_3(%arg0: i32) -> (i32, i32, i32) {
    %c0_i32 = arith.constant 0 : i32
    %c0_i32_0 = arith.constant 0 : i32
    %c0_i32_1 = arith.constant 0 : i32
    return %arg0, %c0_i32, %c0_i32_0 : i32, i32, i32
  }
  func.func @transform_4(%arg0: i32) -> (i32, i32, i32) {
    %c0_i32 = arith.constant 0 : i32
    %c0_i32_0 = arith.constant 0 : i32
    %c0_i32_1 = arith.constant 0 : i32
    return %arg0, %c0_i32, %c0_i32_0 : i32, i32, i32
  }
}

module attributes {stable_mosaic.version = 11 : i64} {
  func.func @_gemm_stats_kernel(%arg0: i32, %arg1: memref<128x64xbf16, #tpu.memory_space<vmem>>, %arg2: memref<64x32xbf16, #tpu.memory_space<vmem>>, %arg3: memref<128x32xbf16, #tpu.memory_space<vmem>>, %arg4: memref<1x1x32xf32, #tpu.memory_space<vmem>>, %arg5: memref<1x1x32xf32, #tpu.memory_space<vmem>>) attributes {dimension_semantics = [#tpu.dimension_semantics<parallel>], iteration_bounds = array<i64: 1>, scalar_prefetch = 0 : i64, scratch_operands = 0 : i64, tpu.core_type = #tpu.core_type<tc>, window_params = [{transform_indices = @transform_0, window_bounds = array<i64: 128, 64>}, {pipeline_mode = #tpu.pipeline_mode<synchronous>, transform_indices = @transform_1, window_bounds = array<i64: 64, 32>}, {transform_indices = @transform_2, window_bounds = array<i64: 128, 32>}, {transform_indices = @transform_3, window_bounds = array<i64: 1, 1, 32>}, {transform_indices = @transform_4, window_bounds = array<i64: 1, 1, 32>}]} {
    %c0 = arith.constant 0 : index
    %c0_0 = arith.constant 0 : index
    %0 = vector.load %arg1[%c0, %c0_0] : memref<128x64xbf16, #tpu.memory_space<vmem>>, vector<128x64xbf16>
    %c0_1 = arith.constant 0 : index
    %c0_2 = arith.constant 0 : index
    %1 = vector.load %arg2[%c0_1, %c0_2] : memref<64x32xbf16, #tpu.memory_space<vmem>>, vector<64x32xbf16>
    %cst = arith.constant dense<0.000000e+00> : vector<128x32xf32>
    %2 = tpu.matmul %0, %1, %cst {dimension_numbers = #tpu.dot_dimension_numbers<[1], [0], [0], [1], [0, 0, 1, 1], [], []>} : vector<128x64xbf16>, vector<64x32xbf16>, vector<128x32xf32> -> vector<128x32xf32>
    %3 = arith.truncf %2 : vector<128x32xf32> to vector<128x32xbf16>
    %c0_3 = arith.constant 0 : index
    %c0_4 = arith.constant 0 : index
    %4 = vector.load %arg3[%c0_3, %c0_4] : memref<128x32xbf16, #tpu.memory_space<vmem>>, vector<128x32xbf16>
    tpu.vector_store %arg3[%c0_3, %c0_4], %3 {strides = array<i32>} : memref<128x32xbf16, #tpu.memory_space<vmem>>, vector<128x32xbf16>,
    %cst_5 = arith.constant dense<0.000000e+00> : vector<32xf32>
    %5 = vector.multi_reduction <add>, %2, %cst_5 [0] : vector<128x32xf32> to vector<32xf32>
    %6 = vector.shape_cast %5 : vector<32xf32> to vector<1x32xf32>
    %c0_6 = arith.constant 0 : index
    %c0_7 = arith.constant 0 : index
    %c0_8 = arith.constant 0 : index
    %7 = vector.load %arg4[%c0_6, %c0_7, %c0_8] : memref<1x1x32xf32, #tpu.memory_space<vmem>>, vector<1x1x32xf32>
    %8 = vector.shape_cast %7 : vector<1x1x32xf32> to vector<1x32xf32>
    %9 = vector.shape_cast %6 : vector<1x32xf32> to vector<1x1x32xf32>
    tpu.vector_store %arg4[%c0_6, %c0_7, %c0_8], %9 {strides = array<i32>} : memref<1x1x32xf32, #tpu.memory_space<vmem>>, vector<1x1x32xf32>,
    %10 = arith.mulf %2, %2 : vector<128x32xf32>
    %cst_9 = arith.constant dense<0.000000e+00> : vector<32xf32>
    %11 = vector.multi_reduction <add>, %10, %cst_9 [0] : vector<128x32xf32> to vector<32xf32>
    %12 = vector.shape_cast %11 : vector<32xf32> to vector<1x32xf32>
    %c0_10 = arith.constant 0 : index
    %c0_11 = arith.constant 0 : index
    %c0_12 = arith.constant 0 : index
    %13 = vector.load %arg5[%c0_10, %c0_11, %c0_12] : memref<1x1x32xf32, #tpu.memory_space<vmem>>, vector<1x1x32xf32>
    %14 = vector.shape_cast %13 : vector<1x1x32xf32> to vector<1x32xf32>
    %15 = vector.shape_cast %12 : vector<1x32xf32> to vector<1x1x32xf32>
    tpu.vector_store %arg5[%c0_10, %c0_11, %c0_12], %15 {strides = array<i32>} : memref<1x1x32xf32, #tpu.memory_space<vmem>>, vector<1x1x32xf32>,
    return
  }
  func.func @transform_0(%arg0: i32) -> (i32, i32) {
    %c0_i32 = arith.constant 0 : i32
    %c0_i32_0 = arith.constant 0 : i32
    return %arg0, %c0_i32 : i32, i32
  }
  func.func @transform_1(%arg0: i32) -> (i32, i32) {
    %c0_i32 = arith.constant 0 : i32
    %c0_i32_0 = arith.constant 0 : i32
    %c0_i32_1 = arith.constant 0 : i32
    return %c0_i32, %c0_i32_0 : i32, i32
  }
  func.func @transform_2(%arg0: i32) -> (i32, i32) {
    %c0_i32 = arith.constant 0 : i32
    %c0_i32_0 = arith.constant 0 : i32
    return %arg0, %c0_i32 : i32, i32
  }
  func.func @transform_3(%arg0: i32) -> (i32, i32, i32) {
    %c0_i32 = arith.constant 0 : i32
    %c0_i32_0 = arith.constant 0 : i32
    %c0_i32_1 = arith.constant 0 : i32
    return %arg0, %c0_i32, %c0_i32_0 : i32, i32, i32
  }
  func.func @transform_4(%arg0: i32) -> (i32, i32, i32) {
    %c0_i32 = arith.constant 0 : i32
    %c0_i32_0 = arith.constant 0 : i32
    %c0_i32_1 = arith.constant 0 : i32
    return %arg0, %c0_i32, %c0_i32_0 : i32, i32, i32
  }
}

module attributes {stable_mosaic.version = 11 : i64} {
  func.func @_gemm_bias_tanh_kernel(%arg0: i32, %arg1: memref<512x392xbf16, #tpu.memory_space<vmem>>, %arg2: memref<392x3xbf16, #tpu.memory_space<vmem>>, %arg3: memref<1x3xf32, #tpu.memory_space<vmem>>, %arg4: memref<512x3xf32, #tpu.memory_space<vmem>>) attributes {dimension_semantics = [#tpu.dimension_semantics<parallel>], iteration_bounds = array<i64: 1>, scalar_prefetch = 0 : i64, scratch_operands = 0 : i64, tpu.core_type = #tpu.core_type<tc>, window_params = [{transform_indices = @transform_0, window_bounds = array<i64: 512, 392>}, {pipeline_mode = #tpu.pipeline_mode<synchronous>, transform_indices = @transform_1, window_bounds = array<i64: 392, 3>}, {pipeline_mode = #tpu.pipeline_mode<synchronous>, transform_indices = @transform_2, window_bounds = array<i64: 1, 3>}, {transform_indices = @transform_3, window_bounds = array<i64: 512, 3>}]} {
    %c0 = arith.constant 0 : index
    %c0_0 = arith.constant 0 : index
    %0 = vector.load %arg1[%c0, %c0_0] : memref<512x392xbf16, #tpu.memory_space<vmem>>, vector<512x392xbf16>
    %c0_1 = arith.constant 0 : index
    %c0_2 = arith.constant 0 : index
    %1 = vector.load %arg2[%c0_1, %c0_2] : memref<392x3xbf16, #tpu.memory_space<vmem>>, vector<392x3xbf16>
    %cst = arith.constant dense<0.000000e+00> : vector<512x3xf32>
    %2 = tpu.matmul %0, %1, %cst {dimension_numbers = #tpu.dot_dimension_numbers<[1], [0], [0], [1], [0, 0, 1, 1], [], []>} : vector<512x392xbf16>, vector<392x3xbf16>, vector<512x3xf32> -> vector<512x3xf32>
    %c0_3 = arith.constant 0 : index
    %c0_4 = arith.constant 0 : index
    %3 = vector.load %arg3[%c0_3, %c0_4] : memref<1x3xf32, #tpu.memory_space<vmem>>, vector<1x3xf32>
    %4 = vector.broadcast %3 : vector<1x3xf32> to vector<512x3xf32>
    %5 = arith.addf %2, %4 : vector<512x3xf32>
    %6 = math.tanh %5 : vector<512x3xf32>
    %c0_5 = arith.constant 0 : index
    %c0_6 = arith.constant 0 : index
    %7 = vector.load %arg4[%c0_5, %c0_6] : memref<512x3xf32, #tpu.memory_space<vmem>>, vector<512x3xf32>
    tpu.vector_store %arg4[%c0_5, %c0_6], %6 {strides = array<i32>} : memref<512x3xf32, #tpu.memory_space<vmem>>, vector<512x3xf32>,
    return
  }
  func.func @transform_0(%arg0: i32) -> (i32, i32) {
    %c0_i32 = arith.constant 0 : i32
    %c0_i32_0 = arith.constant 0 : i32
    return %arg0, %c0_i32 : i32, i32
  }
  func.func @transform_1(%arg0: i32) -> (i32, i32) {
    %c0_i32 = arith.constant 0 : i32
    %c0_i32_0 = arith.constant 0 : i32
    %c0_i32_1 = arith.constant 0 : i32
    return %c0_i32, %c0_i32_0 : i32, i32
  }
  func.func @transform_2(%arg0: i32) -> (i32, i32) {
    %c0_i32 = arith.constant 0 : i32
    %c0_i32_0 = arith.constant 0 : i32
    %c0_i32_1 = arith.constant 0 : i32
    return %c0_i32, %c0_i32_0 : i32, i32
  }
  func.func @transform_3(%arg0: i32) -> (i32, i32) {
    %c0_i32 = arith.constant 0 : i32
    %c0_i32_0 = arith.constant 0 : i32
    return %arg0, %c0_i32 : i32, i32
  }
}

</mosaic_0001>

<bundles_post_ra>
// kernel: _lambda_.20
= control target key start
LH: loop header
LB: loop body
LE: loop exit
PB: predicated region body
PF: predicated region fallthrough
CT: control target
= control target key end

     0   :  { %v22_v0 = vlaneseq  ;;  %s116_s0 = inlined_call_operand.vmem [shape: bf16[16,256], index: 0, kind: input, shape index: {}]   ;;  %s117_s1 = inlined_call_operand.vmem [shape: f32[1,256], index: 1, kind: input, shape index: {}]   ;;  %s118_s2 = inlined_call_operand.vmem [shape: f32[1,256], index: 2, kind: input, shape index: {}]   ;;  %s119_s3 = inlined_call_operand.vmem [shape: bf16[16,256], index: 3, kind: output, shape index: {}]  }
   0x1   :  { %v14_v1 = vld [vmem:[%s116_s0] sm:$0xff]  ;;  %v15_v3 = vld [vmem:[%s116_s0 + $0x8] sm:$0xff] }
   0x2   :  { %v23_v2 = vshrl.u32 %v22_v0, 7  ;;  %v16_v4 = vunpack.c.l.bf16 %v14_v1  ;;  %v17_v5 = vunpack.c.h.bf16 %v14_v1  ;;  %v20_v6 = vld [vmem:[%s117_s1] sm:$0x3]  ;;  %v18_v10 = vunpack.c.l.bf16 %v15_v3 }
   0x3   :  { %v36_v7 = vld [vmem:[%s118_s2] sm:$0x3]  ;;  %v19_v11 = vunpack.c.h.bf16 %v15_v3 }
   0x4   :  { %v24_v8 = vsub.s32 0, %v23_v2  ;;  %v28_v9 = vsub.s32 1, %v23_v2 }
   0x6   :  { %v25_v12 = vrot.slane %v20_v6, %v24_v8  ;;  %v29_v13 = vrot.slane %v20_v6, %v28_v9  ;;  %v41_v14 = vrot.slane %v36_v7, %v24_v8  ;;  %v45_v15 = vrot.slane %v36_v7, %v28_v9 }
   0x8   :  { %v32_v16 = vmul.f32 %v25_v12, %v16_v4  ;;  %v33_v17 = vmul.f32 %v29_v13, %v17_v5  ;;  %v34_v18 = vmul.f32 %v25_v12, %v18_v10  ;;  %v35_v19 = vmul.f32 %v29_v13, %v19_v11 }
   0xa   :  { %v48_v20 = vadd.f32 %v41_v14, %v32_v16  ;;  %v49_v21 = vadd.f32 %v45_v15, %v33_v17  ;;  %v50_v22 = vadd.f32 %v41_v14, %v34_v18  ;;  %v51_v23 = vadd.f32 %v45_v15, %v35_v19 }
   0xc   :  { %v52_v24 = vmax.f32 %v48_v20, 0.0  ;;  %v53_v25 = vmax.f32 %v49_v21, 0.0  ;;  %v54_v26 = vmax.f32 %v50_v22, 0.0  ;;  %v55_v27 = vmax.f32 %v51_v23, 0.0 }
   0xe   :  { %v76_v28 = vpack.c.bf16 %v53_v25, %v52_v24  ;;  %v77_v29 = vpack.c.bf16 %v55_v27, %v54_v26 }
  0x10   :  { %68 = vst [vmem:[%s119_s3] sm:$0xff] %v76_v28  ;;  %69 = vst [vmem:[%s119_s3 + $0x8] sm:$0xff] %v77_v29 }

// kernel: _lambda_.19
= control target key start
LH: loop header
LB: loop body
LE: loop exit
PB: predicated region body
PF: predicated region fallthrough
CT: control target
= control target key end

     0   :  { %v1865_v0 = vmov 0   ;;  %vm443_vm0 = vcmask 154624   ;;  %vm540_vm1 = vcmask 1040384   ;;  %vm541_vm2 = vcmask 1041408   ;;  %s2760_s1 = inlined_call_operand.vmem [shape: bf16[147,8], index: 1, kind: input, shape index: {}]   ;;  %s2761_s0 = inlined_call_operand.vmem [shape: bf16[512,147], index: 0, kind: input, shape index: {}]   ;;  %s2762_s2 = inlined_call_operand.vmem [shape: bf16[512,8], index: 2, kind: output, shape index: {0}]   ;;  %s2763_s3 = inlined_call_operand.vmem [shape: f32[1,1,8], index: 3, kind: output, shape index: {1}]   ;;  %s2764_s4 = inlined_call_operand.vmem [shape: f32[1,1,8], index: 4, kind: output, shape index: {2}]  }
   0x1   :  { %547 = vmatprep.subr.bf16.mxu0 %v1865_v0  ;;  %v1759_v1 = vld [vmem:[%s2760_s1] sm:$0xff]   ;;  %1737 = vmatprep.subr.bf16.mxu1 %v1865_v0  ;;  %v1760_v2 = vld [vmem:[%s2760_s1 + $0x8] sm:$0xff]   ;;  %v1761_v3 = vld [vmem:[%s2760_s1 + $0x10] sm:$0xff]   ;;  %v1866_v11 = vmov 65535   ;;  %vm1092_vm3 = vcmask 60416   ;;  %vm1157_vm4 = vcmask 64512  }
   0x2   :  { %548 = vmatpush1.bf16.msra.mxu0 %v1759_v1  ;;  %1747 = vmatpush1.bf16.msra.mxu1 %v1759_v1  ;;  %v1762_v4 = vld [vmem:[%s2760_s1 + $0x18] sm:$0xff]   ;;  %v1771_v5 = vld [vmem:[%s2761_s0 + $0x4] ss:$8 sps:$4 sm:$0xff]   ;;  %v1765_v9 = vld [vmem:[%s2760_s1 + $0x30] sm:$0xff]   ;;  %v542_v12 = vsel %vm540_vm1, 4294967295, %v1866_v11  ;;  %vm1291_vm5 = vcmask 57344  }
   0x3   :  { %549 = vmatprep.subr.bf16.mxu0 %v1865_v0  ;;  %1738 = vmatprep.subr.bf16.mxu1 %v1865_v0  ;;  %v1763_v6 = vld [vmem:[%s2760_s1 + $0x20] sm:$0xff]   ;;  %v1764_v7 = vld [vmem:[%s2760_s1 + $0x28] sm:$0xff]   ;;  %v1766_v10 = vld [vmem:[%s2760_s1 + $0x38] sm:$0xff]   ;;  %v543_v15 = vsel %vm541_vm2, %v542_v12, 0 }
   0x4   :  { %1577 = vmatprep.mubr.msk.bf16.mxu0 %vm443_vm0, %v1771_v5  ;;  %v1795_v8 = vld [vmem:[%s2761_s0 + $0x104] ss:$8 sps:$4 sm:$0xff]   ;;  %v1768_v14 = vld [vmem:[%s2760_s1 + $0x48] ss:$0 sps:$4 sm:$0x33]  }
   0x5   :  { %1593 = vmatprep.mubr.msk.bf16.mxu1 %vm443_vm0, %v1795_v8  ;;  %v1767_v13 = vld [vmem:[%s2760_s1 + $0x40] sm:$0xff]   ;;  %v545_v16 = vand.u32 %v1768_v14, %v543_v15  ;;  %v1772_v19 = vld [vmem:[%s2761_s0 + $0x14] ss:$8 sps:$4 sm:$0xff]   ;;  %v1774_v21 = vld [vmem:[%s2761_s0 + $0x10] ss:$8 sps:$4 sm:$0xff]  }
   0x6   :  { %550 = vmatpush1.bf16.msra.mxu0 %v1760_v2  ;;  %1748 = vmatpush1.bf16.msra.mxu1 %v1760_v2  ;;  %v1769_v17 = vld [vmem:[%s2761_s0] ss:$8 sps:$4 sm:$0xff]   ;;  %v1799_v20 = vld [vmem:[%s2761_s0 + $0x114] ss:$8 sps:$4 sm:$0xff]   ;;  %v1801_v22 = vld [vmem:[%s2761_s0 + $0x110] ss:$8 sps:$4 sm:$0xff]  }
   0x7   :  { %551 = vmatprep.subr.bf16.mxu0 %v1865_v0  ;;  %1739 = vmatprep.subr.bf16.mxu1 %v1865_v0  ;;  %v1793_v18 = vld [vmem:[%s2761_s0 + $0x100] ss:$8 sps:$4 sm:$0xff]   ;;  %v1775_v23 = vld [vmem:[%s2761_s0 + $0x24] ss:$8 sps:$4 sm:$0xff]   ;;  %v1778_v27 = vld [vmem:[%s2761_s0 + $0x34] ss:$8 sps:$4 sm:$0xff]  }
   0x8   :  { %v1805_v24 = vld [vmem:[%s2761_s0 + $0x124] ss:$8 sps:$4 sm:$0xff]   ;;  %v1777_v25 = vld [vmem:[%s2761_s0 + $0x20] ss:$8 sps:$4 sm:$0xff]   ;;  %v1811_v28 = vld [vmem:[%s2761_s0 + $0x134] ss:$8 sps:$4 sm:$0xff]  }
   0x9   :  { %v1807_v26 = vld [vmem:[%s2761_s0 + $0x120] ss:$8 sps:$4 sm:$0xff]   ;;  %v1780_v29 = vld [vmem:[%s2761_s0 + $0x30] ss:$8 sps:$4 sm:$0xff]   ;;  %v1781_v31 = vld [vmem:[%s2761_s0 + $0x44] ss:$8 sps:$4 sm:$0xff]  }
   0xa   :  { %552 = vmatpush1.bf16.msra.mxu0 %v1761_v3  ;;  %1749 = vmatpush1.bf16.msra.mxu1 %v1761_v3  ;;  %v1813_v30 = vld [vmem:[%s2761_s0 + $0x130] ss:$8 sps:$4 sm:$0xff]   ;;  %v1817_v32 = vld [vmem:[%s2761_s0 + $0x144] ss:$8 sps:$4 sm:$0xff]   ;;  %v1783_v33 = vld [vmem:[%s2761_s0 + $0x40] ss:$8 sps:$4 sm:$0xff]  }
   0xb   :  { %553 = vmatprep.subr.bf16.mxu0 %v1865_v0  ;;  %1740 = vmatprep.subr.bf16.mxu1 %v1865_v0  ;;  %v1819_v34 = vld [vmem:[%s2761_s0 + $0x140] ss:$8 sps:$4 sm:$0xff]   ;;  %v1784_v35 = vld [vmem:[%s2761_s0 + $0x54] ss:$8 sps:$4 sm:$0xff]   ;;  %v1786_v37 = vld [vmem:[%s2761_s0 + $0x50] ss:$8 sps:$4 sm:$0xff]  }
   0xc   :  { %v1823_v36 = vld [vmem:[%s2761_s0 + $0x154] ss:$8 sps:$4 sm:$0xff]   ;;  %v1825_v38 = vld [vmem:[%s2761_s0 + $0x150] ss:$8 sps:$4 sm:$0xff]   ;;  %v1787_v39 = vld [vmem:[%s2761_s0 + $0x64] ss:$8 sps:$4 sm:$0xff]  }
   0xd   :  { %v1829_v40 = vld [vmem:[%s2761_s0 + $0x164] ss:$8 sps:$4 sm:$0xff]   ;;  %v1789_v41 = vld [vmem:[%s2761_s0 + $0x60] ss:$8 sps:$4 sm:$0xff]   ;;  %v1790_v43 = vld [vmem:[%s2761_s0 + $0x74] ss:$8 sps:$4 sm:$0xff]  }
   0xe   :  { %554 = vmatpush1.bf16.msra.mxu0 %v1762_v4  ;;  %1750 = vmatpush1.bf16.msra.mxu1 %v1762_v4  ;;  %v1831_v42 = vld [vmem:[%s2761_s0 + $0x160] ss:$8 sps:$4 sm:$0xff]   ;;  %v1835_v44 = vld [vmem:[%s2761_s0 + $0x174] ss:$8 sps:$4 sm:$0xff]   ;;  %v1792_v45 = vld [vmem:[%s2761_s0 + $0x70] ss:$8 sps:$4 sm:$0xff]  }
   0xf   :  { %555 = vmatprep.subr.bf16.mxu0 %v1865_v0  ;;  %1741 = vmatprep.subr.bf16.mxu1 %v1865_v0  ;;  %v1837_v46 = vld [vmem:[%s2761_s0 + $0x170] ss:$8 sps:$4 sm:$0xff]   ;;  %v1796_v47 = vld [vmem:[%s2761_s0 + $0x84] ss:$8 sps:$4 sm:$0xff]   ;;  %v1798_v49 = vld [vmem:[%s2761_s0 + $0x80] ss:$8 sps:$4 sm:$0xff]  }
  0x10   :  { %v1841_v48 = vld [vmem:[%s2761_s0 + $0x184] ss:$8 sps:$4 sm:$0xff]   ;;  %v1843_v50 = vld [vmem:[%s2761_s0 + $0x180] ss:$8 sps:$4 sm:$0xff]   ;;  %v1802_v51 = vld [vmem:[%s2761_s0 + $0x94] ss:$8 sps:$4 sm:$0xff]  }
  0x11   :  { %v1844_v52 = vld [vmem:[%s2761_s0 + $0x194] ss:$8 sps:$4 sm:$0xff]   ;;  %v1804_v53 = vld [vmem:[%s2761_s0 + $0x90] ss:$8 sps:$4 sm:$0xff]   ;;  %v1808_v55 = vld [vmem:[%s2761_s0 + $0xa4] ss:$8 sps:$4 sm:$0xff]  }
  0x12   :  { %556 = vmatpush1.bf16.msra.mxu0 %v1763_v6  ;;  %1751 = vmatpush1.bf16.msra.mxu1 %v1763_v6  ;;  %v1846_v54 = vld [vmem:[%s2761_s0 + $0x190] ss:$8 sps:$4 sm:$0xff]   ;;  %v1847_v56 = vld [vmem:[%s2761_s0 + $0x1a4] ss:$8 sps:$4 sm:$0xff]   ;;  %v1810_v57 = vld [vmem:[%s2761_s0 + $0xa0] ss:$8 sps:$4 sm:$0xff]  }
  0x13   :  { %557 = vmatprep.subr.bf16.mxu0 %v1865_v0  ;;  %1742 = vmatprep.subr.bf16.mxu1 %v1865_v0  ;;  %v1849_v58 = vld [vmem:[%s2761_s0 + $0x1a0] ss:$8 sps:$4 sm:$0xff]   ;;  %v1814_v59 = vld [vmem:[%s2761_s0 + $0xb4] ss:$8 sps:$4 sm:$0xff]   ;;  %v1816_v61 = vld [vmem:[%s2761_s0 + $0xb0] ss:$8 sps:$4 sm:$0xff]  }
  0x14   :  { %v1850_v60 = vld [vmem:[%s2761_s0 + $0x1b4] ss:$8 sps:$4 sm:$0xff]   ;;  %v1852_v62 = vld [vmem:[%s2761_s0 + $0x1b0] ss:$8 sps:$4 sm:$0xff]   ;;  %v1820_v63 = vld [vmem:[%s2761_s0 + $0xc4] ss:$8 sps:$4 sm:$0xff]  }
  0x15   :  { %v1822_v1 = vld [vmem:[%s2761_s0 + $0xc0] ss:$8 sps:$4 sm:$0xff]   ;;  %v1826_v3 = vld [vmem:[%s2761_s0 + $0xd4] ss:$8 sps:$4 sm:$0xff]   ;;  %v1828_v5 = vld [vmem:[%s2761_s0 + $0xd0] ss:$8 sps:$4 sm:$0xff]  }
  0x16   :  { %558 = vmatpush1.bf16.msra.mxu0 %v1764_v7  ;;  %1752 = vmatpush1.bf16.msra.mxu1 %v1764_v7  ;;  %v1855_v2 = vld [vmem:[%s2761_s0 + $0x1c0] ss:$8 sps:$4 sm:$0xff]   ;;  %v1856_v4 = vld [vmem:[%s2761_s0 + $0x1d4] ss:$8 sps:$4 sm:$0xff]   ;;  %v1858_v6 = vld [vmem:[%s2761_s0 + $0x1d0] ss:$8 sps:$4 sm:$0xff]  }
  0x17   :  { %559 = vmatprep.subr.bf16.mxu0 %v1865_v0  ;;  %1743 = vmatprep.subr.bf16.mxu1 %v1865_v0  ;;  %v1832_v7 = vld [vmem:[%s2761_s0 + $0xe4] ss:$8 sps:$4 sm:$0xff]   ;;  %v1838_v11 = vld [vmem:[%s2761_s0 + $0xf4] ss:$8 sps:$4 sm:$0xff]   ;;  %v1864_v14 = vld [vmem:[%s2761_s0 + $0x1f0] ss:$8 sps:$4 sm:$0xff]  }
  0x18   :  { %v1859_v8 = vld [vmem:[%s2761_s0 + $0x1e4] ss:$8 sps:$4 sm:$0xff]   ;;  %v1862_v12 = vld [vmem:[%s2761_s0 + $0x1f4] ss:$8 sps:$4 sm:$0xff]  }
  0x1a   :  { %560 = vmatpush1.bf16.msra.mxu0 %v1765_v9  ;;  %1753 = vmatpush1.bf16.msra.mxu1 %v1765_v9  ;;  %v1834_v9 = vld [vmem:[%s2761_s0 + $0xe0] ss:$8 sps:$4 sm:$0xff]  }
  0x1b   :  { %561 = vmatprep.subr.bf16.mxu0 %v1865_v0  ;;  %1744 = vmatprep.subr.bf16.mxu1 %v1865_v0 }
  0x1e   :  { %562 = vmatpush1.bf16.msra.mxu0 %v1766_v10  ;;  %1754 = vmatpush1.bf16.msra.mxu1 %v1766_v10  ;;  %v1861_v10 = vld [vmem:[%s2761_s0 + $0x1e0] ss:$8 sps:$4 sm:$0xff]  }
  0x1f   :  { %563 = vmatprep.subr.bf16.mxu0 %v1865_v0  ;;  %1745 = vmatprep.subr.bf16.mxu1 %v1865_v0 }
  0x22   :  { %564 = vmatpush1.bf16.msra.mxu0 %v1767_v13  ;;  %1755 = vmatpush1.bf16.msra.mxu1 %v1767_v13  ;;  %v1840_v13 = vld [vmem:[%s2761_s0 + $0xf0] ss:$8 sps:$4 sm:$0xff]  }
  0x23   :  { %565 = vmatprep.subr.bf16.mxu0 %v1865_v0  ;;  %1746 = vmatprep.subr.bf16.mxu1 %v1865_v0  ;;  %v1853_v0 = vld [vmem:[%s2761_s0 + $0x1c4] ss:$8 sps:$4 sm:$0xff]  }
  0x26   :  { %566 = vmatpush1.bf16.msra.mxu0 %v545_v16  ;;  %1756 = vmatpush1.bf16.msra.mxu1 %v545_v16 }
  0x29   :  { %580 = vmatmul.mubr.bf16.vlgmr.msra.gmra.mrb[0].mxu0 %v1769_v17  ;;  %708 = vmatmul.mubr.bf16.vlgmr.msra.gmra.mrb[0].mxu1 %v1793_v18 }
  0x2a   :  { %1578 = vmatprep.mubr.msk.bf16.mxu0 %vm443_vm0, %v1772_v19  ;;  %1594 = vmatprep.mubr.msk.bf16.mxu1 %vm443_vm0, %v1799_v20 }
  0x31   :  { %588 = vmatmul.mubr.bf16.gmra.mrb[4].mxu0 %v1774_v21  ;;  %716 = vmatmul.mubr.bf16.gmra.mrb[4].mxu1 %v1801_v22 }
  0x32   :  { %1579 = vmatprep.mubr.msk.bf16.mxu0 %vm443_vm0, %v1775_v23  ;;  %1595 = vmatprep.mubr.msk.bf16.mxu1 %vm443_vm0, %v1805_v24 }
  0x39   :  { %596 = vmatmul.mubr.bf16.gmra.mrb[8].mxu0 %v1777_v25  ;;  %724 = vmatmul.mubr.bf16.gmra.mrb[8].mxu1 %v1807_v26 }
  0x3a   :  { %1580 = vmatprep.mubr.msk.bf16.mxu0 %vm443_vm0, %v1778_v27  ;;  %1596 = vmatprep.mubr.msk.bf16.mxu1 %vm443_vm0, %v1811_v28 }
  0x41   :  { %604 = vmatmul.mubr.bf16.gmra.mrb[12].mxu0 %v1780_v29  ;;  %732 = vmatmul.mubr.bf16.gmra.mrb[12].mxu1 %v1813_v30 }
  0x42   :  { %1581 = vmatprep.mubr.msk.bf16.mxu0 %vm443_vm0, %v1781_v31  ;;  %1597 = vmatprep.mubr.msk.bf16.mxu1 %vm443_vm0, %v1817_v32 }
  0x49   :  { %612 = vmatmul.mubr.bf16.gmra.mrb[16].mxu0 %v1783_v33  ;;  %740 = vmatmul.mubr.bf16.gmra.mrb[16].mxu1 %v1819_v34 }
  0x4a   :  { %1582 = vmatprep.mubr.msk.bf16.mxu0 %vm443_vm0, %v1784_v35  ;;  %1598 = vmatprep.mubr.msk.bf16.mxu1 %vm443_vm0, %v1823_v36 }
  0x51   :  { %620 = vmatmul.mubr.bf16.gmra.mrb[20].mxu0 %v1786_v37  ;;  %748 = vmatmul.mubr.bf16.gmra.mrb[20].mxu1 %v1825_v38 }
  0x52   :  { %1583 = vmatprep.mubr.msk.bf16.mxu0 %vm443_vm0, %v1787_v39  ;;  %1599 = vmatprep.mubr.msk.bf16.mxu1 %vm443_vm0, %v1829_v40 }
  0x59   :  { %628 = vmatmul.mubr.bf16.gmra.mrb[24].mxu0 %v1789_v41  ;;  %756 = vmatmul.mubr.bf16.gmra.mrb[24].mxu1 %v1831_v42 }
  0x5a   :  { %1584 = vmatprep.mubr.msk.bf16.mxu0 %vm443_vm0, %v1790_v43  ;;  %1600 = vmatprep.mubr.msk.bf16.mxu1 %vm443_vm0, %v1835_v44 }
  0x61   :  { %636 = vmatmul.mubr.bf16.gmra.mrb[28].mxu0 %v1792_v45  ;;  %764 = vmatmul.mubr.bf16.gmra.mrb[28].mxu1 %v1837_v46 }
  0x62   :  { %1585 = vmatprep.mubr.msk.bf16.mxu0 %vm443_vm0, %v1796_v47  ;;  %1601 = vmatprep.mubr.msk.bf16.mxu1 %vm443_vm0, %v1841_v48 }
  0x69   :  { %644 = vmatmul.mubr.bf16.gmra.mrb[32].mxu0 %v1798_v49  ;;  %772 = vmatmul.mubr.bf16.gmra.mrb[32].mxu1 %v1843_v50 }
  0x6a   :  { %1586 = vmatprep.mubr.msk.bf16.mxu0 %vm443_vm0, %v1802_v51  ;;  %1602 = vmatprep.mubr.msk.bf16.mxu1 %vm443_vm0, %v1844_v52 }
  0x71   :  { %652 = vmatmul.mubr.bf16.gmra.mrb[36].mxu0 %v1804_v53  ;;  %780 = vmatmul.mubr.bf16.gmra.mrb[36].mxu1 %v1846_v54 }
  0x72   :  { %1587 = vmatprep.mubr.msk.bf16.mxu0 %vm443_vm0, %v1808_v55  ;;  %1603 = vmatprep.mubr.msk.bf16.mxu1 %vm443_vm0, %v1847_v56 }
  0x79   :  { %660 = vmatmul.mubr.bf16.gmra.mrb[40].mxu0 %v1810_v57  ;;  %788 = vmatmul.mubr.bf16.gmra.mrb[40].mxu1 %v1849_v58 }
  0x7a   :  { %1588 = vmatprep.mubr.msk.bf16.mxu0 %vm443_vm0, %v1814_v59  ;;  %1604 = vmatprep.mubr.msk.bf16.mxu1 %vm443_vm0, %v1850_v60 }
  0x81   :  { %668 = vmatmul.mubr.bf16.gmra.mrb[44].mxu0 %v1816_v61  ;;  %796 = vmatmul.mubr.bf16.gmra.mrb[44].mxu1 %v1852_v62 }
  0x82   :  { %1589 = vmatprep.mubr.msk.bf16.mxu0 %vm443_vm0, %v1820_v63  ;;  %1605 = vmatprep.mubr.msk.bf16.mxu1 %vm443_vm0, %v1853_v0 }
  0x89   :  { %676 = vmatmul.mubr.bf16.gmra.mrb[48].mxu0 %v1822_v1  ;;  %804 = vmatmul.mubr.bf16.gmra.mrb[48].mxu1 %v1855_v2 }
  0x8a   :  { %1590 = vmatprep.mubr.msk.bf16.mxu0 %vm443_vm0, %v1826_v3  ;;  %1606 = vmatprep.mubr.msk.bf16.mxu1 %vm443_vm0, %v1856_v4 }
  0x91   :  { %684 = vmatmul.mubr.bf16.gmra.mrb[52].mxu0 %v1828_v5  ;;  %812 = vmatmul.mubr.bf16.gmra.mrb[52].mxu1 %v1858_v6 }
  0x92   :  { %1591 = vmatprep.mubr.msk.bf16.mxu0 %vm443_vm0, %v1832_v7  ;;  %1607 = vmatprep.mubr.msk.bf16.mxu1 %vm443_vm0, %v1859_v8 }
  0x99   :  { %692 = vmatmul.mubr.bf16.gmra.mrb[56].mxu0 %v1834_v9  ;;  %820 = vmatmul.mubr.bf16.gmra.mrb[56].mxu1 %v1861_v10 }
  0x9a   :  { %1592 = vmatprep.mubr.msk.bf16.mxu0 %vm443_vm0, %v1838_v11  ;;  %1608 = vmatprep.mubr.msk.bf16.mxu1 %vm443_vm0, %v1862_v12 }
  0xa1   :  { %700 = vmatmul.mubr.bf16.gmra.mrb[60].mxu0 %v1840_v13  ;;  %828 = vmatmul.mubr.bf16.gmra.mrb[60].mxu1 %v1864_v14 }
  0xfc   :  { %v581_v15 = vpop.f32.mrb[0].mxu0  ;;  %v2146_v16 = vpop.f32.mrb[0].mxu1 }
  0xfd   :  { %v1673_v17 = vpack.c.bf16 %v581_v15, %v581_v15  ;;  %v1293_v18 = vmul.f32 %v581_v15, %v581_v15  ;;  %v583_v19 = vpop.f32.mrb[1].mxu0  ;;  %v1705_v20 = vpack.c.bf16 %v2146_v16, %v2146_v16  ;;  %v711_v21 = vpop.f32.mrb[1].mxu1  ;;  %v1158_v24 = vsel %vm1157_vm4, %v581_v15, 0.0 }
  0xfe   :  { %v584_v22 = vpop.f32.mrb[2].mxu0  ;;  %v2150_v23 = vpop.f32.mrb[2].mxu1 }
  0xff   :  { %1093 = vst.msk [vmem:[%s2762_s2] sm:$0xf] %vm1092_vm3, %v1673_v17  ;;  %v1674_v25 = vpack.c.bf16 %v584_v22, %v584_v22  ;;  %v1159_v26 = vsel %vm1157_vm4, %v584_v22, 0.0  ;;  %v1294_v27 = vmul.f32 %v584_v22, %v584_v22  ;;  %v586_v28 = vpop.f32.mrb[3].mxu0  ;;  %1125 = vst.msk [vmem:[%s2762_s2 + $0x80] sm:$0xf] %vm1092_vm3, %v1705_v20  ;;  %v1706_v31 = vpack.c.bf16 %v2150_v23, %v2150_v23 }
 0x100   :  { %v714_v29 = vpop.f32.mrb[3].mxu1  ;;  %v1160_v30 = vadd.f32 %v1159_v26, %v1158_v24  ;;  %v1357_v32 = vsel %vm1157_vm4, %v1293_v18, 0.0 }
 0x101   :  { %1094 = vst.msk [vmem:[%s2762_s2 + $0x4] sm:$0xf] %vm1092_vm3, %v1674_v25  ;;  %v1358_v33 = vsel %vm1157_vm4, %v1294_v27, 0.0  ;;  %1126 = vst.msk [vmem:[%s2762_s2 + $0x84] sm:$0xf] %vm1092_vm3, %v1706_v31 }
 0x102   :  { %v1359_v34 = vadd.f32 %v1358_v33, %v1357_v32 }
 0x104   :  { %v589_v35 = vpop.f32.mrb[4].mxu0  ;;  %v2174_v36 = vpop.f32.mrb[4].mxu1 }
 0x105   :  { %v1675_v37 = vpack.c.bf16 %v589_v35, %v589_v35  ;;  %v1161_v38 = vsel %vm1157_vm4, %v589_v35, 0.0  ;;  %v1295_v39 = vmul.f32 %v589_v35, %v589_v35  ;;  %v591_v40 = vpop.f32.mrb[5].mxu0  ;;  %v1707_v41 = vpack.c.bf16 %v2174_v36, %v2174_v36  ;;  %v719_v42 = vpop.f32.mrb[5].mxu1 }
 0x106   :  { %v1162_v43 = vadd.f32 %v1161_v38, %v1160_v30  ;;  %v592_v44 = vpop.f32.mrb[6].mxu0  ;;  %v2179_v45 = vpop.f32.mrb[6].mxu1 }
 0x107   :  { %1095 = vst.msk [vmem:[%s2762_s2 + $0x8] sm:$0xf] %vm1092_vm3, %v1675_v37  ;;  %v1360_v46 = vsel %vm1157_vm4, %v1295_v39, 0.0  ;;  %v1676_v47 = vpack.c.bf16 %v592_v44, %v592_v44  ;;  %v1163_v48 = vsel %vm1157_vm4, %v592_v44, 0.0  ;;  %v1296_v49 = vmul.f32 %v592_v44, %v592_v44  ;;  %v594_v50 = vpop.f32.mrb[7].mxu0  ;;  %v722_v51 = vpop.f32.mrb[7].mxu1 }
 0x108   :  { %1127 = vst.msk [vmem:[%s2762_s2 + $0x88] sm:$0xf] %vm1092_vm3, %v1707_v41  ;;  %v1361_v52 = vadd.f32 %v1360_v46, %v1359_v34  ;;  %v1164_v53 = vadd.f32 %v1163_v48, %v1162_v43  ;;  %v1708_v54 = vpack.c.bf16 %v2179_v45, %v2179_v45 }
 0x109   :  { %1096 = vst.msk [vmem:[%s2762_s2 + $0xc] sm:$0xf] %vm1092_vm3, %v1676_v47  ;;  %v1362_v55 = vsel %vm1157_vm4, %v1296_v49, 0.0 }
 0x10a   :  { %v1363_v56 = vadd.f32 %v1362_v55, %v1361_v52  ;;  %1128 = vst.msk [vmem:[%s2762_s2 + $0x8c] sm:$0xf] %vm1092_vm3, %v1708_v54 }
 0x10c   :  { %v597_v57 = vpop.f32.mrb[8].mxu0  ;;  %v2202_v58 = vpop.f32.mrb[8].mxu1 }
 0x10d   :  { %v1677_v59 = vpack.c.bf16 %v597_v57, %v597_v57  ;;  %v1165_v60 = vsel %vm1157_vm4, %v597_v57, 0.0  ;;  %v1297_v61 = vmul.f32 %v597_v57, %v597_v57  ;;  %v599_v62 = vpop.f32.mrb[9].mxu0  ;;  %v1709_v63 = vpack.c.bf16 %v2202_v58, %v2202_v58  ;;  %v727_v0 = vpop.f32.mrb[9].mxu1 }
 0x10e   :  { %v1166_v1 = vadd.f32 %v1165_v60, %v1164_v53  ;;  %v600_v2 = vpop.f32.mrb[10].mxu0  ;;  %v2207_v3 = vpop.f32.mrb[10].mxu1 }
 0x10f   :  { %1097 = vst.msk [vmem:[%s2762_s2 + $0x10] sm:$0xf] %vm1092_vm3, %v1677_v59  ;;  %v1364_v4 = vsel %vm1157_vm4, %v1297_v61, 0.0  ;;  %v1678_v5 = vpack.c.bf16 %v600_v2, %v600_v2  ;;  %v1167_v6 = vsel %vm1157_vm4, %v600_v2, 0.0  ;;  %v1298_v7 = vmul.f32 %v600_v2, %v600_v2  ;;  %v602_v8 = vpop.f32.mrb[11].mxu0  ;;  %v730_v9 = vpop.f32.mrb[11].mxu1 }
 0x110   :  { %1129 = vst.msk [vmem:[%s2762_s2 + $0x90] sm:$0xf] %vm1092_vm3, %v1709_v63  ;;  %v1365_v10 = vadd.f32 %v1364_v4, %v1363_v56  ;;  %v1168_v11 = vadd.f32 %v1167_v6, %v1166_v1  ;;  %v1710_v12 = vpack.c.bf16 %v2207_v3, %v2207_v3 }
 0x111   :  { %1098 = vst.msk [vmem:[%s2762_s2 + $0x14] sm:$0xf] %vm1092_vm3, %v1678_v5  ;;  %v1366_v13 = vsel %vm1157_vm4, %v1298_v7, 0.0 }
 0x112   :  { %v1367_v14 = vadd.f32 %v1366_v13, %v1365_v10  ;;  %1130 = vst.msk [vmem:[%s2762_s2 + $0x94] sm:$0xf] %vm1092_vm3, %v1710_v12 }
 0x114   :  { %v605_v15 = vpop.f32.mrb[12].mxu0  ;;  %v2230_v17 = vpop.f32.mrb[12].mxu1 }
 0x115   :  { %v1679_v18 = vpack.c.bf16 %v605_v15, %v605_v15  ;;  %v1169_v19 = vsel %vm1157_vm4, %v605_v15, 0.0  ;;  %v1299_v20 = vmul.f32 %v605_v15, %v605_v15  ;;  %v607_v21 = vpop.f32.mrb[13].mxu0  ;;  %v1711_v22 = vpack.c.bf16 %v2230_v17, %v2230_v17  ;;  %v735_v24 = vpop.f32.mrb[13].mxu1 }
 0x116   :  { %v1170_v25 = vadd.f32 %v1169_v19, %v1168_v11  ;;  %v608_v26 = vpop.f32.mrb[14].mxu0  ;;  %v2235_v27 = vpop.f32.mrb[14].mxu1 }
 0x117   :  { %1099 = vst.msk [vmem:[%s2762_s2 + $0x18] sm:$0xf] %vm1092_vm3, %v1679_v18  ;;  %v1368_v28 = vsel %vm1157_vm4, %v1299_v20, 0.0  ;;  %v1680_v29 = vpack.c.bf16 %v608_v26, %v608_v26  ;;  %v1171_v30 = vsel %vm1157_vm4, %v608_v26, 0.0  ;;  %v1300_v31 = vmul.f32 %v608_v26, %v608_v26  ;;  %v610_v32 = vpop.f32.mrb[15].mxu0  ;;  %v738_v33 = vpop.f32.mrb[15].mxu1 }
 0x118   :  { %1131 = vst.msk [vmem:[%s2762_s2 + $0x98] sm:$0xf] %vm1092_vm3, %v1711_v22  ;;  %v1369_v34 = vadd.f32 %v1368_v28, %v1367_v14  ;;  %v1172_v35 = vadd.f32 %v1171_v30, %v1170_v25  ;;  %v1712_v37 = vpack.c.bf16 %v2235_v27, %v2235_v27 }
 0x119   :  { %1100 = vst.msk [vmem:[%s2762_s2 + $0x1c] sm:$0xf] %vm1092_vm3, %v1680_v29  ;;  %v1370_v38 = vsel %vm1157_vm4, %v1300_v31, 0.0 }
 0x11a   :  { %v1371_v39 = vadd.f32 %v1370_v38, %v1369_v34  ;;  %1132 = vst.msk [vmem:[%s2762_s2 + $0x9c] sm:$0xf] %vm1092_vm3, %v1712_v37 }
 0x11c   :  { %v613_v40 = vpop.f32.mrb[16].mxu0  ;;  %v2258_v41 = vpop.f32.mrb[16].mxu1 }
 0x11d   :  { %v1681_v42 = vpack.c.bf16 %v613_v40, %v613_v40  ;;  %v1173_v43 = vsel %vm1157_vm4, %v613_v40, 0.0  ;;  %v1301_v44 = vmul.f32 %v613_v40, %v613_v40  ;;  %v615_v46 = vpop.f32.mrb[17].mxu0  ;;  %v1713_v47 = vpack.c.bf16 %v2258_v41, %v2258_v41  ;;  %v743_v48 = vpop.f32.mrb[17].mxu1 }
 0x11e   :  { %v1174_v49 = vadd.f32 %v1173_v43, %v1172_v35  ;;  %v616_v50 = vpop.f32.mrb[18].mxu0  ;;  %v2263_v51 = vpop.f32.mrb[18].mxu1 }
 0x11f   :  { %1101 = vst.msk [vmem:[%s2762_s2 + $0x20] sm:$0xf] %vm1092_vm3, %v1681_v42  ;;  %v1372_v52 = vsel %vm1157_vm4, %v1301_v44, 0.0  ;;  %v1682_v53 = vpack.c.bf16 %v616_v50, %v616_v50  ;;  %v1175_v54 = vsel %vm1157_vm4, %v616_v50, 0.0  ;;  %v1302_v55 = vmul.f32 %v616_v50, %v616_v50  ;;  %v618_v56 = vpop.f32.mrb[19].mxu0  ;;  %v746_v57 = vpop.f32.mrb[19].mxu1 }
 0x120   :  { %1133 = vst.msk [vmem:[%s2762_s2 + $0xa0] sm:$0xf] %vm1092_vm3, %v1713_v47  ;;  %v1373_v59 = vadd.f32 %v1372_v52, %v1371_v39  ;;  %v1176_v60 = vadd.f32 %v1175_v54, %v1174_v49  ;;  %v1714_v61 = vpack.c.bf16 %v2263_v51, %v2263_v51 }
 0x121   :  { %1102 = vst.msk [vmem:[%s2762_s2 + $0x24] sm:$0xf] %vm1092_vm3, %v1682_v53  ;;  %v1374_v62 = vsel %vm1157_vm4, %v1302_v55, 0.0 }
 0x122   :  { %v1375_v63 = vadd.f32 %v1374_v62, %v1373_v59  ;;  %1134 = vst.msk [vmem:[%s2762_s2 + $0xa4] sm:$0xf] %vm1092_vm3, %v1714_v61 }
 0x124   :  { %v621_v0 = vpop.f32.mrb[20].mxu0  ;;  %v2286_v1 = vpop.f32.mrb[20].mxu1 }
 0x125   :  { %v1683_v2 = vpack.c.bf16 %v621_v0, %v621_v0  ;;  %v1177_v4 = vsel %vm1157_vm4, %v621_v0, 0.0  ;;  %v1303_v5 = vmul.f32 %v621_v0, %v621_v0  ;;  %v623_v6 = vpop.f32.mrb[21].mxu0  ;;  %v1715_v7 = vpack.c.bf16 %v2286_v1, %v2286_v1  ;;  %v751_v8 = vpop.f32.mrb[21].mxu1 }
 0x126   :  { %v1178_v9 = vadd.f32 %v1177_v4, %v1176_v60  ;;  %v624_v10 = vpop.f32.mrb[22].mxu0  ;;  %v2291_v11 = vpop.f32.mrb[22].mxu1 }
 0x127   :  { %1103 = vst.msk [vmem:[%s2762_s2 + $0x28] sm:$0xf] %vm1092_vm3, %v1683_v2  ;;  %v1376_v12 = vsel %vm1157_vm4, %v1303_v5, 0.0  ;;  %v1684_v13 = vpack.c.bf16 %v624_v10, %v624_v10  ;;  %v1179_v14 = vsel %vm1157_vm4, %v624_v10, 0.0  ;;  %v1304_v15 = vmul.f32 %v624_v10, %v624_v10  ;;  %v626_v18 = vpop.f32.mrb[23].mxu0  ;;  %v754_v19 = vpop.f32.mrb[23].mxu1 }
 0x128   :  { %1135 = vst.msk [vmem:[%s2762_s2 + $0xa8] sm:$0xf] %vm1092_vm3, %v1715_v7  ;;  %v1377_v20 = vadd.f32 %v1376_v12, %v1375_v63  ;;  %v1180_v21 = vadd.f32 %v1179_v14, %v1178_v9  ;;  %v1716_v22 = vpack.c.bf16 %v2291_v11, %v2291_v11 }
 0x129   :  { %1104 = vst.msk [vmem:[%s2762_s2 + $0x2c] sm:$0xf] %vm1092_vm3, %v1684_v13  ;;  %v1378_v24 = vsel %vm1157_vm4, %v1304_v15, 0.0 }
 0x12a   :  { %v1379_v25 = vadd.f32 %v1378_v24, %v1377_v20  ;;  %1136 = vst.msk [vmem:[%s2762_s2 + $0xac] sm:$0xf] %vm1092_vm3, %v1716_v22 }
 0x12c   :  { %v629_v26 = vpop.f32.mrb[24].mxu0  ;;  %v2314_v28 = vpop.f32.mrb[24].mxu1 }
 0x12d   :  { %v1685_v29 = vpack.c.bf16 %v629_v26, %v629_v26  ;;  %v1181_v30 = vsel %vm1157_vm4, %v629_v26, 0.0  ;;  %v1305_v31 = vmul.f32 %v629_v26, %v629_v26  ;;  %v631_v32 = vpop.f32.mrb[25].mxu0  ;;  %v1717_v33 = vpack.c.bf16 %v2314_v28, %v2314_v28  ;;  %v759_v34 = vpop.f32.mrb[25].mxu1 }
 0x12e   :  { %v1182_v35 = vadd.f32 %v1181_v30, %v1180_v21  ;;  %v632_v37 = vpop.f32.mrb[26].mxu0  ;;  %v2319_v38 = vpop.f32.mrb[26].mxu1 }
 0x12f   :  { %1105 = vst.msk [vmem:[%s2762_s2 + $0x30] sm:$0xf] %vm1092_vm3, %v1685_v29  ;;  %v1380_v39 = vsel %vm1157_vm4, %v1305_v31, 0.0  ;;  %v1686_v40 = vpack.c.bf16 %v632_v37, %v632_v37  ;;  %v1183_v42 = vsel %vm1157_vm4, %v632_v37, 0.0  ;;  %v1306_v43 = vmul.f32 %v632_v37, %v632_v37  ;;  %v634_v44 = vpop.f32.mrb[27].mxu0  ;;  %v762_v46 = vpop.f32.mrb[27].mxu1 }
 0x130   :  { %1137 = vst.msk [vmem:[%s2762_s2 + $0xb0] sm:$0xf] %vm1092_vm3, %v1717_v33  ;;  %v1381_v47 = vadd.f32 %v1380_v39, %v1379_v25  ;;  %v1184_v48 = vadd.f32 %v1183_v42, %v1182_v35  ;;  %v1718_v49 = vpack.c.bf16 %v2319_v38, %v2319_v38 }
 0x131   :  { %1106 = vst.msk [vmem:[%s2762_s2 + $0x34] sm:$0xf] %vm1092_vm3, %v1686_v40  ;;  %v1382_v50 = vsel %vm1157_vm4, %v1306_v43, 0.0 }
 0x132   :  { %v1383_v52 = vadd.f32 %v1382_v50, %v1381_v47  ;;  %1138 = vst.msk [vmem:[%s2762_s2 + $0xb4] sm:$0xf] %vm1092_vm3, %v1718_v49 }
 0x134   :  { %v637_v53 = vpop.f32.mrb[28].mxu0  ;;  %v2342_v54 = vpop.f32.mrb[28].mxu1 }
 0x135   :  { %v1687_v55 = vpack.c.bf16 %v637_v53, %v637_v53  ;;  %v1185_v56 = vsel %vm1157_vm4, %v637_v53, 0.0  ;;  %v1307_v57 = vmul.f32 %v637_v53, %v637_v53  ;;  %v639_v59 = vpop.f32.mrb[29].mxu0  ;;  %v1719_v60 = vpack.c.bf16 %v2342_v54, %v2342_v54  ;;  %v767_v61 = vpop.f32.mrb[29].mxu1 }
 0x136   :  { %v1186_v62 = vadd.f32 %v1185_v56, %v1184_v48  ;;  %v640_v63 = vpop.f32.mrb[30].mxu0  ;;  %v2347_v0 = vpop.f32.mrb[30].mxu1 }
 0x137   :  { %1107 = vst.msk [vmem:[%s2762_s2 + $0x38] sm:$0xf] %vm1092_vm3, %v1687_v55  ;;  %v1384_v2 = vsel %vm1157_vm4, %v1307_v57, 0.0  ;;  %v1688_v4 = vpack.c.bf16 %v640_v63, %v640_v63  ;;  %v1187_v5 = vsel %vm1157_vm4, %v640_v63, 0.0  ;;  %v1308_v6 = vmul.f32 %v640_v63, %v640_v63  ;;  %v642_v7 = vpop.f32.mrb[31].mxu0  ;;  %v770_v8 = vpop.f32.mrb[31].mxu1 }
 0x138   :  { %1139 = vst.msk [vmem:[%s2762_s2 + $0xb8] sm:$0xf] %vm1092_vm3, %v1719_v60  ;;  %v1385_v9 = vadd.f32 %v1384_v2, %v1383_v52  ;;  %v1188_v10 = vadd.f32 %v1187_v5, %v1186_v62  ;;  %v1720_v12 = vpack.c.bf16 %v2347_v0, %v2347_v0 }
 0x139   :  { %1108 = vst.msk [vmem:[%s2762_s2 + $0x3c] sm:$0xf] %vm1092_vm3, %v1688_v4  ;;  %v1386_v13 = vsel %vm1157_vm4, %v1308_v6, 0.0 }
 0x13a   :  { %v1387_v14 = vadd.f32 %v1386_v13, %v1385_v9  ;;  %1140 = vst.msk [vmem:[%s2762_s2 + $0xbc] sm:$0xf] %vm1092_vm3, %v1720_v12 }
 0x13c   :  { %v645_v15 = vpop.f32.mrb[32].mxu0  ;;  %v2370_v18 = vpop.f32.mrb[32].mxu1 }
 0x13d   :  { %v1689_v19 = vpack.c.bf16 %v645_v15, %v645_v15  ;;  %v1189_v20 = vsel %vm1157_vm4, %v645_v15, 0.0  ;;  %v1309_v21 = vmul.f32 %v645_v15, %v645_v15  ;;  %v647_v22 = vpop.f32.mrb[33].mxu0  ;;  %v1721_v24 = vpack.c.bf16 %v2370_v18, %v2370_v18  ;;  %v775_v25 = vpop.f32.mrb[33].mxu1 }
 0x13e   :  { %v1190_v26 = vadd.f32 %v1189_v20, %v1188_v10  ;;  %v648_v29 = vpop.f32.mrb[34].mxu0  ;;  %v2375_v30 = vpop.f32.mrb[34].mxu1 }
 0x13f   :  { %1109 = vst.msk [vmem:[%s2762_s2 + $0x40] sm:$0xf] %vm1092_vm3, %v1689_v19  ;;  %v1388_v31 = vsel %vm1157_vm4, %v1309_v21, 0.0  ;;  %v1690_v32 = vpack.c.bf16 %v648_v29, %v648_v29  ;;  %v1191_v33 = vsel %vm1157_vm4, %v648_v29, 0.0  ;;  %v1310_v34 = vmul.f32 %v648_v29, %v648_v29  ;;  %v650_v35 = vpop.f32.mrb[35].mxu0  ;;  %v778_v37 = vpop.f32.mrb[35].mxu1 }
 0x140   :  { %1141 = vst.msk [vmem:[%s2762_s2 + $0xc0] sm:$0xf] %vm1092_vm3, %v1721_v24  ;;  %v1389_v39 = vadd.f32 %v1388_v31, %v1387_v14  ;;  %v1192_v40 = vadd.f32 %v1191_v33, %v1190_v26  ;;  %v1722_v42 = vpack.c.bf16 %v2375_v30, %v2375_v30 }
 0x141   :  { %1110 = vst.msk [vmem:[%s2762_s2 + $0x44] sm:$0xf] %vm1092_vm3, %v1690_v32  ;;  %v1390_v43 = vsel %vm1157_vm4, %v1310_v34, 0.0 }
 0x142   :  { %v1391_v44 = vadd.f32 %v1390_v43, %v1389_v39  ;;  %1142 = vst.msk [vmem:[%s2762_s2 + $0xc4] sm:$0xf] %vm1092_vm3, %v1722_v42 }
 0x144   :  { %v653_v46 = vpop.f32.mrb[36].mxu0  ;;  %v2398_v47 = vpop.f32.mrb[36].mxu1 }
 0x145   :  { %v1691_v48 = vpack.c.bf16 %v653_v46, %v653_v46  ;;  %v1193_v49 = vsel %vm1157_vm4, %v653_v46, 0.0  ;;  %v1311_v50 = vmul.f32 %v653_v46, %v653_v46  ;;  %v655_v52 = vpop.f32.mrb[37].mxu0  ;;  %v1723_v53 = vpack.c.bf16 %v2398_v47, %v2398_v47  ;;  %v783_v55 = vpop.f32.mrb[37].mxu1 }
 0x146   :  { %v1194_v56 = vadd.f32 %v1193_v49, %v1192_v40  ;;  %v656_v57 = vpop.f32.mrb[38].mxu0  ;;  %v2403_v59 = vpop.f32.mrb[38].mxu1 }
 0x147   :  { %1111 = vst.msk [vmem:[%s2762_s2 + $0x48] sm:$0xf] %vm1092_vm3, %v1691_v48  ;;  %v1392_v60 = vsel %vm1157_vm4, %v1311_v50, 0.0  ;;  %v1692_v61 = vpack.c.bf16 %v656_v57, %v656_v57  ;;  %v1195_v62 = vsel %vm1157_vm4, %v656_v57, 0.0  ;;  %v1312_v63 = vmul.f32 %v656_v57, %v656_v57  ;;  %v658_v2 = vpop.f32.mrb[39].mxu0  ;;  %v786_v4 = vpop.f32.mrb[39].mxu1 }
 0x148   :  { %1143 = vst.msk [vmem:[%s2762_s2 + $0xc8] sm:$0xf] %vm1092_vm3, %v1723_v53  ;;  %v1393_v5 = vadd.f32 %v1392_v60, %v1391_v44  ;;  %v1196_v6 = vadd.f32 %v1195_v62, %v1194_v56  ;;  %v1724_v7 = vpack.c.bf16 %v2403_v59, %v2403_v59 }
 0x149   :  { %1112 = vst.msk [vmem:[%s2762_s2 + $0x4c] sm:$0xf] %vm1092_vm3, %v1692_v61  ;;  %v1394_v8 = vsel %vm1157_vm4, %v1312_v63, 0.0 }
 0x14a   :  { %v1395_v9 = vadd.f32 %v1394_v8, %v1393_v5  ;;  %1144 = vst.msk [vmem:[%s2762_s2 + $0xcc] sm:$0xf] %vm1092_vm3, %v1724_v7 }
 0x14c   :  { %v661_v10 = vpop.f32.mrb[40].mxu0  ;;  %v2426_v12 = vpop.f32.mrb[40].mxu1 }
 0x14d   :  { %v1693_v13 = vpack.c.bf16 %v661_v10, %v661_v10  ;;  %v1197_v14 = vsel %vm1157_vm4, %v661_v10, 0.0  ;;  %v1313_v15 = vmul.f32 %v661_v10, %v661_v10  ;;  %v663_v19 = vpop.f32.mrb[41].mxu0  ;;  %v1725_v20 = vpack.c.bf16 %v2426_v12, %v2426_v12  ;;  %v791_v21 = vpop.f32.mrb[41].mxu1 }
 0x14e   :  { %v1198_v22 = vadd.f32 %v1197_v14, %v1196_v6  ;;  %v664_v24 = vpop.f32.mrb[42].mxu0  ;;  %v2431_v25 = vpop.f32.mrb[42].mxu1 }
 0x14f   :  { %1113 = vst.msk [vmem:[%s2762_s2 + $0x50] sm:$0xf] %vm1092_vm3, %v1693_v13  ;;  %v1396_v26 = vsel %vm1157_vm4, %v1313_v15, 0.0  ;;  %v1694_v29 = vpack.c.bf16 %v664_v24, %v664_v24  ;;  %v1199_v31 = vsel %vm1157_vm4, %v664_v24, 0.0  ;;  %v1314_v32 = vmul.f32 %v664_v24, %v664_v24  ;;  %v666_v33 = vpop.f32.mrb[43].mxu0  ;;  %v794_v34 = vpop.f32.mrb[43].mxu1 }
 0x150   :  { %1145 = vst.msk [vmem:[%s2762_s2 + $0xd0] sm:$0xf] %vm1092_vm3, %v1725_v20  ;;  %v1397_v35 = vadd.f32 %v1396_v26, %v1395_v9  ;;  %v1200_v37 = vadd.f32 %v1199_v31, %v1198_v22  ;;  %v1726_v39 = vpack.c.bf16 %v2431_v25, %v2431_v25 }
 0x151   :  { %1114 = vst.msk [vmem:[%s2762_s2 + $0x54] sm:$0xf] %vm1092_vm3, %v1694_v29  ;;  %v1398_v40 = vsel %vm1157_vm4, %v1314_v32, 0.0 }
 0x152   :  { %v1399_v42 = vadd.f32 %v1398_v40, %v1397_v35  ;;  %1146 = vst.msk [vmem:[%s2762_s2 + $0xd4] sm:$0xf] %vm1092_vm3, %v1726_v39 }
 0x154   :  { %v669_v43 = vpop.f32.mrb[44].mxu0  ;;  %v2454_v44 = vpop.f32.mrb[44].mxu1 }
 0x155   :  { %v1695_v46 = vpack.c.bf16 %v669_v43, %v669_v43  ;;  %v1201_v48 = vsel %vm1157_vm4, %v669_v43, 0.0  ;;  %v1315_v49 = vmul.f32 %v669_v43, %v669_v43  ;;  %v671_v50 = vpop.f32.mrb[45].mxu0  ;;  %v1727_v52 = vpack.c.bf16 %v2454_v44, %v2454_v44  ;;  %v799_v53 = vpop.f32.mrb[45].mxu1 }
 0x156   :  { %v1202_v55 = vadd.f32 %v1201_v48, %v1200_v37  ;;  %v672_v56 = vpop.f32.mrb[46].mxu0  ;;  %v2459_v57 = vpop.f32.mrb[46].mxu1 }
 0x157   :  { %1115 = vst.msk [vmem:[%s2762_s2 + $0x58] sm:$0xf] %vm1092_vm3, %v1695_v46  ;;  %v1400_v60 = vsel %vm1157_vm4, %v1315_v49, 0.0  ;;  %v1696_v61 = vpack.c.bf16 %v672_v56, %v672_v56  ;;  %v1203_v62 = vsel %vm1157_vm4, %v672_v56, 0.0  ;;  %v1316_v63 = vmul.f32 %v672_v56, %v672_v56  ;;  %v674_v2 = vpop.f32.mrb[47].mxu0  ;;  %v802_v4 = vpop.f32.mrb[47].mxu1 }
 0x158   :  { %1147 = vst.msk [vmem:[%s2762_s2 + $0xd8] sm:$0xf] %vm1092_vm3, %v1727_v52  ;;  %v1401_v5 = vadd.f32 %v1400_v60, %v1399_v42  ;;  %v1204_v6 = vadd.f32 %v1203_v62, %v1202_v55  ;;  %v1728_v7 = vpack.c.bf16 %v2459_v57, %v2459_v57 }
 0x159   :  { %1116 = vst.msk [vmem:[%s2762_s2 + $0x5c] sm:$0xf] %vm1092_vm3, %v1696_v61  ;;  %v1402_v8 = vsel %vm1157_vm4, %v1316_v63, 0.0 }
 0x15a   :  { %v1403_v9 = vadd.f32 %v1402_v8, %v1401_v5  ;;  %1148 = vst.msk [vmem:[%s2762_s2 + $0xdc] sm:$0xf] %vm1092_vm3, %v1728_v7 }
 0x15c   :  { %v677_v10 = vpop.f32.mrb[48].mxu0  ;;  %v2482_v13 = vpop.f32.mrb[48].mxu1 }
 0x15d   :  { %v1697_v14 = vpack.c.bf16 %v677_v10, %v677_v10  ;;  %v1205_v15 = vsel %vm1157_vm4, %v677_v10, 0.0  ;;  %v1317_v19 = vmul.f32 %v677_v10, %v677_v10  ;;  %v679_v20 = vpop.f32.mrb[49].mxu0  ;;  %v1729_v21 = vpack.c.bf16 %v2482_v13, %v2482_v13  ;;  %v807_v22 = vpop.f32.mrb[49].mxu1 }
 0x15e   :  { %v1206_v24 = vadd.f32 %v1205_v15, %v1204_v6  ;;  %v680_v26 = vpop.f32.mrb[50].mxu0  ;;  %v2487_v29 = vpop.f32.mrb[50].mxu1 }
 0x15f   :  { %1117 = vst.msk [vmem:[%s2762_s2 + $0x60] sm:$0xf] %vm1092_vm3, %v1697_v14  ;;  %v1404_v31 = vsel %vm1157_vm4, %v1317_v19, 0.0  ;;  %v1698_v32 = vpack.c.bf16 %v680_v26, %v680_v26  ;;  %v1207_v33 = vsel %vm1157_vm4, %v680_v26, 0.0  ;;  %v1318_v34 = vmul.f32 %v680_v26, %v680_v26  ;;  %v682_v35 = vpop.f32.mrb[51].mxu0  ;;  %v810_v37 = vpop.f32.mrb[51].mxu1 }
 0x160   :  { %1149 = vst.msk [vmem:[%s2762_s2 + $0xe0] sm:$0xf] %vm1092_vm3, %v1729_v21  ;;  %v1405_v39 = vadd.f32 %v1404_v31, %v1403_v9  ;;  %v1208_v40 = vadd.f32 %v1207_v33, %v1206_v24  ;;  %v1730_v42 = vpack.c.bf16 %v2487_v29, %v2487_v29 }
 0x161   :  { %1118 = vst.msk [vmem:[%s2762_s2 + $0x64] sm:$0xf] %vm1092_vm3, %v1698_v32  ;;  %v1406_v43 = vsel %vm1157_vm4, %v1318_v34, 0.0 }
 0x162   :  { %v1407_v46 = vadd.f32 %v1406_v43, %v1405_v39  ;;  %1150 = vst.msk [vmem:[%s2762_s2 + $0xe4] sm:$0xf] %vm1092_vm3, %v1730_v42 }
 0x164   :  { %v685_v48 = vpop.f32.mrb[52].mxu0  ;;  %v2510_v49 = vpop.f32.mrb[52].mxu1 }
 0x165   :  { %v1699_v50 = vpack.c.bf16 %v685_v48, %v685_v48  ;;  %v1209_v52 = vsel %vm1157_vm4, %v685_v48, 0.0  ;;  %v1319_v53 = vmul.f32 %v685_v48, %v685_v48  ;;  %v687_v55 = vpop.f32.mrb[53].mxu0  ;;  %v1731_v56 = vpack.c.bf16 %v2510_v49, %v2510_v49  ;;  %v815_v60 = vpop.f32.mrb[53].mxu1 }
 0x166   :  { %v1210_v61 = vadd.f32 %v1209_v52, %v1208_v40  ;;  %v688_v62 = vpop.f32.mrb[54].mxu0  ;;  %v2515_v63 = vpop.f32.mrb[54].mxu1 }
 0x167   :  { %1119 = vst.msk [vmem:[%s2762_s2 + $0x68] sm:$0xf] %vm1092_vm3, %v1699_v50  ;;  %v1408_v2 = vsel %vm1157_vm4, %v1319_v53, 0.0  ;;  %v1700_v4 = vpack.c.bf16 %v688_v62, %v688_v62  ;;  %v1211_v5 = vsel %vm1157_vm4, %v688_v62, 0.0  ;;  %v1320_v6 = vmul.f32 %v688_v62, %v688_v62  ;;  %v690_v7 = vpop.f32.mrb[55].mxu0  ;;  %v818_v8 = vpop.f32.mrb[55].mxu1 }
 0x168   :  { %1151 = vst.msk [vmem:[%s2762_s2 + $0xe8] sm:$0xf] %vm1092_vm3, %v1731_v56  ;;  %v1409_v9 = vadd.f32 %v1408_v2, %v1407_v46  ;;  %v1212_v10 = vadd.f32 %v1211_v5, %v1210_v61  ;;  %v1732_v14 = vpack.c.bf16 %v2515_v63, %v2515_v63  ;;  %v1325_v8 = vmul.f32 %v2146_v16, %v2146_v16 }
 0x169   :  { %1120 = vst.msk [vmem:[%s2762_s2 + $0x6c] sm:$0xf] %vm1092_vm3, %v1700_v4  ;;  %v1410_v15 = vsel %vm1157_vm4, %v1320_v6, 0.0 }
 0x16a   :  { %v1411_v19 = vadd.f32 %v1410_v15, %v1409_v9  ;;  %1152 = vst.msk [vmem:[%s2762_s2 + $0xec] sm:$0xf] %vm1092_vm3, %v1732_v14 }
 0x16c   :  { %v693_v20 = vpop.f32.mrb[56].mxu0  ;;  %v2538_v21 = vpop.f32.mrb[56].mxu1 }
 0x16d   :  { %v1701_v22 = vpack.c.bf16 %v693_v20, %v693_v20  ;;  %v1213_v24 = vsel %vm1157_vm4, %v693_v20, 0.0  ;;  %v1321_v26 = vmul.f32 %v693_v20, %v693_v20  ;;  %v695_v31 = vpop.f32.mrb[57].mxu0  ;;  %v1733_v32 = vpack.c.bf16 %v2538_v21, %v2538_v21  ;;  %v823_v33 = vpop.f32.mrb[57].mxu1 }
 0x16e   :  { %v1214_v34 = vadd.f32 %v1213_v24, %v1212_v10  ;;  %v696_v35 = vpop.f32.mrb[58].mxu0  ;;  %v2543_v37 = vpop.f32.mrb[58].mxu1 }
 0x16f   :  { %1121 = vst.msk [vmem:[%s2762_s2 + $0x70] sm:$0xf] %vm1092_vm3, %v1701_v22  ;;  %v1412_v39 = vsel %vm1157_vm4, %v1321_v26, 0.0  ;;  %v1702_v40 = vpack.c.bf16 %v696_v35, %v696_v35  ;;  %v1215_v42 = vsel %vm1157_vm4, %v696_v35, 0.0  ;;  %v1322_v43 = vmul.f32 %v696_v35, %v696_v35  ;;  %v698_v46 = vpop.f32.mrb[59].mxu0  ;;  %v826_v48 = vpop.f32.mrb[59].mxu1 }
 0x170   :  { %1153 = vst.msk [vmem:[%s2762_s2 + $0xf0] sm:$0xf] %vm1092_vm3, %v1733_v32  ;;  %v1413_v50 = vadd.f32 %v1412_v39, %v1411_v19  ;;  %v1216_v52 = vadd.f32 %v1215_v42, %v1214_v34  ;;  %v1734_v53 = vpack.c.bf16 %v2543_v37, %v2543_v37  ;;  %v1221_v34 = vsel %vm1157_vm4, %v2146_v16, 0.0 }
 0x171   :  { %1122 = vst.msk [vmem:[%s2762_s2 + $0x74] sm:$0xf] %vm1092_vm3, %v1702_v40  ;;  %v1414_v55 = vsel %vm1157_vm4, %v1322_v43, 0.0  ;;  %v1326_v35 = vmul.f32 %v2150_v23, %v2150_v23  ;;  %v1420_v43 = vsel %vm1157_vm4, %v1325_v8, 0.0  ;;  %v1223_v16 = vsel %vm1157_vm4, %v2150_v23, 0.0 }
 0x172   :  { %v1415_v56 = vadd.f32 %v1414_v55, %v1413_v50  ;;  %1154 = vst.msk [vmem:[%s2762_s2 + $0xf4] sm:$0xf] %vm1092_vm3, %v1734_v53  ;;  %v1327_v46 = vmul.f32 %v2174_v36, %v2174_v36  ;;  %v1225_v53 = vsel %vm1157_vm4, %v2174_v36, 0.0  ;;  %v1328_v55 = vmul.f32 %v2179_v45, %v2179_v45 }
 0x173   :  { %v1227_v23 = vsel %vm1157_vm4, %v2179_v45, 0.0  ;;  %v1229_v36 = vsel %vm1157_vm4, %v2202_v58, 0.0  ;;  %v1231_v45 = vsel %vm1157_vm4, %v2207_v3, 0.0 }
 0x174   :  { %v701_v60 = vpop.f32.mrb[60].mxu0  ;;  %v2566_v61 = vpop.f32.mrb[60].mxu1 }
 0x175   :  { %v1703_v62 = vpack.c.bf16 %v701_v60, %v701_v60  ;;  %v1217_v2 = vsel %vm1157_vm4, %v701_v60, 0.0  ;;  %v1323_v4 = vmul.f32 %v701_v60, %v701_v60  ;;  %v703_v5 = vpop.f32.mrb[61].mxu0  ;;  %v1735_v6 = vpack.c.bf16 %v2566_v61, %v2566_v61  ;;  %v831_v7 = vpop.f32.mrb[61].mxu1 }
 0x176   :  { %v1218_v9 = vadd.f32 %v1217_v2, %v1216_v52  ;;  %v704_v10 = vpop.f32.mrb[62].mxu0  ;;  %v2573_v14 = vpop.f32.mrb[62].mxu1  ;;  %v1422_v52 = vsel %vm1157_vm4, %v1326_v35, 0.0  ;;  %v1329_v2 = vmul.f32 %v2202_v58, %v2202_v58  ;;  %v1330_v7 = vmul.f32 %v2207_v3, %v2207_v3 }
 0x177   :  { %1123 = vst.msk [vmem:[%s2762_s2 + $0x78] sm:$0xf] %vm1092_vm3, %v1703_v62  ;;  %v1416_v15 = vsel %vm1157_vm4, %v1323_v4, 0.0  ;;  %v1704_v19 = vpack.c.bf16 %v704_v10, %v704_v10  ;;  %v1219_v20 = vsel %vm1157_vm4, %v704_v10, 0.0  ;;  %v1324_v22 = vmul.f32 %v704_v10, %v704_v10  ;;  %v706_v24 = vpop.f32.mrb[63].mxu0  ;;  %v834_v26 = vpop.f32.mrb[63].mxu1 }
 0x178   :  { %1155 = vst.msk [vmem:[%s2762_s2 + $0xf8] sm:$0xf] %vm1092_vm3, %v1735_v6  ;;  %v1417_v31 = vadd.f32 %v1416_v15, %v1415_v56  ;;  %v1220_v32 = vadd.f32 %v1219_v20, %v1218_v9  ;;  %v1736_v33 = vpack.c.bf16 %v2573_v14, %v2573_v14  ;;  %v1424_v62 = vsel %vm1157_vm4, %v1327_v46, 0.0 }
 0x179   :  { %1124 = vst.msk [vmem:[%s2762_s2 + $0x7c] sm:$0xf] %vm1092_vm3, %v1704_v19  ;;  %v1418_v39 = vsel %vm1157_vm4, %v1324_v22, 0.0  ;;  %v1426_v6 = vsel %vm1157_vm4, %v1328_v55, 0.0  ;;  %v1428_v10 = vsel %vm1157_vm4, %v1329_v2, 0.0  ;;  %v1331_v15 = vmul.f32 %v2230_v17, %v2230_v17 }
 0x17a   :  { %v1222_v40 = vadd.f32 %v1221_v34, %v1220_v32  ;;  %v1419_v42 = vadd.f32 %v1418_v39, %v1417_v31  ;;  %1156 = vst.msk [vmem:[%s2762_s2 + $0xfc] sm:$0xf] %vm1092_vm3, %v1736_v33  ;;  %v1430_v22 = vsel %vm1157_vm4, %v1330_v7, 0.0  ;;  %v1233_v58 = vsel %vm1157_vm4, %v2230_v17, 0.0 }
 0x17b   :  { %v1332_v24 = vmul.f32 %v2235_v27, %v2235_v27  ;;  %v1432_v32 = vsel %vm1157_vm4, %v1331_v15, 0.0  ;;  %v1235_v3 = vsel %vm1157_vm4, %v2235_v27, 0.0  ;;  %v1333_v33 = vmul.f32 %v2258_v41, %v2258_v41 }
 0x17c   :  { %v1224_v48 = vadd.f32 %v1223_v16, %v1222_v40  ;;  %v1421_v50 = vadd.f32 %v1420_v43, %v1419_v42  ;;  %v1237_v17 = vsel %vm1157_vm4, %v2258_v41, 0.0  ;;  %v1334_v40 = vmul.f32 %v2263_v51, %v2263_v51 }
 0x17d   :  { %v1434_v39 = vsel %vm1157_vm4, %v1332_v24, 0.0  ;;  %v1436_v16 = vsel %vm1157_vm4, %v1333_v33, 0.0  ;;  %v1239_v27 = vsel %vm1157_vm4, %v2263_v51, 0.0  ;;  %v1335_v46 = vmul.f32 %v2286_v1, %v2286_v1 }
 0x17e   :  { %v1226_v56 = vadd.f32 %v1225_v53, %v1224_v48  ;;  %v1423_v60 = vadd.f32 %v1422_v52, %v1421_v50  ;;  %v1438_v52 = vsel %vm1157_vm4, %v1334_v40, 0.0  ;;  %v1241_v41 = vsel %vm1157_vm4, %v2286_v1, 0.0 }
 0x17f   :  { %v1336_v53 = vmul.f32 %v2291_v11, %v2291_v11  ;;  %v1243_v51 = vsel %vm1157_vm4, %v2291_v11, 0.0  ;;  %v1245_v1 = vsel %vm1157_vm4, %v2314_v28, 0.0  ;;  %v1247_v11 = vsel %vm1157_vm4, %v2319_v38, 0.0 }
 0x180   :  { %v1228_v4 = vadd.f32 %v1227_v23, %v1226_v56  ;;  %v1425_v5 = vadd.f32 %v1424_v62, %v1423_v60  ;;  %v1440_v60 = vsel %vm1157_vm4, %v1335_v46, 0.0  ;;  %v1337_v62 = vmul.f32 %v2314_v28, %v2314_v28 }
 0x181   :  { %v1249_v28 = vsel %vm1157_vm4, %v2342_v54, 0.0  ;;  %v1340_v15 = vmul.f32 %v2347_v0, %v2347_v0  ;;  %v1345_v46 = vmul.f32 %v2426_v12, %v2426_v12 }
 0x182   :  { %v1230_v8 = vadd.f32 %v1229_v36, %v1228_v4  ;;  %v1427_v9 = vadd.f32 %v1426_v6, %v1425_v5  ;;  %v1442_v4 = vsel %vm1157_vm4, %v1336_v53, 0.0  ;;  %v1338_v5 = vmul.f32 %v2319_v38, %v2319_v38 }
 0x183   :  { %v1444_v7 = vsel %vm1157_vm4, %v1337_v62, 0.0  ;;  %v1251_v38 = vsel %vm1157_vm4, %v2347_v0, 0.0  ;;  %v1255_v0 = vsel %vm1157_vm4, %v2375_v30, 0.0 }
 0x184   :  { %v1232_v19 = vadd.f32 %v1231_v45, %v1230_v8  ;;  %v1429_v20 = vadd.f32 %v1428_v10, %v1427_v9  ;;  %v1339_v8 = vmul.f32 %v2342_v54, %v2342_v54  ;;  %v1446_v45 = vsel %vm1157_vm4, %v1338_v5, 0.0 }
 0x185   :  { %v1253_v54 = vsel %vm1157_vm4, %v2370_v18, 0.0 }
 0x186   :  { %v1234_v26 = vadd.f32 %v1233_v58, %v1232_v19  ;;  %v1431_v31 = vadd.f32 %v1430_v22, %v1429_v20  ;;  %v1448_v22 = vsel %vm1157_vm4, %v1339_v8, 0.0  ;;  %v1341_v58 = vmul.f32 %v2370_v18, %v2370_v18 }
 0x187   :  { %v1257_v18 = vsel %vm1157_vm4, %v2398_v47, 0.0  ;;  %v1350_v8 = vmul.f32 %v2487_v29, %v2487_v29 }
 0x188   :  { %v1236_v34 = vadd.f32 %v1235_v3, %v1234_v26  ;;  %v1433_v35 = vadd.f32 %v1432_v32, %v1431_v31  ;;  %v1450_v31 = vsel %vm1157_vm4, %v1340_v15, 0.0  ;;  %v1342_v32 = vmul.f32 %v2375_v30, %v2375_v30 }
 0x189   :  { %v1259_v30 = vsel %vm1157_vm4, %v2403_v59, 0.0 }
 0x18a   :  { %v1435_v42 = vadd.f32 %v1434_v39, %v1433_v35  ;;  %v1238_v43 = vadd.f32 %v1237_v17, %v1236_v34  ;;  %v1452_v34 = vsel %vm1157_vm4, %v1341_v58, 0.0  ;;  %v1343_v35 = vmul.f32 %v2398_v47, %v2398_v47 }
 0x18b   :  { %v1454_v40 = vsel %vm1157_vm4, %v1342_v32, 0.0  ;;  %v1261_v47 = vsel %vm1157_vm4, %v2426_v12, 0.0  ;;  %v1265_v12 = vsel %vm1157_vm4, %v2454_v44, 0.0 }
 0x18c   :  { %v1240_v48 = vadd.f32 %v1239_v27, %v1238_v43  ;;  %v1437_v50 = vadd.f32 %v1436_v16, %v1435_v42  ;;  %v1344_v42 = vmul.f32 %v2403_v59, %v2403_v59  ;;  %v1456_v27 = vsel %vm1157_vm4, %v1343_v35, 0.0 }
 0x18d   :  { %v1263_v59 = vsel %vm1157_vm4, %v2431_v25, 0.0  ;;  %v1279_v35 = vsel %vm1157_vm4, %v2543_v37, 0.0 }
 0x18e   :  { %v1242_v55 = vadd.f32 %v1241_v41, %v1240_v48  ;;  %v1439_v56 = vadd.f32 %v1438_v52, %v1437_v50  ;;  %v1458_v52 = vsel %vm1157_vm4, %v1344_v42, 0.0  ;;  %v1346_v41 = vmul.f32 %v2431_v25, %v2431_v25 }
 0x18f   :  { %v1267_v25 = vsel %vm1157_vm4, %v2459_v57, 0.0  ;;  %v1356_v42 = vmul.f32 %v2573_v14, %v2573_v14 }
 0x190   :  { %v1244_v23 = vadd.f32 %v1243_v51, %v1242_v55  ;;  %v1441_v2 = vadd.f32 %v1440_v60, %v1439_v56  ;;  %v1460_v56 = vsel %vm1157_vm4, %v1345_v46, 0.0  ;;  %v1347_v60 = vmul.f32 %v2454_v44, %v2454_v44 }
 0x191   :  { %v1269_v44 = vsel %vm1157_vm4, %v2482_v13, 0.0 }
 0x192   :  { %v1246_v6 = vadd.f32 %v1245_v1, %v1244_v23  ;;  %v1443_v36 = vadd.f32 %v1442_v4, %v1441_v2  ;;  %v1462_v23 = vsel %vm1157_vm4, %v1346_v41, 0.0  ;;  %v1348_v2 = vmul.f32 %v2459_v57, %v2459_v57 }
 0x193   :  { %v1464_v5 = vsel %vm1157_vm4, %v1347_v60, 0.0  ;;  %v1271_v57 = vsel %vm1157_vm4, %v2487_v29, 0.0  ;;  %v1275_v29 = vsel %vm1157_vm4, %v2515_v63, 0.0 }
 0x194   :  { %v1248_v9 = vadd.f32 %v1247_v11, %v1246_v6  ;;  %v1445_v10 = vadd.f32 %v1444_v7, %v1443_v36  ;;  %v1349_v6 = vmul.f32 %v2482_v13, %v2482_v13  ;;  %v1466_v11 = vsel %vm1157_vm4, %v1348_v2, 0.0 }
 0x195   :  { %v1273_v13 = vsel %vm1157_vm4, %v2510_v49, 0.0 }
 0x196   :  { %v1250_v19 = vadd.f32 %v1249_v28, %v1248_v9  ;;  %v1447_v20 = vadd.f32 %v1446_v45, %v1445_v10  ;;  %v1468_v45 = vsel %vm1157_vm4, %v1349_v6, 0.0  ;;  %v1351_v28 = vmul.f32 %v2510_v49, %v2510_v49 }
 0x197   :  { %v1277_v49 = vsel %vm1157_vm4, %v2538_v21, 0.0 }
 0x198   :  { %v1252_v24 = vadd.f32 %v1251_v38, %v1250_v19  ;;  %v1449_v26 = vadd.f32 %v1448_v22, %v1447_v20  ;;  %v1470_v20 = vsel %vm1157_vm4, %v1350_v8, 0.0  ;;  %v1352_v22 = vmul.f32 %v2515_v63, %v2515_v63 }
 0x19a   :  { %v1254_v3 = vadd.f32 %v1253_v54, %v1252_v24  ;;  %v1451_v33 = vadd.f32 %v1450_v31, %v1449_v26  ;;  %v1472_v24 = vsel %vm1157_vm4, %v1351_v28, 0.0  ;;  %v1353_v26 = vmul.f32 %v2538_v21, %v2538_v21 }
 0x19b   :  { %v1474_v32 = vsel %vm1157_vm4, %v1352_v22, 0.0 }
 0x19c   :  { %v1453_v39 = vadd.f32 %v1452_v34, %v1451_v33  ;;  %v1256_v17 = vadd.f32 %v1255_v0, %v1254_v3  ;;  %v1354_v3 = vmul.f32 %v2543_v37, %v2543_v37  ;;  %v1355_v33 = vmul.f32 %v2566_v61, %v2566_v61 }
 0x19d   :  { %v1476_v63 = vsel %vm1157_vm4, %v1353_v26, 0.0  ;;  %v1482_v37 = vsel %vm1157_vm4, %v1356_v42, 0.0 }
 0x19e   :  { %v1455_v43 = vadd.f32 %v1454_v40, %v1453_v39  ;;  %v1258_v16 = vadd.f32 %v1257_v18, %v1256_v17  ;;  %v1281_v39 = vsel %vm1157_vm4, %v2566_v61, 0.0  ;;  %v1478_v21 = vsel %vm1157_vm4, %v1354_v3, 0.0 }
 0x19f   :  { %v1480_v18 = vsel %vm1157_vm4, %v1355_v33, 0.0 }
 0x1a0   :  { %v1457_v48 = vadd.f32 %v1456_v27, %v1455_v43  ;;  %v1260_v50 = vadd.f32 %v1259_v30, %v1258_v16  ;;  %v1283_v27 = vsel %vm1157_vm4, %v2573_v14, 0.0 }
 0x1a2   :  { %v1459_v53 = vadd.f32 %v1458_v52, %v1457_v48  ;;  %v1262_v55 = vadd.f32 %v1261_v47, %v1260_v50 }
 0x1a4   :  { %v1461_v51 = vadd.f32 %v1460_v56, %v1459_v53  ;;  %v1264_v62 = vadd.f32 %v1263_v59, %v1262_v55 }
 0x1a6   :  { %v1463_v4 = vadd.f32 %v1462_v23, %v1461_v51  ;;  %v1266_v1 = vadd.f32 %v1265_v12, %v1264_v62 }
 0x1a8   :  { %v1465_v36 = vadd.f32 %v1464_v5, %v1463_v4  ;;  %v1268_v7 = vadd.f32 %v1267_v25, %v1266_v1 }
 0x1aa   :  { %v1467_v9 = vadd.f32 %v1466_v11, %v1465_v36  ;;  %v1270_v10 = vadd.f32 %v1269_v44, %v1268_v7 }
 0x1ac   :  { %v1469_v15 = vadd.f32 %v1468_v45, %v1467_v9  ;;  %v1272_v19 = vadd.f32 %v1271_v57, %v1270_v10 }
 0x1ae   :  { %v1471_v38 = vadd.f32 %v1470_v20, %v1469_v15  ;;  %v1274_v58 = vadd.f32 %v1273_v13, %v1272_v19 }
 0x1b0   :  { %v1473_v31 = vadd.f32 %v1472_v24, %v1471_v38  ;;  %v1276_v54 = vadd.f32 %v1275_v29, %v1274_v58 }
 0x1b2   :  { %v1475_v34 = vadd.f32 %v1474_v32, %v1473_v31  ;;  %v1278_v0 = vadd.f32 %v1277_v49, %v1276_v54 }
 0x1b4   :  { %v1477_v17 = vadd.f32 %v1476_v63, %v1475_v34  ;;  %v1280_v40 = vadd.f32 %v1279_v35, %v1278_v0 }
 0x1b6   :  { %v1479_v43 = vadd.f32 %v1478_v21, %v1477_v17  ;;  %v1282_v16 = vadd.f32 %v1281_v39, %v1280_v40 }
 0x1b8   :  { %v1481_v30 = vadd.f32 %v1480_v18, %v1479_v43  ;;  %v1284_v46 = vadd.f32 %v1283_v27, %v1282_v16 }
 0x1ba   :  { %v1285_v48 = vrot.slane %v1284_v46, 4  ;;  %v1483_v61 = vadd.f32 %v1482_v37, %v1481_v30 }
 0x1bc   :  { %v1286_v50 = vadd.f32 %v1285_v48, %v1284_v46  ;;  %v1484_v52 = vrot.slane %v1483_v61, 4 }
 0x1be   :  { %v1287_v47 = vrot.slane %v1286_v50, 2  ;;  %v1485_v41 = vadd.f32 %v1484_v52, %v1483_v61 }
 0x1c0   :  { %v1288_v53 = vadd.f32 %v1287_v47, %v1286_v50  ;;  %v1486_v55 = vrot.slane %v1485_v41, 2 }
 0x1c2   :  { %v1289_v56 = vrot.slane %v1288_v53, 1  ;;  %v1487_v59 = vadd.f32 %v1486_v55, %v1485_v41 }
 0x1c4   :  { %v1290_v60 = vadd.f32 %v1289_v56, %v1288_v53  ;;  %v1488_v51 = vrot.slane %v1487_v59, 1 }
 0x1c6   :  { %1292 = vst.msk [vmem:[%s2763_s3] sm:$0x1] %vm1291_vm5, %v1290_v60  ;;  %v1489_v14 = vadd.f32 %v1488_v51, %v1487_v59 }
 0x1c8   :  { %1490 = vst.msk [vmem:[%s2764_s4] sm:$0x1] %vm1291_vm5, %v1489_v14 }

// kernel: _lambda_.21
= control target key start
LH: loop header
LB: loop body
LE: loop exit
PB: predicated region body
PF: predicated region fallthrough
CT: control target
= control target key end

     0   :  { %vm107_vm0 = vcmask 588800   ;;  %vm132_vm1 = vcmask 1043456   ;;  %vm297_vm2 = vcmask 125952   ;;  %vm314_vm3 = vcmask 130048   ;;  %s753_s1 = inlined_call_operand.vmem [shape: bf16[72,16], index: 1, kind: input, shape index: {}]   ;;  %s754_s0 = inlined_call_operand.vmem [shape: bf16[128,72], index: 0, kind: input, shape index: {}]   ;;  %s755_s2 = inlined_call_operand.vmem [shape: bf16[128,16], index: 2, kind: output, shape index: {0}]   ;;  %s756_s3 = inlined_call_operand.vmem [shape: f32[1,1,16], index: 3, kind: output, shape index: {1}]   ;;  %s757_s4 = inlined_call_operand.vmem [shape: f32[1,1,16], index: 4, kind: output, shape index: {2}]  }
   0x1   :  { %v524_v0 = vld [vmem:[%s753_s1] sm:$0xff]   ;;  %v525_v1 = vld [vmem:[%s753_s1 + $0x8] sm:$0xff]   ;;  %v526_v2 = vld [vmem:[%s753_s1 + $0x10] sm:$0xff]   ;;  %vm352_vm4 = vcmask 122880  }
   0x2   :  { %486 = vmatprep.subr.bf16.mxu0 %v524_v0  ;;  %512 = vmatprep.subr.bf16.mxu1 %v524_v0  ;;  %v529_v3 = vld [vmem:[%s754_s0] sm:$0xff]   ;;  %v527_v4 = vld [vmem:[%s753_s1 + $0x18] sm:$0xff]   ;;  %v530_v8 = vld [vmem:[%s754_s0 + $0x8] sm:$0xff]  }
   0x3   :  { %487 = vmatpush3.bf16.msra.mxu0 %v524_v0  ;;  %517 = vmatpush3.bf16.msra.mxu1 %v524_v0  ;;  %v533_v5 = vld [vmem:[%s754_s0 + $0x20] sm:$0xff]   ;;  %v534_v9 = vld [vmem:[%s754_s0 + $0x28] sm:$0xff]   ;;  %v531_v10 = vld [vmem:[%s754_s0 + $0x10] sm:$0xff]  }
   0x4   :  { %488 = vmatprep.subr.bf16.mxu0 %v525_v1  ;;  %513 = vmatprep.subr.bf16.mxu1 %v525_v1  ;;  %v528_v6 = vld [vmem:[%s753_s1 + $0x20] ss:$0 sps:$4 sm:$0xff]   ;;  %v535_v11 = vld [vmem:[%s754_s0 + $0x30] sm:$0xff]   ;;  %v532_v12 = vld [vmem:[%s754_s0 + $0x18] sm:$0xff]  }
   0x5   :  { %496 = vmatprep.mubr.msk.bf16.mxu0 %vm107_vm0, %v529_v3  ;;  %504 = vmatprep.mubr.msk.bf16.mxu1 %vm107_vm0, %v533_v5  ;;  %v134_v7 = vsel %vm132_vm1, %v528_v6, 0  ;;  %v536_v13 = vld [vmem:[%s754_s0 + $0x38] sm:$0xff]  }
   0x7   :  { %489 = vmatpush3.bf16.msra.mxu0 %v525_v1  ;;  %518 = vmatpush3.bf16.msra.mxu1 %v525_v1 }
   0x8   :  { %490 = vmatprep.subr.bf16.mxu0 %v526_v2  ;;  %514 = vmatprep.subr.bf16.mxu1 %v526_v2 }
   0xb   :  { %491 = vmatpush3.bf16.msra.mxu0 %v526_v2  ;;  %519 = vmatpush3.bf16.msra.mxu1 %v526_v2 }
   0xc   :  { %492 = vmatprep.subr.bf16.mxu0 %v527_v4  ;;  %515 = vmatprep.subr.bf16.mxu1 %v527_v4 }
   0xf   :  { %493 = vmatpush3.bf16.msra.mxu0 %v527_v4  ;;  %520 = vmatpush3.bf16.msra.mxu1 %v527_v4 }
  0x10   :  { %522 = vmatprep.subr.msk.bf16.mxu0 %vm132_vm1, %v528_v6  ;;  %523 = vmatprep.subr.msk.bf16.mxu1 %vm132_vm1, %v528_v6 }
  0x13   :  { %495 = vmatpush3.bf16.msra.mxu0 %v134_v7  ;;  %521 = vmatpush3.bf16.msra.mxu1 %v134_v7 }
  0x16   :  { %497 = vmatmul.mubr.msk.bf16.vlgmr.msra.gmra.mrb[0].mxu0 %vm107_vm0, %v530_v8  ;;  %505 = vmatmul.mubr.msk.bf16.vlgmr.msra.gmra.mrb[0].mxu1 %vm107_vm0, %v534_v9 }
  0x17   :  { %500 = vmatprep.mubr.msk.bf16.mxu0 %vm107_vm0, %v531_v10  ;;  %508 = vmatprep.mubr.msk.bf16.mxu1 %vm107_vm0, %v535_v11 }
  0x1e   :  { %501 = vmatmul.mubr.msk.bf16.gmra.mrb[4].mxu0 %vm107_vm0, %v532_v12  ;;  %509 = vmatmul.mubr.msk.bf16.gmra.mrb[4].mxu1 %vm107_vm0, %v536_v13 }
  0xe9   :  { %v498_v14 = vpop.f32.mrb[0].mxu0  ;;  %v609_v15 = vpop.f32.mrb[0].mxu1 }
  0xea   :  { %v459_v16 = vpack.c.bf16 %v498_v14, %v498_v14  ;;  %v170_v17 = vpop.f32.mrb[1].mxu0  ;;  %v467_v18 = vpack.c.bf16 %v609_v15, %v609_v15  ;;  %v613_v19 = vpop.f32.mrb[1].mxu1  ;;  %v356_v24 = vmul.f32 %v498_v14, %v498_v14  ;;  %v318_v35 = vsel %vm314_vm3, %v498_v14, 0.0 }
  0xeb   :  { %v457_v20 = vpack.c.bf16 %v170_v17, %v170_v17  ;;  %v354_v21 = vmul.f32 %v170_v17, %v170_v17  ;;  %v499_v22 = vpop.f32.mrb[2].mxu0  ;;  %v615_v23 = vpop.f32.mrb[2].mxu1  ;;  %v315_v28 = vsel %vm314_vm3, %v170_v17, 0.0  ;;  %v465_v34 = vpack.c.bf16 %v613_v19, %v613_v19 }
  0xec   :  { %300 = vst.msk [vmem:[%s755_s2 + $0x8] sm:$0xf] %vm297_vm2, %v459_v16  ;;  %v460_v25 = vpack.c.bf16 %v499_v22, %v499_v22  ;;  %v173_v26 = vpop.f32.mrb[3].mxu0  ;;  %308 = vst.msk [vmem:[%s755_s2 + $0x28] sm:$0xf] %vm297_vm2, %v467_v18  ;;  %v625_v27 = vpop.f32.mrb[3].mxu1  ;;  %v357_v32 = vmul.f32 %v499_v22, %v499_v22  ;;  %v468_v38 = vpack.c.bf16 %v615_v23, %v615_v23 }
  0xed   :  { %298 = vst.msk [vmem:[%s755_s2] sm:$0xf] %vm297_vm2, %v457_v20  ;;  %v458_v29 = vpack.c.bf16 %v173_v26, %v173_v26  ;;  %v316_v30 = vsel %vm314_vm3, %v173_v26, 0.0  ;;  %v355_v31 = vmul.f32 %v173_v26, %v173_v26  ;;  %v370_v36 = vsel %vm314_vm3, %v354_v21, 0.0  ;;  %306 = vst.msk [vmem:[%s755_s2 + $0x20] sm:$0xf] %vm297_vm2, %v465_v34 }
  0xee   :  { %301 = vst.msk [vmem:[%s755_s2 + $0xc] sm:$0xf] %vm297_vm2, %v460_v25  ;;  %v317_v33 = vadd.f32 %v316_v30, %v315_v28  ;;  %v373_v41 = vsel %vm314_vm3, %v356_v24, 0.0  ;;  %309 = vst.msk [vmem:[%s755_s2 + $0x2c] sm:$0xf] %vm297_vm2, %v468_v38  ;;  %v466_v43 = vpack.c.bf16 %v625_v27, %v625_v27  ;;  %v320_v45 = vsel %vm314_vm3, %v499_v22, 0.0 }
  0xef   :  { %299 = vst.msk [vmem:[%s755_s2 + $0x4] sm:$0xf] %vm297_vm2, %v458_v29  ;;  %v371_v37 = vsel %vm314_vm3, %v355_v31, 0.0  ;;  %v375_v46 = vsel %vm314_vm3, %v357_v32, 0.0  ;;  %v362_v5 = vmul.f32 %v613_v19, %v613_v19  ;;  %v330_v16 = vsel %vm314_vm3, %v613_v19, 0.0 }
  0xf0   :  { %v319_v39 = vadd.f32 %v318_v35, %v317_v33  ;;  %v372_v40 = vadd.f32 %v371_v37, %v370_v36  ;;  %307 = vst.msk [vmem:[%s755_s2 + $0x24] sm:$0xf] %vm297_vm2, %v466_v43  ;;  %v363_v25 = vmul.f32 %v625_v27, %v625_v27  ;;  %v364_v28 = vmul.f32 %v609_v15, %v609_v15 }
  0xf1   :  { %v502_v42 = vpop.f32.mrb[4].mxu0  ;;  %v659_v44 = vpop.f32.mrb[4].mxu1  ;;  %v385_v24 = vsel %vm314_vm3, %v362_v5, 0.0  ;;  %v332_v29 = vsel %vm314_vm3, %v625_v27, 0.0  ;;  %v334_v32 = vsel %vm314_vm3, %v609_v15, 0.0  ;;  %v365_v33 = vmul.f32 %v615_v23, %v615_v23 }
  0xf2   :  { %v374_v47 = vadd.f32 %v373_v41, %v372_v40  ;;  %v463_v48 = vpack.c.bf16 %v502_v42, %v502_v42  ;;  %v186_v49 = vpop.f32.mrb[5].mxu0  ;;  %v218_v50 = vpop.f32.mrb[5].mxu1  ;;  %v321_v52 = vadd.f32 %v320_v45, %v319_v39  ;;  %v360_v0 = vmul.f32 %v502_v42, %v502_v42 }
  0xf3   :  { %v461_v51 = vpack.c.bf16 %v186_v49, %v186_v49  ;;  %v322_v53 = vsel %vm314_vm3, %v186_v49, 0.0  ;;  %v358_v54 = vmul.f32 %v186_v49, %v186_v49  ;;  %v503_v55 = vpop.f32.mrb[6].mxu0  ;;  %v668_v56 = vpop.f32.mrb[6].mxu1  ;;  %v471_v6 = vpack.c.bf16 %v659_v44, %v659_v44 }
  0xf4   :  { %304 = vst.msk [vmem:[%s755_s2 + $0x18] sm:$0xf] %vm297_vm2, %v463_v48  ;;  %v376_v57 = vadd.f32 %v375_v46, %v374_v47  ;;  %v464_v58 = vpack.c.bf16 %v503_v55, %v503_v55  ;;  %v189_v59 = vpop.f32.mrb[7].mxu0  ;;  %v221_v60 = vpop.f32.mrb[7].mxu1  ;;  %v323_v61 = vadd.f32 %v322_v53, %v321_v52  ;;  %v326_v7 = vsel %vm314_vm3, %v502_v42, 0.0 }
  0xf5   :  { %302 = vst.msk [vmem:[%s755_s2 + $0x10] sm:$0xf] %vm297_vm2, %v461_v51  ;;  %v377_v62 = vsel %vm314_vm3, %v358_v54, 0.0  ;;  %v462_v63 = vpack.c.bf16 %v189_v59, %v189_v59  ;;  %v324_v2 = vsel %vm314_vm3, %v189_v59, 0.0  ;;  %v359_v3 = vmul.f32 %v189_v59, %v189_v59  ;;  %312 = vst.msk [vmem:[%s755_s2 + $0x38] sm:$0xf] %vm297_vm2, %v471_v6 }
  0xf6   :  { %v378_v1 = vadd.f32 %v377_v62, %v376_v57  ;;  %305 = vst.msk [vmem:[%s755_s2 + $0x1c] sm:$0xf] %vm297_vm2, %v464_v58  ;;  %v325_v4 = vadd.f32 %v324_v2, %v323_v61  ;;  %v361_v8 = vmul.f32 %v503_v55, %v503_v55  ;;  %v469_v10 = vpack.c.bf16 %v218_v50, %v218_v50 }
  0xf7   :  { %303 = vst.msk [vmem:[%s755_s2 + $0x14] sm:$0xf] %vm297_vm2, %v462_v63  ;;  %v379_v9 = vsel %vm314_vm3, %v359_v3, 0.0  ;;  %v381_v13 = vsel %vm314_vm3, %v360_v0, 0.0  ;;  %v328_v14 = vsel %vm314_vm3, %v503_v55, 0.0  ;;  %v472_v17 = vpack.c.bf16 %v668_v56, %v668_v56 }
  0xf8   :  { %v327_v11 = vadd.f32 %v326_v7, %v325_v4  ;;  %v380_v12 = vadd.f32 %v379_v9, %v378_v1  ;;  %310 = vst.msk [vmem:[%s755_s2 + $0x30] sm:$0xf] %vm297_vm2, %v469_v10  ;;  %v470_v21 = vpack.c.bf16 %v221_v60, %v221_v60  ;;  %v383_v22 = vsel %vm314_vm3, %v361_v8, 0.0 }
  0xf9   :  { %313 = vst.msk [vmem:[%s755_s2 + $0x3c] sm:$0xf] %vm297_vm2, %v472_v17  ;;  %v387_v34 = vsel %vm314_vm3, %v363_v25, 0.0  ;;  %v366_v35 = vmul.f32 %v218_v50, %v218_v50  ;;  %v389_v38 = vsel %vm314_vm3, %v364_v28, 0.0  ;;  %v336_v39 = vsel %vm314_vm3, %v615_v23, 0.0 }
  0xfa   :  { %v382_v18 = vadd.f32 %v381_v13, %v380_v12  ;;  %v329_v20 = vadd.f32 %v328_v14, %v327_v11  ;;  %311 = vst.msk [vmem:[%s755_s2 + $0x34] sm:$0xf] %vm297_vm2, %v470_v21  ;;  %v338_v27 = vsel %vm314_vm3, %v218_v50, 0.0  ;;  %v391_v42 = vsel %vm314_vm3, %v365_v33, 0.0 }
  0xfb   :  { %v393_v15 = vsel %vm314_vm3, %v366_v35, 0.0  ;;  %v367_v43 = vmul.f32 %v221_v60, %v221_v60  ;;  %v368_v47 = vmul.f32 %v659_v44, %v659_v44  ;;  %v340_v48 = vsel %vm314_vm3, %v221_v60, 0.0 }
  0xfc   :  { %v331_v19 = vadd.f32 %v330_v16, %v329_v20  ;;  %v384_v26 = vadd.f32 %v383_v22, %v382_v18  ;;  %v342_v23 = vsel %vm314_vm3, %v659_v44, 0.0  ;;  %v369_v50 = vmul.f32 %v668_v56, %v668_v56 }
  0xfd   :  { %v395_v52 = vsel %vm314_vm3, %v367_v43, 0.0  ;;  %v397_v55 = vsel %vm314_vm3, %v368_v47, 0.0  ;;  %v344_v57 = vsel %vm314_vm3, %v668_v56, 0.0 }
  0xfe   :  { %v386_v30 = vadd.f32 %v385_v24, %v384_v26  ;;  %v333_v31 = vadd.f32 %v332_v29, %v331_v19  ;;  %v399_v60 = vsel %vm314_vm3, %v369_v50, 0.0 }
 0x100   :  { %v335_v36 = vadd.f32 %v334_v32, %v333_v31  ;;  %v388_v37 = vadd.f32 %v387_v34, %v386_v30 }
 0x102   :  { %v390_v40 = vadd.f32 %v389_v38, %v388_v37  ;;  %v337_v41 = vadd.f32 %v336_v39, %v335_v36 }
 0x104   :  { %v339_v45 = vadd.f32 %v338_v27, %v337_v41  ;;  %v392_v46 = vadd.f32 %v391_v42, %v390_v40 }
 0x106   :  { %v394_v49 = vadd.f32 %v393_v15, %v392_v46  ;;  %v341_v51 = vadd.f32 %v340_v48, %v339_v45 }
 0x108   :  { %v343_v53 = vadd.f32 %v342_v23, %v341_v51  ;;  %v396_v54 = vadd.f32 %v395_v52, %v394_v49 }
 0x10a   :  { %v345_v58 = vadd.f32 %v344_v57, %v343_v53  ;;  %v398_v59 = vadd.f32 %v397_v55, %v396_v54 }
 0x10c   :  { %v346_v61 = vrot.slane %v345_v58, 4  ;;  %v400_v62 = vadd.f32 %v399_v60, %v398_v59 }
 0x10e   :  { %v347_v63 = vadd.f32 %v346_v61, %v345_v58  ;;  %v401_v44 = vrot.slane %v400_v62, 4 }
 0x110   :  { %v348_v0 = vrot.slane %v347_v63, 2  ;;  %v402_v1 = vadd.f32 %v401_v44, %v400_v62 }
 0x112   :  { %v349_v2 = vadd.f32 %v348_v0, %v347_v63  ;;  %v403_v3 = vrot.slane %v402_v1, 2 }
 0x114   :  { %v350_v4 = vrot.slane %v349_v2, 1  ;;  %v404_v5 = vadd.f32 %v403_v3, %v402_v1 }
 0x116   :  { %v351_v6 = vadd.f32 %v350_v4, %v349_v2  ;;  %v405_v7 = vrot.slane %v404_v5, 1 }
 0x118   :  { %353 = vst.msk [vmem:[%s756_s3] sm:$0x1] %vm352_vm4, %v351_v6  ;;  %v406_v56 = vadd.f32 %v405_v7, %v404_v5 }
 0x11a   :  { %407 = vst.msk [vmem:[%s757_s4] sm:$0x1] %vm352_vm4, %v406_v56 }

// kernel: _lambda_.22
= control target key start
LH: loop header
LB: loop body
LE: loop exit
PB: predicated region body
PF: predicated region fallthrough
CT: control target
= control target key end

     0   :  { %v19_v0 = vlaneseq  ;;  %s94_s0 = inlined_call_operand.vmem [shape: bf16[8,256], index: 0, kind: input, shape index: {}]   ;;  %s95_s1 = inlined_call_operand.vmem [shape: f32[1,256], index: 1, kind: input, shape index: {}]   ;;  %s96_s2 = inlined_call_operand.vmem [shape: f32[1,256], index: 2, kind: input, shape index: {}]   ;;  %s97_s3 = inlined_call_operand.vmem [shape: bf16[8,256], index: 3, kind: output, shape index: {}]  }
   0x1   :  { %v14_v1 = vld [vmem:[%s94_s0] sm:$0xff] }
   0x2   :  { %v20_v2 = vshrl.u32 %v19_v0, 7  ;;  %v17_v3 = vld [vmem:[%s95_s1] sm:$0x3]  ;;  %v15_v5 = vunpack.c.l.bf16 %v14_v1  ;;  %v16_v6 = vunpack.c.h.bf16 %v14_v1 }
   0x3   :  { %v31_v4 = vld [vmem:[%s96_s2] sm:$0x3] }
   0x4   :  { %v21_v7 = vsub.s32 0, %v20_v2  ;;  %v25_v8 = vsub.s32 1, %v20_v2 }
   0x6   :  { %v22_v9 = vrot.slane %v17_v3, %v21_v7  ;;  %v26_v10 = vrot.slane %v17_v3, %v25_v8  ;;  %v36_v11 = vrot.slane %v31_v4, %v21_v7  ;;  %v40_v12 = vrot.slane %v31_v4, %v25_v8 }
   0x8   :  { %v29_v13 = vmul.f32 %v22_v9, %v15_v5  ;;  %v30_v14 = vmul.f32 %v26_v10, %v16_v6 }
   0xa   :  { %v43_v15 = vadd.f32 %v36_v11, %v29_v13  ;;  %v44_v16 = vadd.f32 %v40_v12, %v30_v14 }
   0xc   :  { %v45_v17 = vmax.f32 %v43_v15, 0.0  ;;  %v46_v18 = vmax.f32 %v44_v16, 0.0 }
   0xe   :  { %v61_v19 = vpack.c.bf16 %v46_v18, %v45_v17 }
  0x10   :  { %55 = vst [vmem:[%s97_s3] sm:$0xff] %v61_v19 }

// kernel: _lambda_.23
= control target key start
LH: loop header
LB: loop body
LE: loop exit
PB: predicated region body
PF: predicated region fallthrough
CT: control target
= control target key end

     0   :  { %v289_v0 = vmov 0   ;;  %vm109_vm0 = vcmask 130048   ;;  %vm186_vm1 = vcmask 261120   ;;  %vm181_vm2 = vcmask 257024   ;;  %s384_s1 = inlined_call_operand.vmem [shape: bf16[144,32], index: 1, kind: input, shape index: {}]   ;;  %s385_s0 = inlined_call_operand.vmem [shape: bf16[32,144], index: 0, kind: input, shape index: {}]   ;;  %s386_s2 = inlined_call_operand.vmem [shape: bf16[32,32], index: 2, kind: output, shape index: {0}]   ;;  %s387_s3 = inlined_call_operand.vmem [shape: f32[1,1,32], index: 3, kind: output, shape index: {1}]   ;;  %s388_s4 = inlined_call_operand.vmem [shape: f32[1,1,32], index: 4, kind: output, shape index: {2}]  }
   0x1   :  { %116 = vmatprep.subr.bf16.mxu0 %v289_v0  ;;  %255 = vmatprep.subr.bf16.mxu1 %v289_v0  ;;  %v274_v1 = vld [vmem:[%s384_s1] sm:$0xff]   ;;  %v275_v2 = vld [vmem:[%s384_s1 + $0x8] sm:$0xff]   ;;  %v276_v3 = vld [vmem:[%s384_s1 + $0x10] sm:$0xff]   ;;  %vm200_vm3 = vcmask 253952  }
   0x2   :  { %117 = vmatpush1.bf16.msra.mxu0 %v274_v1  ;;  %264 = vmatpush1.bf16.msra.mxu1 %v274_v1  ;;  %v277_v4 = vld [vmem:[%s384_s1 + $0x18] sm:$0xff]   ;;  %v285_v5 = vld [vmem:[%s385_s0 + $0x4] ss:$8 sps:$4 sm:$0xff]   ;;  %v280_v9 = vld [vmem:[%s384_s1 + $0x30] sm:$0xff]  }
   0x3   :  { %118 = vmatprep.subr.bf16.mxu0 %v289_v0  ;;  %256 = vmatprep.subr.bf16.mxu1 %v289_v0  ;;  %v288_v6 = vld [vmem:[%s385_s0 + $0x14] ss:$8 sps:$4 sm:$0xff]   ;;  %v278_v7 = vld [vmem:[%s384_s1 + $0x20] sm:$0xff]   ;;  %v279_v8 = vld [vmem:[%s384_s1 + $0x28] sm:$0xff]  }
   0x4   :  { %245 = vmatprep.mubr.msk.bf16.mxu0 %vm109_vm0, %v285_v5  ;;  %246 = vmatprep.mubr.msk.bf16.mxu1 %vm109_vm0, %v288_v6  ;;  %v281_v10 = vld [vmem:[%s384_s1 + $0x38] sm:$0xff]   ;;  %v282_v11 = vld [vmem:[%s384_s1 + $0x40] sm:$0xff]  }
   0x5   :  { %v283_v12 = vld [vmem:[%s385_s0] ss:$8 sps:$4 sm:$0xff]   ;;  %v286_v13 = vld [vmem:[%s385_s0 + $0x10] ss:$8 sps:$4 sm:$0xff]  }
   0x6   :  { %119 = vmatpush1.bf16.msra.mxu0 %v275_v2  ;;  %265 = vmatpush1.bf16.msra.mxu1 %v275_v2 }
   0x7   :  { %120 = vmatprep.subr.bf16.mxu0 %v289_v0  ;;  %257 = vmatprep.subr.bf16.mxu1 %v289_v0 }
   0xa   :  { %121 = vmatpush1.bf16.msra.mxu0 %v276_v3  ;;  %266 = vmatpush1.bf16.msra.mxu1 %v276_v3 }
   0xb   :  { %122 = vmatprep.subr.bf16.mxu0 %v289_v0  ;;  %258 = vmatprep.subr.bf16.mxu1 %v289_v0 }
   0xe   :  { %123 = vmatpush1.bf16.msra.mxu0 %v277_v4  ;;  %267 = vmatpush1.bf16.msra.mxu1 %v277_v4 }
   0xf   :  { %124 = vmatprep.subr.bf16.mxu0 %v289_v0  ;;  %259 = vmatprep.subr.bf16.mxu1 %v289_v0 }
  0x12   :  { %125 = vmatpush1.bf16.msra.mxu0 %v278_v7  ;;  %268 = vmatpush1.bf16.msra.mxu1 %v278_v7 }
  0x13   :  { %126 = vmatprep.subr.bf16.mxu0 %v289_v0  ;;  %260 = vmatprep.subr.bf16.mxu1 %v289_v0 }
  0x16   :  { %127 = vmatpush1.bf16.msra.mxu0 %v279_v8  ;;  %269 = vmatpush1.bf16.msra.mxu1 %v279_v8 }
  0x17   :  { %128 = vmatprep.subr.bf16.mxu0 %v289_v0  ;;  %261 = vmatprep.subr.bf16.mxu1 %v289_v0 }
  0x1a   :  { %129 = vmatpush1.bf16.msra.mxu0 %v280_v9  ;;  %270 = vmatpush1.bf16.msra.mxu1 %v280_v9 }
  0x1b   :  { %130 = vmatprep.subr.bf16.mxu0 %v289_v0  ;;  %262 = vmatprep.subr.bf16.mxu1 %v289_v0 }
  0x1e   :  { %131 = vmatpush1.bf16.msra.mxu0 %v281_v10  ;;  %271 = vmatpush1.bf16.msra.mxu1 %v281_v10 }
  0x1f   :  { %132 = vmatprep.subr.bf16.mxu0 %v289_v0  ;;  %263 = vmatprep.subr.bf16.mxu1 %v289_v0 }
  0x22   :  { %133 = vmatpush1.bf16.msra.mxu0 %v282_v11  ;;  %272 = vmatpush1.bf16.msra.mxu1 %v282_v11 }
  0x25   :  { %149 = vmatmul.mubr.bf16.vlgmr.msra.gmra.mrb[0].mxu0 %v283_v12  ;;  %157 = vmatmul.mubr.bf16.vlgmr.msra.gmra.mrb[0].mxu1 %v286_v13 }
  0xf8   :  { %v150_v14 = vpop.f32.mrb[0].mxu0  ;;  %v158_v15 = vpop.f32.mrb[0].mxu1 }
  0xf9   :  { %v251_v16 = vpack.c.bf16 %v150_v14, %v150_v14  ;;  %v202_v17 = vmul.f32 %v150_v14, %v150_v14  ;;  %v152_v18 = vpop.f32.mrb[1].mxu0  ;;  %v253_v19 = vpack.c.bf16 %v158_v15, %v158_v15  ;;  %v160_v20 = vpop.f32.mrb[1].mxu1  ;;  %v187_v21 = vsel %vm186_vm1, %v150_v14, 0.0 }
  0xfa   :  { %v204_v22 = vmul.f32 %v158_v15, %v158_v15  ;;  %v153_v23 = vpop.f32.mrb[2].mxu0  ;;  %v161_v24 = vpop.f32.mrb[2].mxu1  ;;  %v190_v25 = vsel %vm186_vm1, %v158_v15, 0.0 }
  0xfb   :  { %182 = vst.msk [vmem:[%s386_s2] sm:$0xf] %vm181_vm2, %v251_v16  ;;  %184 = vst.msk [vmem:[%s386_s2 + $0x8] sm:$0xf] %vm181_vm2, %v253_v19  ;;  %v252_v26 = vpack.c.bf16 %v153_v23, %v153_v23  ;;  %v188_v27 = vsel %vm186_vm1, %v153_v23, 0.0  ;;  %v203_v28 = vmul.f32 %v153_v23, %v153_v23  ;;  %v155_v29 = vpop.f32.mrb[3].mxu0  ;;  %v254_v32 = vpack.c.bf16 %v161_v24, %v161_v24 }
  0xfc   :  { %v163_v30 = vpop.f32.mrb[3].mxu1  ;;  %v189_v31 = vadd.f32 %v188_v27, %v187_v21  ;;  %v206_v33 = vsel %vm186_vm1, %v202_v17, 0.0  ;;  %v209_v34 = vsel %vm186_vm1, %v204_v22, 0.0  ;;  %v205_v36 = vmul.f32 %v161_v24, %v161_v24 }
  0xfd   :  { %183 = vst.msk [vmem:[%s386_s2 + $0x4] sm:$0xf] %vm181_vm2, %v252_v26  ;;  %v207_v35 = vsel %vm186_vm1, %v203_v28, 0.0  ;;  %185 = vst.msk [vmem:[%s386_s2 + $0xc] sm:$0xf] %vm181_vm2, %v254_v32  ;;  %v192_v39 = vsel %vm186_vm1, %v161_v24, 0.0 }
  0xfe   :  { %v208_v37 = vadd.f32 %v207_v35, %v206_v33  ;;  %v191_v38 = vadd.f32 %v190_v25, %v189_v31  ;;  %v211_v42 = vsel %vm186_vm1, %v205_v36, 0.0 }
 0x100   :  { %v193_v40 = vadd.f32 %v192_v39, %v191_v38  ;;  %v210_v41 = vadd.f32 %v209_v34, %v208_v37 }
 0x102   :  { %v194_v43 = vrot.slane %v193_v40, 4  ;;  %v212_v44 = vadd.f32 %v211_v42, %v210_v41 }
 0x104   :  { %v195_v45 = vadd.f32 %v194_v43, %v193_v40  ;;  %v213_v46 = vrot.slane %v212_v44, 4 }
 0x106   :  { %v196_v47 = vrot.slane %v195_v45, 2  ;;  %v214_v48 = vadd.f32 %v213_v46, %v212_v44 }
 0x108   :  { %v197_v49 = vadd.f32 %v196_v47, %v195_v45  ;;  %v215_v50 = vrot.slane %v214_v48, 2 }
 0x10a   :  { %v198_v51 = vrot.slane %v197_v49, 1  ;;  %v216_v52 = vadd.f32 %v215_v50, %v214_v48 }
 0x10c   :  { %v199_v53 = vadd.f32 %v198_v51, %v197_v49  ;;  %v217_v54 = vrot.slane %v216_v52, 1 }
 0x10e   :  { %201 = vst.msk [vmem:[%s387_s3] sm:$0x1] %vm200_vm3, %v199_v53  ;;  %v218_v55 = vadd.f32 %v217_v54, %v216_v52 }
 0x110   :  { %219 = vst.msk [vmem:[%s388_s4] sm:$0x1] %vm200_vm3, %v218_v55 }

// kernel: _lambda_.24
= control target key start
LH: loop header
LB: loop body
LE: loop exit
PB: predicated region body
PF: predicated region fallthrough
CT: control target
= control target key end

     0   :  { %v18_v0 = vlaneseq  ;;  %s98_s0 = inlined_call_operand.vmem [shape: bf16[4,256], index: 0, kind: input, shape index: {}]   ;;  %s99_s1 = inlined_call_operand.vmem [shape: f32[1,256], index: 1, kind: input, shape index: {}]   ;;  %s100_s2 = inlined_call_operand.vmem [shape: f32[1,256], index: 2, kind: input, shape index: {}]   ;;  %s101_s3 = inlined_call_operand.vmem [shape: bf16[4,256], index: 3, kind: output, shape index: {}]  }
   0x1   :  { %v14_v1 = vld [vmem:[%s98_s0] sm:$0xf] }
   0x2   :  { %v19_v2 = vshrl.u32 %v18_v0, 7  ;;  %v16_v3 = vld [vmem:[%s99_s1] sm:$0x3]  ;;  %v15_v7 = vunpack.c.l.bf16 %v14_v1 }
   0x3   :  { %v29_v4 = vld [vmem:[%s100_s2] sm:$0x3] }
   0x4   :  { %v20_v5 = vsub.s32 0, %v19_v2  ;;  %v24_v6 = vsub.s32 1, %v19_v2 }
   0x6   :  { %v21_v8 = vrot.slane %v16_v3, %v20_v5  ;;  %v25_v9 = vrot.slane %v16_v3, %v24_v6  ;;  %v34_v10 = vrot.slane %v29_v4, %v20_v5  ;;  %v38_v11 = vrot.slane %v29_v4, %v24_v6 }
   0x8   :  { %v26_v12 = vcombine.low %v21_v8, %v25_v9  ;;  %v39_v13 = vcombine.low %v34_v10, %v38_v11 }
   0xa   :  { %v28_v14 = vmul.f32 %v26_v12, %v15_v7 }
   0xc   :  { %v41_v15 = vadd.f32 %v39_v13, %v28_v14 }
   0xe   :  { %v42_v16 = vmax.f32 %v41_v15, 0.0 }
  0x10   :  { %v44_v17 = vcombine.high %v42_v16, %v42_v16 }
  0x12   :  { %v64_v18 = vpack.c.bf16 %v44_v17, %v42_v16 }
  0x14   :  { %65 = vst.sshfl [vmem:[%s101_s3] sm:$0x33 pattern:$0x76325410] %v64_v18 }

// kernel: _lambda_.28
= control target key start
LH: loop header
LB: loop body
LE: loop exit
PB: predicated region body
PF: predicated region fallthrough
CT: control target
= control target key end

     0   :  { %v21_v0 = vlaneseq  ;;  %s111_s0 = inlined_call_operand.vmem [shape: bf16[4,256], index: 0, kind: input, shape index: {}]   ;;  %s112_s1 = inlined_call_operand.vmem [shape: f32[1,256], index: 1, kind: input, shape index: {}]   ;;  %s113_s2 = inlined_call_operand.vmem [shape: f32[1,256], index: 2, kind: input, shape index: {}]   ;;  %s114_s3 = inlined_call_operand.vmem [shape: bf16[4,256], index: 3, kind: input, shape index: {}]   ;;  %s115_s4 = inlined_call_operand.vmem [shape: bf16[4,256], index: 4, kind: output, shape index: {}]  }
   0x1   :  { %v17_v1 = vld [vmem:[%s111_s0] sm:$0xf] }
   0x2   :  { %v22_v2 = vshrl.u32 %v21_v0, 7  ;;  %v19_v3 = vld [vmem:[%s112_s1] sm:$0x3]  ;;  %v18_v7 = vunpack.c.l.bf16 %v17_v1 }
   0x3   :  { %v32_v4 = vld [vmem:[%s113_s2] sm:$0x3] }
   0x4   :  { %v23_v5 = vsub.s32 0, %v22_v2  ;;  %v27_v6 = vsub.s32 1, %v22_v2  ;;  %v45_v12 = vld [vmem:[%s114_s3] sm:$0xf] }
   0x5   :  { %v46_v16 = vunpack.c.l.bf16 %v45_v12 }
   0x6   :  { %v24_v8 = vrot.slane %v19_v3, %v23_v5  ;;  %v28_v9 = vrot.slane %v19_v3, %v27_v6  ;;  %v37_v10 = vrot.slane %v32_v4, %v23_v5  ;;  %v41_v11 = vrot.slane %v32_v4, %v27_v6 }
   0x8   :  { %v29_v13 = vcombine.low %v24_v8, %v28_v9  ;;  %v42_v14 = vcombine.low %v37_v10, %v41_v11 }
   0xa   :  { %v31_v15 = vmul.f32 %v29_v13, %v18_v7 }
   0xc   :  { %v44_v17 = vadd.f32 %v42_v14, %v31_v15 }
   0xe   :  { %v47_v18 = vadd.f32 %v46_v16, %v44_v17 }
  0x10   :  { %v49_v19 = vcombine.high %v47_v18, %v47_v18 }
  0x12   :  { %v69_v20 = vpack.c.bf16 %v49_v19, %v47_v18 }
  0x14   :  { %70 = vst.sshfl [vmem:[%s115_s4] sm:$0x33 pattern:$0x76325410] %v69_v20 }

// kernel: _lambda_.25
= control target key start
LH: loop header
LB: loop body
LE: loop exit
PB: predicated region body
PF: predicated region fallthrough
CT: control target
= control target key end

     0   :  { %s1476_s18 = smov 0   ;;  %s1647_s0 = inlined_call_operand.vmem [shape: bf16[2,40,32], index: 0, kind: input, shape index: {}]   ;;  %s1648_s1 = inlined_call_operand.vmem [shape: bf16[288,32], index: 1, kind: input, shape index: {}]   ;;  %s1649_s2 = inlined_call_operand.vmem [shape: f32[24,1], index: 2, kind: input, shape index: {}]   ;;  %s1650_s3 = inlined_call_operand.vmem [shape: bf16[2,24,32], index: 3, kind: output, shape index: {0}]   ;;  %s1651_s4 = inlined_call_operand.vmem [shape: f32[2,1,32], index: 4, kind: output, shape index: {1}]   ;;  %s1652_s5 = inlined_call_operand.vmem [shape: f32[2,1,32], index: 5, kind: output, shape index: {2}]  }
   0x1 LB: > { %s1190_s19 = sadd.s32 4294967295, %s1443_s18   ;;  %p1194_p0 = scmp.ge.s32.totalorder %s1443_s18, 1  ;;  %s1443_s18 = sphi %s1476_s18, %s16_s18  }
   0x2   : > { %p192_p1 = scmp.lt.s32.totalorder %s1443_s18, 3 }
   0x4   : > { %p193_p2 = pnand %p1194_p0, %p192_p1 }
   0x5   : > { %v1406_v0 = vld [vmem:[%s1648_s1 + $0x40] sm:$0xff] (!%p193_p2)   ;;  %p226_p3 = scmp.lt.s32.totalorder (!%p193_p2), %s1190_s19, 1  ;;  %v1407_v1 = vld [vmem:[%s1648_s1 + $0x10] sm:$0xff] (!%p193_p2)   ;;  %v1408_v2 = vld [vmem:[%s1648_s1 + $0x48] sm:$0xff] (!%p193_p2)   ;;  %vm265_vm0 = vsmask.f32 (!%p193_p2), 7424 }
   0x6   : > { %196 = sbr.rel (%p193_p2) target bundleno = 317 (0x13d), region = 32  ;;  %1322 = vmatprep.subr.bf16.mxu0 (!%p193_p2), %v1406_v0  ;;  %1290 = vmatprep.subr.bf16.mxu1 (!%p193_p2), %v1407_v1  ;;  %v1409_v3 = vld [vmem:[%s1648_s1 + $0x18] sm:$0xff] (!%p193_p2)   ;;  %v1415_v4 = vld [vmem:[%s1648_s1 + $0x50] sm:$0xff] (!%p193_p2)   ;;  %v1416_v5 = vld [vmem:[%s1648_s1] sm:$0xff] (!%p193_p2)   ;;  %vm588_vm1 = vsmask.f32 (!%p193_p2), 4352 }
   0x7   : > { %1323 = vmatpush3.bf16.msra.mxu0 (!%p193_p2), %v1406_v0  ;;  %1291 = vmatpush3.bf16.msra.mxu1 (!%p193_p2), %v1407_v1  ;;  %vm293_vm2 = vcmask (!%p193_p2), 261120   ;;  %v1417_v35 = vld [vmem:[%s1648_s1 + $0x58] sm:$0xff] (!%p193_p2)   ;;  %v1418_v36 = vld [vmem:[%s1648_s1 + $0x8] sm:$0xff] (!%p193_p2)   ;;  %v1422_v44 = vld [vmem:[%s1648_s1 + $0x20] sm:$0xff] (!%p193_p2)   ;;  %vm422_vm3 = vcmask (!%p193_p2), 1046528   ;;  %vm768_vm4 = vcmask (!%p193_p2), 1045504  }
   0x8   : > { %1324 = vmatprep.subr.bf16.mxu0 (!%p193_p2), %v1408_v2  ;;  %1292 = vmatprep.subr.bf16.mxu1 (!%p193_p2), %v1409_v3  ;;  %v1420_v48 = vld [vmem:[%s1648_s1 + $0x60] sm:$0xff] (!%p193_p2)   ;;  %v1445_v56 = vmov (!%p193_p2), 0   ;;  %v1035_v58 = vld [vmem:[%s1649_s2 + $0x10] sm:$0xff] (!%p193_p2)  ;;  %v1424_v60 = vld [vmem:[%s1648_s1 + $0x28] sm:$0xff] (!%p193_p2)   ;;  %vm507_vm5 = vcmask (!%p193_p2), 1044480   ;;  %vm1029_vm7 = vcmask (!%p193_p2), 257024  }
   0x9   : > { %1404 = vset.pattern.permute.xlu0 (!%p193_p2), %v1445_v56  ;;  %v1033_v57 = vld [vmem:[%s1649_s2] sm:$0xff] (!%p193_p2)  ;;  %1405 = vset.pattern.permute.xlu1 (!%p193_p2), %v1445_v56  ;;  %v1423_v0 = vld [vmem:[%s1648_s1 + $0x68] sm:$0xff] (!%p193_p2)   ;;  %vm849_vm6 = vsmask.f32 (!%p193_p2), 5376  ;;  %vm1065_vm8 = vcmask (!%p193_p2), 253952  }
   0xa   : > { %1038 = vperm.xlu0 (!%p193_p2), %1404, %v1033_v57   ;;  %1048 = vperm.xlu1 (!%p193_p2), %1405, %v1035_v58  }
   0xb   : > { %1325 = vmatpush3.bf16.msra.mxu0 (!%p193_p2), %v1408_v2  ;;  %1293 = vmatpush3.bf16.msra.mxu1 (!%p193_p2), %v1409_v3 }
   0xc   : > { %1330 = vmatprep.subr.bf16.mxu0 (!%p193_p2), %v1415_v4  ;;  %1298 = vmatprep.subr.bf16.mxu1 (!%p193_p2), %v1416_v5 }
   0xd   : > { %s1654_s19 = smov (!%p226_p3, %s1190_s19), 1 }
   0xe   : > { %s1393_s28 = smul.u32 20, %s1654_s19  ;;  %s238_s26 = scalar_lea.vmem %s1651_s4, %s1654_s19 }
   0xf   : > { %s1394_s20 = smul.u32 12, %s1654_s19  ;;  %s241_s29 = scalar_lea.vmem %s1652_s5, %s1654_s19 }
  0x10   : > { %s1505_s8 = scalar_lea.vmem %s1647_s0, %s1393_s28 }
  0x11   : > { %v243_v6 = vld [vmem:[%s1505_s8] sm:$0xf]  ;;  %v244_v7 = vld [vmem:[%s1505_s8 + $0x4] sm:$0xf]  ;;  %v1513_v8 = vld [vmem:[%s1505_s8 + $0x8] sm:$0xf]  ;;  %s235_s23 = scalar_lea.vmem %s1650_s3, %s1394_s20 }
  0x12   : > { %v250_v9 = vld [vmem:[%s1505_s8 + $0xc] sm:$0x1]  ;;  %v1197_v10 = vcombine.low %v243_v6, %v244_v7  ;;  %v495_v11 = vld [vmem:[%s1505_s8] sm:$0x8]  ;;  %v750_v38 = vld [vmem:[%s1505_s8 + $0x4] sm:$0xc]  ;;  %v1224_v42 = vcombine.low %v244_v7, %v1513_v8  ;;  %v1203_v54 = vcombine.low %v1513_v8, %v1513_v8 }
  0x13   : > { %v1518_v12 = vld [vmem:[%s1505_s8 + $0xc] sm:$0xf]  ;;  %v1521_v13 = vcombine.low %v1513_v8, %v250_v9  ;;  %v1523_v14 = vcombine.low %v495_v11, %v244_v7  ;;  %v414_v37 = vld [vmem:[%s1505_s8] sm:$0xe]  ;;  %v1542_v39 = vld [vmem:[%s1505_s8 + $0x8] sm:$0xf] }
  0x14   : > { %v1219_v15 = vcombine.low %v1513_v8, %v1518_v12  ;;  %v267_v16 = vshrl.u32 %v1197_v10, 16  ;;  %v269_v17 = vshll.u32 %v1197_v10, 16  ;;  %v752_v40 = vld [vmem:[%s1505_s8 + $0xc] sm:$0xf]  ;;  %v753_v43 = vld [vmem:[%s1505_s8 + $0x10] sm:$0x3]  ;;  %v1208_v45 = vcombine.low %v414_v37, %v244_v7 }
  0x15   : > { %v274_v18 = vshll.u32 %v1521_v13, 16  ;;  %v278_v19 = vshrl.u32 %v1521_v13, 16  ;;  %v590_v20 = vshrl.u32 %v1523_v14, 16  ;;  %v593_v21 = vshll.u32 %v1523_v14, 16  ;;  %v841_v49 = vld [vmem:[%s1505_s8 + $0x10] sm:$0x7] }
  0x16   : > { %v271_v22 = vrot.slane %v269_v17, 1  ;;  %v598_v23 = vshrl.u32 %v1219_v15, 16  ;;  %v601_v24 = vshll.u32 %v1219_v15, 16  ;;  %v1230_v46 = vcombine.low %v750_v38, %v1542_v39  ;;  %v496_v63 = vld [vmem:[%s1505_s8 + $0xc] sm:$0x7]  ;;  %v1430_v6 = vld [vmem:[%s1648_s1 + $0x30] sm:$0xff]  }
  0x17   : > { %v276_v25 = vrot.slane %v274_v18, 1  ;;  %v592_v26 = vrot.slane %v590_v20, 3  ;;  %v595_v27 = vrot.slane %v593_v21, 4  ;;  %v1231_v47 = vcombine.low %v752_v40, %v753_v43  ;;  %v1429_v9 = vld [vmem:[%s1648_s1 + $0x70] sm:$0xff]   ;;  %v1432_v18 = vld [vmem:[%s1648_s1 + $0x38] sm:$0xff]  }
  0x18   : > { %v272_v28 = vor.u32 %v271_v22, %v267_v16  ;;  %v600_v29 = vrot.slane %v598_v23, 3  ;;  %v603_v30 = vrot.slane %v601_v24, 4  ;;  %v423_v50 = vrot.slane %v1208_v45, 1  ;;  %v1431_v20 = vld [vmem:[%s1648_s1 + $0x78] sm:$0xff]   ;;  %v936_v21 = vld [vmem:[%s1505_s8 + $0x4] sm:$0x8] }
  0x19   : > { %v280_v31 = vor.u32 %v278_v19, %v276_v25  ;;  %v596_v32 = vor.u32 %v595_v27, %v592_v26  ;;  %v424_v51 = vrot.slane %v1521_v13, 1  ;;  %v769_v52 = vrot.slane %v1230_v46, 2  ;;  %v1434_v22 = vld [vmem:[%s1648_s1 + $0x80] sm:$0xff]   ;;  %v1435_v26 = vld [vmem:[%s1648_s1 + $0x88] sm:$0xff]  }
  0x1a   : > { %v277_v33 = vsel %vm265_vm0, %v272_v28, %v276_v25  ;;  %v604_v34 = vor.u32 %v603_v30, %v600_v29  ;;  %v770_v53 = vrot.slane %v1231_v47, 2  ;;  %v1564_v55 = vcombine.low %v752_v40, %v841_v49 }
  0x1b   : > { %1294 = vmatprep.mubr.msk.bf16.mxu1 %vm293_vm2, %v277_v33  ;;  %v1225_v59 = vcombine.low %v1518_v12, %v1518_v12  ;;  %v425_v61 = vsel %vm422_vm3, %v423_v50, %v424_v51  ;;  %v851_v1 = vshrl.u32 %v1230_v46, 16  ;;  %v854_v2 = vshll.u32 %v1230_v46, 16 }
  0x1c   : > { %v605_v41 = vsel %vm588_vm1, %v596_v32, %v604_v34  ;;  %1295 = vmatmul.mubr.msk.bf16.vlgmr.msra.gmra.mrb[0].mxu1 %vm293_vm2, %v280_v31  ;;  %v771_v62 = vsel %vm768_vm4, %v769_v52, %v770_v53  ;;  %v859_v3 = vshrl.u32 %v1564_v55, 16  ;;  %v1214_v7 = vcombine.low %v1513_v8, %v496_v63 }
  0x1d   : > { %1326 = vmatprep.mubr.msk.bf16.mxu0 %vm293_vm2, %v605_v41  ;;  %1299 = vmatpush3.bf16.msra.mxu1 %v1416_v5  ;;  %v1034_v5 = vld [vmem:[%s1649_s2 + $0x8] sm:$0xff]  ;;  %v856_v11 = vrot.slane %v854_v2, 3  ;;  %v508_v15 = vrot.slane %v1523_v14, 3  ;;  %v1241_v23 = vcombine.low %v936_v21, %v1542_v39  ;;  %v945_v25 = vrot.slane %v1564_v55, 3 }
  0x1e   : > { %1327 = vmatmul.mubr.msk.bf16.vlgmr.msra.gmra.mrb[0].mxu0 %vm293_vm2, %v604_v34  ;;  %1300 = vmatprep.subr.bf16.mxu1 %v1418_v36  ;;  %v861_v12 = vrot.slane %v859_v3, 2  ;;  %v509_v16 = vrot.slane %v1214_v7, 3 }
  0x1f   : > { %1331 = vmatpush3.bf16.msra.mxu0 %v1415_v4  ;;  %1302 = vmatprep.mubr.msk.bf16.mxu1 %vm293_vm2, %v1197_v10  ;;  %v862_v4 = vshll.u32 %v1564_v55, 16  ;;  %v853_v10 = vrot.slane %v851_v1, 2  ;;  %v944_v24 = vrot.slane %v1241_v23, 3 }
  0x20   : > { %1332 = vmatprep.subr.bf16.mxu0 %v1417_v35  ;;  %1334 = vmatprep.mubr.msk.bf16.mxu0 %vm293_vm2, %v1224_v42  ;;  %v510_v19 = vsel %vm507_vm5, %v508_v15, %v509_v16 }
  0x21   : > { %1301 = vmatpush3.bf16.msra.mxu1 %v1418_v36  ;;  %v864_v13 = vrot.slane %v862_v4, 3  ;;  %1043 = vperm.xlu0 %1404, %v1034_v5   ;;  %v857_v8 = vor.u32 %v856_v11, %v853_v10  ;;  %v946_v27 = vsel %vm507_vm5, %v944_v24, %v945_v25 }
  0x22   : > { %1306 = vmatprep.subr.bf16.mxu1 %v1422_v44 }
  0x23   : > { %1333 = vmatpush3.bf16.msra.mxu0 %v1417_v35  ;;  %v865_v17 = vor.u32 %v864_v13, %v861_v12 }
  0x24   : > { %1338 = vmatprep.subr.bf16.mxu0 %v1420_v48 }
  0x25   : > { %v866_v14 = vsel %vm849_vm6, %v857_v8, %v865_v17 }
  0x28   : > { %1303 = vmatmul.mubr.msk.bf16.vlgmr.msra.gmra.mrb[0].mxu1 %vm293_vm2, %v1203_v54 }
  0x29   : > { %1307 = vmatpush3.bf16.msra.mxu1 %v1422_v44  ;;  %1310 = vmatprep.mubr.msk.bf16.mxu1 %vm293_vm2, %v425_v61 }
  0x2a   : > { %1335 = vmatmul.mubr.msk.bf16.vlgmr.msra.gmra.mrb[0].mxu0 %vm293_vm2, %v1225_v59  ;;  %1308 = vmatprep.subr.bf16.mxu1 %v1424_v60 }
  0x2b   : > { %1339 = vmatpush3.bf16.msra.mxu0 %v1420_v48  ;;  %1342 = vmatprep.mubr.msk.bf16.mxu0 %vm293_vm2, %v771_v62 }
  0x2c   : > { %1340 = vmatprep.subr.bf16.mxu0 %v1423_v0 }
  0x2d   : > { %1309 = vmatpush3.bf16.msra.mxu1 %v1424_v60 }
  0x2e   : > { %1314 = vmatprep.subr.bf16.mxu1 %v1430_v6 }
  0x2f   : > { %1341 = vmatpush3.bf16.msra.mxu0 %v1423_v0 }
  0x30   : > { %1346 = vmatprep.subr.bf16.mxu0 %v1429_v9 }
  0x34   : > { %1311 = vmatmul.mubr.msk.bf16.vlgmr.msra.gmra.mrb[0].mxu1 %vm293_vm2, %v424_v51 }
  0x35   : > { %1315 = vmatpush3.bf16.msra.mxu1 %v1430_v6  ;;  %1318 = vmatprep.mubr.msk.bf16.mxu1 %vm293_vm2, %v510_v19 }
  0x36   : > { %1343 = vmatmul.mubr.msk.bf16.vlgmr.msra.gmra.mrb[0].mxu0 %vm293_vm2, %v770_v53  ;;  %1316 = vmatprep.subr.bf16.mxu1 %v1432_v18 }
  0x37   : > { %1347 = vmatpush3.bf16.msra.mxu0 %v1429_v9  ;;  %1350 = vmatprep.mubr.msk.bf16.mxu0 %vm293_vm2, %v866_v14 }
  0x38   : > { %1348 = vmatprep.subr.bf16.mxu0 %v1431_v20 }
  0x39   : > { %1317 = vmatpush3.bf16.msra.mxu1 %v1432_v18 }
  0x3b   : > { %1349 = vmatpush3.bf16.msra.mxu0 %v1431_v20 }
  0x3c   : > { %1354 = vmatprep.subr.bf16.mxu0 %v1434_v22 }
  0x40   : > { %1319 = vmatmul.mubr.msk.bf16.vlgmr.msra.gmra.mrb[0].mxu1 %vm293_vm2, %v509_v16 }
  0x42   : > { %1351 = vmatmul.mubr.msk.bf16.vlgmr.msra.gmra.mrb[0].mxu0 %vm293_vm2, %v865_v17 }
  0x43   : > { %1355 = vmatpush3.bf16.msra.mxu0 %v1434_v22  ;;  %1358 = vmatprep.mubr.msk.bf16.mxu0 %vm293_vm2, %v946_v27 }
  0x44   : > { %1356 = vmatprep.subr.bf16.mxu0 %v1435_v26 }
  0x47   : > { %1357 = vmatpush3.bf16.msra.mxu0 %v1435_v26 }
  0x4e   : > { %1359 = vmatmul.mubr.msk.bf16.vlgmr.msra.gmra.mrb[0].mxu0 %vm293_vm2, %v945_v25 }
  0x89   : > { %v1039_v32 = vpop.permute.xlu0 %1038  ;;  %v1049_v39 = vpop.permute.xlu1 %1048 }
  0xa0   : > { %v1044_v46 = vpop.permute.xlu0 %1043 }
 0x113   : > { %v1320_v28 = vpop.f32.mrb[0].mxu1 }
 0x114   : > { %v563_v29 = vpop.f32.mrb[1].mxu1 }
 0x115   : > { %v1321_v30 = vpop.f32.mrb[2].mxu1 }
 0x116   : > { %v566_v31 = vpop.f32.mrb[3].mxu1 }
 0x121   : > { %v1360_v33 = vpop.f32.mrb[0].mxu0 }
 0x122   : > { %v1362_v34 = vadd.f32 %v1360_v33, %v1320_v28  ;;  %v999_v35 = vpop.f32.mrb[1].mxu0 }
 0x123   : > { %v1363_v36 = vadd.f32 %v999_v35, %v563_v29  ;;  %v1361_v37 = vpop.f32.mrb[2].mxu0 }
 0x124   : > { %v1253_v38 = vpack.c.bf16 %v1362_v34, %v1362_v34  ;;  %v1002_v40 = vpop.f32.mrb[3].mxu0  ;;  %v1069_v45 = vmul.f32 %v1362_v34, %v1362_v34  ;;  %v1053_v47 = vmul.f32 %v1362_v34, %v1049_v39 }
 0x125   : > { %v1251_v41 = vpack.c.bf16 %v1363_v36, %v1363_v36  ;;  %v1051_v42 = vmul.f32 %v1363_v36, %v1039_v32  ;;  %v1067_v43 = vmul.f32 %v1363_v36, %v1363_v36  ;;  %v1364_v44 = vadd.f32 %v1002_v40, %v566_v31 }
 0x126   : > { %1032 = vst.msk [vmem:[%s235_s23 + $0x8] sm:$0xf] %vm1029_vm7, %v1253_v38  ;;  %v1072_v54 = vmul.f32 %v1069_v45, %v1049_v39  ;;  %v1057_v57 = vsel %vm293_vm2, %v1053_v47, 0.0 }
 0x127   : > { %1030 = vst.msk [vmem:[%s235_s23] sm:$0xf] %vm1029_vm7, %v1251_v41  ;;  %v1252_v48 = vpack.c.bf16 %v1364_v44, %v1364_v44  ;;  %v1052_v49 = vmul.f32 %v1364_v44, %v1044_v46  ;;  %v1070_v50 = vmul.f32 %v1067_v43, %v1039_v32  ;;  %v1068_v51 = vmul.f32 %v1364_v44, %v1364_v44 }
 0x128   : > { %v1054_v52 = vsel %vm293_vm2, %v1051_v42, 0.0  ;;  %v1076_v62 = vsel %vm293_vm2, %v1072_v54, 0.0 }
 0x129   : > { %1031 = vst.msk [vmem:[%s235_s23 + $0x4] sm:$0xf] %vm1029_vm7, %v1252_v48  ;;  %v1055_v53 = vsel %vm293_vm2, %v1052_v49, 0.0  ;;  %v1071_v56 = vmul.f32 %v1068_v51, %v1044_v46  ;;  %v1073_v58 = vsel %vm293_vm2, %v1070_v50, 0.0 }
 0x12a   : > { %v1056_v55 = vadd.f32 %v1055_v53, %v1054_v52 }
 0x12b   : > { %v1074_v60 = vsel %vm293_vm2, %v1071_v56, 0.0 }
 0x12c   : > { %v1058_v59 = vadd.f32 %v1057_v57, %v1056_v55  ;;  %v1075_v61 = vadd.f32 %v1074_v60, %v1073_v58 }
 0x12e   : > { %v1059_v63 = vrot.slane %v1058_v59, 4  ;;  %v1077_v0 = vadd.f32 %v1076_v62, %v1075_v61 }
 0x130   : > { %v1060_v1 = vadd.f32 %v1059_v63, %v1058_v59  ;;  %v1078_v2 = vrot.slane %v1077_v0, 4 }
 0x132   : > { %v1061_v3 = vrot.slane %v1060_v1, 2  ;;  %v1079_v4 = vadd.f32 %v1078_v2, %v1077_v0 }
 0x134   : > { %v1062_v5 = vadd.f32 %v1061_v3, %v1060_v1  ;;  %v1080_v6 = vrot.slane %v1079_v4, 2 }
 0x136   : > { %v1063_v7 = vrot.slane %v1062_v5, 1  ;;  %v1081_v9 = vadd.f32 %v1080_v6, %v1079_v4 }
 0x138   : > { %v1064_v10 = vadd.f32 %v1063_v7, %v1062_v5  ;;  %v1082_v11 = vrot.slane %v1081_v9, 1 }
 0x13a   : > { %1066 = vst.msk [vmem:[%s238_s26] sm:$0x1] %vm1065_vm8, %v1064_v10  ;;  %v1083_v12 = vadd.f32 %v1082_v11, %v1081_v9 }
 0x13c   : > { %1084 = vst.msk [vmem:[%s241_s29] sm:$0x1] %vm1065_vm8, %v1083_v12 }
 0x13d PF: > { %s16_s18 = sadd.s32 1, %s1443_s18  }
 0x13e   : > { %p13_p4 = scmp.ge.s32.totalorder %s16_s18, 4  }
 0x140   :  { %15 = sbr.rel (!%p13_p4) target bundleno = 1 (0x1), region = 86 }

// kernel: tile.151
= control target key start
LH: loop header
LB: loop body
LE: loop exit
PB: predicated region body
PF: predicated region fallthrough
CT: control target
= control target key end

     0   :  { %s22_s0 = inlined_call_operand.vmem [shape: f32[16], index: 0, kind: input, shape index: {}]   ;;  %s23_s1 = inlined_call_operand.vmem [shape: f32[4,16], index: 1, kind: output, shape index: {}]  }
   0x1   :  { %v4_v0 = vld [vmem:[%s22_s0] ss:$0 sm:$0xff] }
   0x2   :  { %5 = vst [vmem:[%s23_s1] sm:$0xf] %v4_v0 }

// kernel: _lambda_.33
= control target key start
LH: loop header
LB: loop body
LE: loop exit
PB: predicated region body
PF: predicated region fallthrough
CT: control target
= control target key end

     0   :  { %vm160_vm0 = vcmask 519168   ;;  %vm165_vm1 = vcmask 523264   ;;  %vm179_vm2 = vcmask 516096   ;;  %s354_s1 = inlined_call_operand.vmem [shape: bf16[128,64], index: 1, kind: input, shape index: {}]   ;;  %s355_s0 = inlined_call_operand.vmem [shape: bf16[32,128], index: 0, kind: input, shape index: {}]   ;;  %s356_s2 = inlined_call_operand.vmem [shape: bf16[32,64], index: 2, kind: output, shape index: {0}]   ;;  %s357_s3 = inlined_call_operand.vmem [shape: f32[1,1,64], index: 3, kind: output, shape index: {1}]   ;;  %s358_s4 = inlined_call_operand.vmem [shape: f32[1,1,64], index: 4, kind: output, shape index: {2}]  }
   0x1   :  { %v259_v0 = vld [vmem:[%s354_s1] sm:$0xff]   ;;  %v260_v1 = vld [vmem:[%s354_s1 + $0x8] sm:$0xff]   ;;  %v261_v2 = vld [vmem:[%s354_s1 + $0x10] sm:$0xff]  }
   0x2   :  { %239 = vmatprep.subr.bf16.mxu0 %v259_v0  ;;  %v262_v3 = vld [vmem:[%s354_s1 + $0x18] sm:$0xff]   ;;  %v267_v4 = vld [vmem:[%s355_s0] sm:$0xff]   ;;  %v264_v6 = vld [vmem:[%s354_s1 + $0x28] sm:$0xff]  }
   0x3   :  { %240 = vmatpush3.bf16.msra.mxu0 %v259_v0  ;;  %255 = vmatprep.mubr.bf16.mxu0 %v267_v4  ;;  %v263_v5 = vld [vmem:[%s354_s1 + $0x20] sm:$0xff]   ;;  %v265_v7 = vld [vmem:[%s354_s1 + $0x30] sm:$0xff]   ;;  %v266_v8 = vld [vmem:[%s354_s1 + $0x38] sm:$0xff]  }
   0x4   :  { %241 = vmatprep.subr.bf16.mxu0 %v260_v1  ;;  %v268_v9 = vld [vmem:[%s355_s0 + $0x8] sm:$0xff]  }
   0x7   :  { %242 = vmatpush3.bf16.msra.mxu0 %v260_v1 }
   0x8   :  { %243 = vmatprep.subr.bf16.mxu0 %v261_v2 }
   0xb   :  { %244 = vmatpush3.bf16.msra.mxu0 %v261_v2 }
   0xc   :  { %245 = vmatprep.subr.bf16.mxu0 %v262_v3 }
   0xf   :  { %246 = vmatpush3.bf16.msra.mxu0 %v262_v3 }
  0x10   :  { %247 = vmatprep.subr.bf16.mxu0 %v263_v5 }
  0x13   :  { %248 = vmatpush3.bf16.msra.mxu0 %v263_v5 }
  0x14   :  { %249 = vmatprep.subr.bf16.mxu0 %v264_v6 }
  0x17   :  { %250 = vmatpush3.bf16.msra.mxu0 %v264_v6 }
  0x18   :  { %251 = vmatprep.subr.bf16.mxu0 %v265_v7 }
  0x1b   :  { %252 = vmatpush3.bf16.msra.mxu0 %v265_v7 }
  0x1c   :  { %253 = vmatprep.subr.bf16.mxu0 %v266_v8 }
  0x1f   :  { %254 = vmatpush3.bf16.msra.mxu0 %v266_v8 }
  0x22   :  { %256 = vmatmul.mubr.bf16.vlgmr.msra.gmra.mrb[0].mxu0 %v268_v9 }
  0xf5   :  { %v257_v10 = vpop.f32.mrb[0].mxu0 }
  0xf6   :  { %v227_v11 = vpack.c.bf16 %v257_v10, %v257_v10  ;;  %v129_v12 = vpop.f32.mrb[1].mxu0  ;;  %v183_v16 = vmul.f32 %v257_v10, %v257_v10  ;;  %v169_v24 = vsel %vm165_vm1, %v257_v10, 0.0 }
  0xf7   :  { %v225_v13 = vpack.c.bf16 %v129_v12, %v129_v12  ;;  %v181_v14 = vmul.f32 %v129_v12, %v129_v12  ;;  %v258_v15 = vpop.f32.mrb[2].mxu0  ;;  %v166_v19 = vsel %vm165_vm1, %v129_v12, 0.0 }
  0xf8   :  { %163 = vst.msk [vmem:[%s356_s2 + $0x8] sm:$0xf] %vm160_vm0, %v227_v11  ;;  %v228_v17 = vpack.c.bf16 %v258_v15, %v258_v15  ;;  %v132_v18 = vpop.f32.mrb[3].mxu0  ;;  %v184_v26 = vmul.f32 %v258_v15, %v258_v15  ;;  %v188_v30 = vsel %vm165_vm1, %v183_v16, 0.0  ;;  %v171_v31 = vsel %vm165_vm1, %v258_v15, 0.0 }
  0xf9   :  { %161 = vst.msk [vmem:[%s356_s2] sm:$0xf] %vm160_vm0, %v225_v13  ;;  %v226_v20 = vpack.c.bf16 %v132_v18, %v132_v18  ;;  %v167_v21 = vsel %vm165_vm1, %v132_v18, 0.0  ;;  %v182_v22 = vmul.f32 %v132_v18, %v132_v18  ;;  %v185_v25 = vsel %vm165_vm1, %v181_v14, 0.0 }
  0xfa   :  { %164 = vst.msk [vmem:[%s356_s2 + $0xc] sm:$0xf] %vm160_vm0, %v228_v17  ;;  %v168_v23 = vadd.f32 %v167_v21, %v166_v19  ;;  %v190_v34 = vsel %vm165_vm1, %v184_v26, 0.0 }
  0xfb   :  { %162 = vst.msk [vmem:[%s356_s2 + $0x4] sm:$0xf] %vm160_vm0, %v226_v20  ;;  %v186_v27 = vsel %vm165_vm1, %v182_v22, 0.0 }
  0xfc   :  { %v170_v28 = vadd.f32 %v169_v24, %v168_v23  ;;  %v187_v29 = vadd.f32 %v186_v27, %v185_v25 }
  0xfe   :  { %v172_v32 = vadd.f32 %v171_v31, %v170_v28  ;;  %v189_v33 = vadd.f32 %v188_v30, %v187_v29 }
 0x100   :  { %v173_v35 = vrot.slane %v172_v32, 4  ;;  %v191_v36 = vadd.f32 %v190_v34, %v189_v33 }
 0x102   :  { %v174_v37 = vadd.f32 %v173_v35, %v172_v32  ;;  %v192_v38 = vrot.slane %v191_v36, 4 }
 0x104   :  { %v175_v39 = vrot.slane %v174_v37, 2  ;;  %v193_v40 = vadd.f32 %v192_v38, %v191_v36 }
 0x106   :  { %v176_v41 = vadd.f32 %v175_v39, %v174_v37  ;;  %v194_v42 = vrot.slane %v193_v40, 2 }
 0x108   :  { %v177_v43 = vrot.slane %v176_v41, 1  ;;  %v195_v44 = vadd.f32 %v194_v42, %v193_v40 }
 0x10a   :  { %v178_v45 = vadd.f32 %v177_v43, %v176_v41  ;;  %v196_v46 = vrot.slane %v195_v44, 1 }
 0x10c   :  { %180 = vst.msk [vmem:[%s357_s3] sm:$0x1] %vm179_vm2, %v178_v45  ;;  %v197_v47 = vadd.f32 %v196_v46, %v195_v44 }
 0x10e   :  { %198 = vst.msk [vmem:[%s358_s4] sm:$0x1] %vm179_vm2, %v197_v47 }

// kernel: tile.169
= control target key start
LH: loop header
LB: loop body
LE: loop exit
PB: predicated region body
PF: predicated region fallthrough
CT: control target
= control target key end

     0   :  { %s22_s0 = inlined_call_operand.vmem [shape: f32[8], index: 0, kind: input, shape index: {}]   ;;  %s23_s1 = inlined_call_operand.vmem [shape: f32[4,8], index: 1, kind: output, shape index: {}]  }
   0x1   :  { %v4_v0 = vld [vmem:[%s22_s0] ss:$0 sm:$0xff] }
   0x2   :  { %5 = vst [vmem:[%s23_s1] sm:$0xf] %v4_v0 }

// kernel: _lambda_.35
= control target key start
LH: loop header
LB: loop body
LE: loop exit
PB: predicated region body
PF: predicated region fallthrough
CT: control target
= control target key end

     0   :  { %vm103_vm0 = vcmask 523264   ;;  %vm289_vm1 = vcmask 257024   ;;  %vm306_vm2 = vcmask 261120   ;;  %vm344_vm3 = vcmask 253952   ;;  %s733_s1 = inlined_call_operand.vmem [shape: bf16[64,32], index: 1, kind: input, shape index: {}]   ;;  %s734_s0 = inlined_call_operand.vmem [shape: bf16[128,64], index: 0, kind: input, shape index: {}]   ;;  %s735_s2 = inlined_call_operand.vmem [shape: bf16[128,32], index: 2, kind: output, shape index: {0}]   ;;  %s736_s3 = inlined_call_operand.vmem [shape: f32[1,1,32], index: 3, kind: output, shape index: {1}]   ;;  %s737_s4 = inlined_call_operand.vmem [shape: f32[1,1,32], index: 4, kind: output, shape index: {2}]  }
   0x1   :  { %v508_v0 = vld [vmem:[%s733_s1] sm:$0xff]   ;;  %v509_v1 = vld [vmem:[%s733_s1 + $0x8] sm:$0xff]   ;;  %v510_v2 = vld [vmem:[%s733_s1 + $0x10] sm:$0xff]  }
   0x2   :  { %476 = vmatprep.subr.bf16.mxu0 %v508_v0  ;;  %500 = vmatprep.subr.bf16.mxu1 %v508_v0  ;;  %v512_v3 = vld [vmem:[%s734_s0] sm:$0xff]   ;;  %v511_v4 = vld [vmem:[%s733_s1 + $0x18] sm:$0xff]   ;;  %v513_v6 = vld [vmem:[%s734_s0 + $0x8] sm:$0xff]  }
   0x3   :  { %477 = vmatpush3.bf16.msra.mxu0 %v508_v0  ;;  %504 = vmatpush3.bf16.msra.mxu1 %v508_v0  ;;  %v516_v5 = vld [vmem:[%s734_s0 + $0x20] sm:$0xff]   ;;  %v517_v7 = vld [vmem:[%s734_s0 + $0x28] sm:$0xff]   ;;  %v514_v8 = vld [vmem:[%s734_s0 + $0x10] sm:$0xff]  }
   0x4   :  { %478 = vmatprep.subr.bf16.mxu0 %v509_v1  ;;  %501 = vmatprep.subr.bf16.mxu1 %v509_v1  ;;  %v518_v9 = vld [vmem:[%s734_s0 + $0x30] sm:$0xff]   ;;  %v515_v10 = vld [vmem:[%s734_s0 + $0x18] sm:$0xff]  }
   0x5   :  { %484 = vmatprep.mubr.msk.bf16.mxu0 %vm103_vm0, %v512_v3  ;;  %492 = vmatprep.mubr.msk.bf16.mxu1 %vm103_vm0, %v516_v5  ;;  %v519_v11 = vld [vmem:[%s734_s0 + $0x38] sm:$0xff]  }
   0x7   :  { %479 = vmatpush3.bf16.msra.mxu0 %v509_v1  ;;  %505 = vmatpush3.bf16.msra.mxu1 %v509_v1 }
   0x8   :  { %480 = vmatprep.subr.bf16.mxu0 %v510_v2  ;;  %502 = vmatprep.subr.bf16.mxu1 %v510_v2 }
   0xb   :  { %481 = vmatpush3.bf16.msra.mxu0 %v510_v2  ;;  %506 = vmatpush3.bf16.msra.mxu1 %v510_v2 }
   0xc   :  { %482 = vmatprep.subr.bf16.mxu0 %v511_v4  ;;  %503 = vmatprep.subr.bf16.mxu1 %v511_v4 }
   0xf   :  { %483 = vmatpush3.bf16.msra.mxu0 %v511_v4  ;;  %507 = vmatpush3.bf16.msra.mxu1 %v511_v4 }
  0x12   :  { %485 = vmatmul.mubr.msk.bf16.vlgmr.msra.gmra.mrb[0].mxu0 %vm103_vm0, %v513_v6  ;;  %493 = vmatmul.mubr.msk.bf16.vlgmr.msra.gmra.mrb[0].mxu1 %vm103_vm0, %v517_v7 }
  0x13   :  { %488 = vmatprep.mubr.msk.bf16.mxu0 %vm103_vm0, %v514_v8  ;;  %496 = vmatprep.mubr.msk.bf16.mxu1 %vm103_vm0, %v518_v9 }
  0x1a   :  { %489 = vmatmul.mubr.msk.bf16.gmra.mrb[4].mxu0 %vm103_vm0, %v515_v10  ;;  %497 = vmatmul.mubr.msk.bf16.gmra.mrb[4].mxu1 %vm103_vm0, %v519_v11 }
  0xe5   :  { %v486_v12 = vpop.f32.mrb[0].mxu0  ;;  %v589_v13 = vpop.f32.mrb[0].mxu1 }
  0xe6   :  { %v450_v14 = vpack.c.bf16 %v486_v12, %v486_v12  ;;  %v162_v15 = vpop.f32.mrb[1].mxu0  ;;  %v458_v16 = vpack.c.bf16 %v589_v13, %v589_v13  ;;  %v593_v17 = vpop.f32.mrb[1].mxu1  ;;  %v348_v22 = vmul.f32 %v486_v12, %v486_v12  ;;  %v310_v33 = vsel %vm306_vm2, %v486_v12, 0.0 }
  0xe7   :  { %v448_v18 = vpack.c.bf16 %v162_v15, %v162_v15  ;;  %v346_v19 = vmul.f32 %v162_v15, %v162_v15  ;;  %v487_v20 = vpop.f32.mrb[2].mxu0  ;;  %v595_v21 = vpop.f32.mrb[2].mxu1  ;;  %v307_v26 = vsel %vm306_vm2, %v162_v15, 0.0  ;;  %v456_v32 = vpack.c.bf16 %v593_v17, %v593_v17 }
  0xe8   :  { %292 = vst.msk [vmem:[%s735_s2 + $0x8] sm:$0xf] %vm289_vm1, %v450_v14  ;;  %v451_v23 = vpack.c.bf16 %v487_v20, %v487_v20  ;;  %v165_v24 = vpop.f32.mrb[3].mxu0  ;;  %300 = vst.msk [vmem:[%s735_s2 + $0x28] sm:$0xf] %vm289_vm1, %v458_v16  ;;  %v605_v25 = vpop.f32.mrb[3].mxu1  ;;  %v349_v30 = vmul.f32 %v487_v20, %v487_v20  ;;  %v459_v36 = vpack.c.bf16 %v595_v21, %v595_v21 }
  0xe9   :  { %290 = vst.msk [vmem:[%s735_s2] sm:$0xf] %vm289_vm1, %v448_v18  ;;  %v449_v27 = vpack.c.bf16 %v165_v24, %v165_v24  ;;  %v308_v28 = vsel %vm306_vm2, %v165_v24, 0.0  ;;  %v347_v29 = vmul.f32 %v165_v24, %v165_v24  ;;  %v362_v34 = vsel %vm306_vm2, %v346_v19, 0.0  ;;  %298 = vst.msk [vmem:[%s735_s2 + $0x20] sm:$0xf] %vm289_vm1, %v456_v32 }
  0xea   :  { %293 = vst.msk [vmem:[%s735_s2 + $0xc] sm:$0xf] %vm289_vm1, %v451_v23  ;;  %v309_v31 = vadd.f32 %v308_v28, %v307_v26  ;;  %v365_v39 = vsel %vm306_vm2, %v348_v22, 0.0  ;;  %301 = vst.msk [vmem:[%s735_s2 + $0x2c] sm:$0xf] %vm289_vm1, %v459_v36  ;;  %v457_v41 = vpack.c.bf16 %v605_v25, %v605_v25  ;;  %v312_v43 = vsel %vm306_vm2, %v487_v20, 0.0 }
  0xeb   :  { %291 = vst.msk [vmem:[%s735_s2 + $0x4] sm:$0xf] %vm289_vm1, %v449_v27  ;;  %v363_v35 = vsel %vm306_vm2, %v347_v29, 0.0  ;;  %v367_v44 = vsel %vm306_vm2, %v349_v30, 0.0  ;;  %v354_v3 = vmul.f32 %v593_v17, %v593_v17  ;;  %v322_v14 = vsel %vm306_vm2, %v593_v17, 0.0 }
  0xec   :  { %v311_v37 = vadd.f32 %v310_v33, %v309_v31  ;;  %v364_v38 = vadd.f32 %v363_v35, %v362_v34  ;;  %299 = vst.msk [vmem:[%s735_s2 + $0x24] sm:$0xf] %vm289_vm1, %v457_v41  ;;  %v355_v23 = vmul.f32 %v605_v25, %v605_v25  ;;  %v356_v26 = vmul.f32 %v589_v13, %v589_v13 }
  0xed   :  { %v490_v40 = vpop.f32.mrb[4].mxu0  ;;  %v639_v42 = vpop.f32.mrb[4].mxu1  ;;  %v377_v22 = vsel %vm306_vm2, %v354_v3, 0.0  ;;  %v324_v27 = vsel %vm306_vm2, %v605_v25, 0.0  ;;  %v326_v30 = vsel %vm306_vm2, %v589_v13, 0.0  ;;  %v357_v31 = vmul.f32 %v595_v21, %v595_v21 }
  0xee   :  { %v366_v45 = vadd.f32 %v365_v39, %v364_v38  ;;  %v454_v46 = vpack.c.bf16 %v490_v40, %v490_v40  ;;  %v178_v47 = vpop.f32.mrb[5].mxu0  ;;  %v210_v48 = vpop.f32.mrb[5].mxu1  ;;  %v313_v50 = vadd.f32 %v312_v43, %v311_v37  ;;  %v352_v62 = vmul.f32 %v490_v40, %v490_v40 }
  0xef   :  { %v452_v49 = vpack.c.bf16 %v178_v47, %v178_v47  ;;  %v314_v51 = vsel %vm306_vm2, %v178_v47, 0.0  ;;  %v350_v52 = vmul.f32 %v178_v47, %v178_v47  ;;  %v491_v53 = vpop.f32.mrb[6].mxu0  ;;  %v648_v54 = vpop.f32.mrb[6].mxu1  ;;  %v462_v4 = vpack.c.bf16 %v639_v42, %v639_v42 }
  0xf0   :  { %296 = vst.msk [vmem:[%s735_s2 + $0x18] sm:$0xf] %vm289_vm1, %v454_v46  ;;  %v368_v55 = vadd.f32 %v367_v44, %v366_v45  ;;  %v455_v56 = vpack.c.bf16 %v491_v53, %v491_v53  ;;  %v181_v57 = vpop.f32.mrb[7].mxu0  ;;  %v213_v58 = vpop.f32.mrb[7].mxu1  ;;  %v315_v59 = vadd.f32 %v314_v51, %v313_v50  ;;  %v318_v5 = vsel %vm306_vm2, %v490_v40, 0.0 }
  0xf1   :  { %294 = vst.msk [vmem:[%s735_s2 + $0x10] sm:$0xf] %vm289_vm1, %v452_v49  ;;  %v369_v60 = vsel %vm306_vm2, %v350_v52, 0.0  ;;  %v453_v61 = vpack.c.bf16 %v181_v57, %v181_v57  ;;  %v316_v0 = vsel %vm306_vm2, %v181_v57, 0.0  ;;  %v351_v1 = vmul.f32 %v181_v57, %v181_v57  ;;  %304 = vst.msk [vmem:[%s735_s2 + $0x38] sm:$0xf] %vm289_vm1, %v462_v4 }
  0xf2   :  { %v370_v63 = vadd.f32 %v369_v60, %v368_v55  ;;  %297 = vst.msk [vmem:[%s735_s2 + $0x1c] sm:$0xf] %vm289_vm1, %v455_v56  ;;  %v317_v2 = vadd.f32 %v316_v0, %v315_v59  ;;  %v353_v6 = vmul.f32 %v491_v53, %v491_v53  ;;  %v460_v8 = vpack.c.bf16 %v210_v48, %v210_v48 }
  0xf3   :  { %295 = vst.msk [vmem:[%s735_s2 + $0x14] sm:$0xf] %vm289_vm1, %v453_v61  ;;  %v371_v7 = vsel %vm306_vm2, %v351_v1, 0.0  ;;  %v373_v11 = vsel %vm306_vm2, %v352_v62, 0.0  ;;  %v320_v12 = vsel %vm306_vm2, %v491_v53, 0.0  ;;  %v463_v15 = vpack.c.bf16 %v648_v54, %v648_v54 }
  0xf4   :  { %v319_v9 = vadd.f32 %v318_v5, %v317_v2  ;;  %v372_v10 = vadd.f32 %v371_v7, %v370_v63  ;;  %302 = vst.msk [vmem:[%s735_s2 + $0x30] sm:$0xf] %vm289_vm1, %v460_v8  ;;  %v461_v19 = vpack.c.bf16 %v213_v58, %v213_v58  ;;  %v375_v20 = vsel %vm306_vm2, %v353_v6, 0.0 }
  0xf5   :  { %305 = vst.msk [vmem:[%s735_s2 + $0x3c] sm:$0xf] %vm289_vm1, %v463_v15  ;;  %v379_v32 = vsel %vm306_vm2, %v355_v23, 0.0  ;;  %v358_v33 = vmul.f32 %v210_v48, %v210_v48  ;;  %v381_v36 = vsel %vm306_vm2, %v356_v26, 0.0  ;;  %v328_v37 = vsel %vm306_vm2, %v595_v21, 0.0 }
  0xf6   :  { %v374_v16 = vadd.f32 %v373_v11, %v372_v10  ;;  %v321_v18 = vadd.f32 %v320_v12, %v319_v9  ;;  %303 = vst.msk [vmem:[%s735_s2 + $0x34] sm:$0xf] %vm289_vm1, %v461_v19  ;;  %v330_v25 = vsel %vm306_vm2, %v210_v48, 0.0  ;;  %v383_v40 = vsel %vm306_vm2, %v357_v31, 0.0 }
  0xf7   :  { %v385_v13 = vsel %vm306_vm2, %v358_v33, 0.0  ;;  %v359_v41 = vmul.f32 %v213_v58, %v213_v58  ;;  %v360_v45 = vmul.f32 %v639_v42, %v639_v42  ;;  %v332_v46 = vsel %vm306_vm2, %v213_v58, 0.0 }
  0xf8   :  { %v323_v17 = vadd.f32 %v322_v14, %v321_v18  ;;  %v376_v24 = vadd.f32 %v375_v20, %v374_v16  ;;  %v334_v21 = vsel %vm306_vm2, %v639_v42, 0.0  ;;  %v361_v48 = vmul.f32 %v648_v54, %v648_v54 }
  0xf9   :  { %v387_v50 = vsel %vm306_vm2, %v359_v41, 0.0  ;;  %v389_v53 = vsel %vm306_vm2, %v360_v45, 0.0  ;;  %v336_v55 = vsel %vm306_vm2, %v648_v54, 0.0 }
  0xfa   :  { %v378_v28 = vadd.f32 %v377_v22, %v376_v24  ;;  %v325_v29 = vadd.f32 %v324_v27, %v323_v17  ;;  %v391_v58 = vsel %vm306_vm2, %v361_v48, 0.0 }
  0xfc   :  { %v327_v34 = vadd.f32 %v326_v30, %v325_v29  ;;  %v380_v35 = vadd.f32 %v379_v32, %v378_v28 }
  0xfe   :  { %v382_v38 = vadd.f32 %v381_v36, %v380_v35  ;;  %v329_v39 = vadd.f32 %v328_v37, %v327_v34 }
 0x100   :  { %v331_v43 = vadd.f32 %v330_v25, %v329_v39  ;;  %v384_v44 = vadd.f32 %v383_v40, %v382_v38 }
 0x102   :  { %v386_v47 = vadd.f32 %v385_v13, %v384_v44  ;;  %v333_v49 = vadd.f32 %v332_v46, %v331_v43 }
 0x104   :  { %v335_v51 = vadd.f32 %v334_v21, %v333_v49  ;;  %v388_v52 = vadd.f32 %v387_v50, %v386_v47 }
 0x106   :  { %v337_v56 = vadd.f32 %v336_v55, %v335_v51  ;;  %v390_v57 = vadd.f32 %v389_v53, %v388_v52 }
 0x108   :  { %v338_v59 = vrot.slane %v337_v56, 4  ;;  %v392_v60 = vadd.f32 %v391_v58, %v390_v57 }
 0x10a   :  { %v339_v61 = vadd.f32 %v338_v59, %v337_v56  ;;  %v393_v42 = vrot.slane %v392_v60, 4 }
 0x10c   :  { %v340_v62 = vrot.slane %v339_v61, 2  ;;  %v394_v63 = vadd.f32 %v393_v42, %v392_v60 }
 0x10e   :  { %v341_v0 = vadd.f32 %v340_v62, %v339_v61  ;;  %v395_v1 = vrot.slane %v394_v63, 2 }
 0x110   :  { %v342_v2 = vrot.slane %v341_v0, 1  ;;  %v396_v3 = vadd.f32 %v395_v1, %v394_v63 }
 0x112   :  { %v343_v4 = vadd.f32 %v342_v2, %v341_v0  ;;  %v397_v5 = vrot.slane %v396_v3, 1 }
 0x114   :  { %345 = vst.msk [vmem:[%s736_s3] sm:$0x1] %vm344_vm3, %v343_v4  ;;  %v398_v54 = vadd.f32 %v397_v5, %v396_v3 }
 0x116   :  { %399 = vst.msk [vmem:[%s737_s4] sm:$0x1] %vm344_vm3, %v398_v54 }

// kernel: _lambda_.37
= control target key start
LH: loop header
LB: loop body
LE: loop exit
PB: predicated region body
PF: predicated region fallthrough
CT: control target
= control target key end

     0   :  { %v2427_v0 = vmov 0   ;;  %vm954_vm0 = vcmask 64512   ;;  %vm1051_vm1 = vcmask 1043456   ;;  %vm1697_vm2 = vcmask 23552   ;;  %s3312_s1 = inlined_call_operand.vmem [shape: bf16[392,3], index: 1, kind: input, shape index: {}]   ;;  %s3313_s0 = inlined_call_operand.vmem [shape: bf16[512,392], index: 0, kind: input, shape index: {}]   ;;  %s3314_s2 = inlined_call_operand.vmem [shape: f32[1,3], index: 2, kind: input, shape index: {}]   ;;  %s3315_s3 = inlined_call_operand.vmem [shape: f32[512,3], index: 3, kind: output, shape index: {}]  }
   0x1   :  { %1055 = vmatprep.subr.bf16.mxu1 %v2427_v0  ;;  %v2081_v1 = vld [vmem:[%s3312_s1] sm:$0xff]   ;;  %1344 = vmatprep.subr.bf16.mxu0 %v2427_v0  ;;  %v2082_v2 = vld [vmem:[%s3312_s1 + $0x8] sm:$0xff]   ;;  %v2083_v3 = vld [vmem:[%s3312_s1 + $0x10] sm:$0xff]  }
   0x2   :  { %1056 = vmatpush1.bf16.msra.mxu1 %v2081_v1  ;;  %v2088_v4 = vld [vmem:[%s3312_s1 + $0x80] sm:$0xff]   ;;  %v2090_v5 = vld [vmem:[%s3312_s1 + $0x88] sm:$0xff]   ;;  %v2084_v6 = vld [vmem:[%s3312_s1 + $0x18] sm:$0xff]  }
   0x3   :  { %1057 = vmatprep.subr.bf16.mxu1 %v2427_v0  ;;  %1345 = vmatpush1.bf16.msra.mxu0 %v2088_v4  ;;  %v2092_v7 = vld [vmem:[%s3312_s1 + $0x90] sm:$0xff]   ;;  %v2085_v8 = vld [vmem:[%s3312_s1 + $0x20] sm:$0xff]   ;;  %v2094_v9 = vld [vmem:[%s3312_s1 + $0x98] sm:$0xff]  }
   0x4   :  { %1346 = vmatprep.subr.bf16.mxu0 %v2427_v0  ;;  %v2086_v10 = vld [vmem:[%s3312_s1 + $0x28] sm:$0xff]   ;;  %v2096_v11 = vld [vmem:[%s3312_s1 + $0xa0] sm:$0xff]   ;;  %v2087_v12 = vld [vmem:[%s3312_s1 + $0x30] sm:$0xff]  }
   0x5   :  { %v2098_v13 = vld [vmem:[%s3312_s1 + $0xa8] sm:$0xff]   ;;  %v2089_v15 = vld [vmem:[%s3312_s1 + $0x38] sm:$0xff]   ;;  %v2111_v16 = vld [vmem:[%s3313_s0 + $0x4] ss:$16 sps:$4 sm:$0xff]  }
   0x6   :  { %1058 = vmatpush1.bf16.msra.mxu1 %v2082_v2  ;;  %v2108_v14 = vld [vmem:[%s3313_s0 + $0xc] ss:$16 sps:$4 sm:$0xff]   ;;  %v2100_v17 = vld [vmem:[%s3312_s1 + $0xb0] sm:$0xff]   ;;  %1087 = vmatprep.mubr.bf16.mxu1 %v2111_v16  ;;  %v2091_v18 = vld [vmem:[%s3312_s1 + $0x40] sm:$0xff]  }
   0x7   :  { %1059 = vmatprep.subr.bf16.mxu1 %v2427_v0  ;;  %1347 = vmatpush1.bf16.msra.mxu0 %v2090_v5  ;;  %v2102_v19 = vld [vmem:[%s3312_s1 + $0xb8] sm:$0xff]   ;;  %v2093_v20 = vld [vmem:[%s3312_s1 + $0x48] sm:$0xff]   ;;  %v2104_v21 = vld [vmem:[%s3312_s1 + $0xc0] ss:$0 sps:$4 sm:$0xff]  }
   0x8   :  { %1348 = vmatprep.subr.bf16.mxu0 %v2427_v0  ;;  %1920 = vmatprep.mubr.msk.bf16.mxu0 %vm954_vm0, %v2108_v14  ;;  %v2095_v22 = vld [vmem:[%s3312_s1 + $0x50] sm:$0xff]   ;;  %v1053_v23 = vsel %vm1051_vm1, %v2104_v21, 0  ;;  %v2106_v24 = vld [vmem:[%s3313_s0 + $0x8] ss:$16 sps:$4 sm:$0xff]   ;;  %v2112_v25 = vld [vmem:[%s3313_s0 + $0x2c] ss:$16 sps:$4 sm:$0xff]  }
   0x9   :  { %v2097_v26 = vld [vmem:[%s3312_s1 + $0x58] sm:$0xff]   ;;  %v2099_v27 = vld [vmem:[%s3312_s1 + $0x60] sm:$0xff]   ;;  %v2101_v30 = vld [vmem:[%s3312_s1 + $0x68] sm:$0xff]  }
   0xa   :  { %1060 = vmatpush1.bf16.msra.mxu1 %v2083_v3  ;;  %v2116_v28 = vld [vmem:[%s3313_s0 + $0x28] ss:$16 sps:$4 sm:$0xff]   ;;  %v2118_v29 = vld [vmem:[%s3313_s0 + $0x4c] ss:$16 sps:$4 sm:$0xff]   ;;  %v2103_v31 = vld [vmem:[%s3312_s1 + $0x70] sm:$0xff]  }
   0xb   :  { %1061 = vmatprep.subr.bf16.mxu1 %v2427_v0  ;;  %1349 = vmatpush1.bf16.msra.mxu0 %v2092_v7  ;;  %v2122_v32 = vld [vmem:[%s3313_s0 + $0x48] ss:$16 sps:$4 sm:$0xff]   ;;  %v2124_v33 = vld [vmem:[%s3313_s0 + $0x6c] ss:$16 sps:$4 sm:$0xff]   ;;  %v2109_v35 = vld [vmem:[%s3313_s0] ss:$16 sps:$4 sm:$0xff]  }
   0xc   :  { %1350 = vmatprep.subr.bf16.mxu0 %v2427_v0  ;;  %v2105_v34 = vld [vmem:[%s3312_s1 + $0x78] sm:$0xff]   ;;  %v2114_v36 = vld [vmem:[%s3313_s0 + $0x24] ss:$16 sps:$4 sm:$0xff]   ;;  %v2117_v39 = vld [vmem:[%s3313_s0 + $0x20] ss:$16 sps:$4 sm:$0xff]  }
   0xd   :  { %v2128_v37 = vld [vmem:[%s3313_s0 + $0x68] ss:$16 sps:$4 sm:$0xff]   ;;  %v2130_v38 = vld [vmem:[%s3313_s0 + $0x8c] ss:$16 sps:$4 sm:$0xff]   ;;  %v2120_v40 = vld [vmem:[%s3313_s0 + $0x44] ss:$16 sps:$4 sm:$0xff]  }
   0xe   :  { %1062 = vmatpush1.bf16.msra.mxu1 %v2084_v6  ;;  %v2134_v41 = vld [vmem:[%s3313_s0 + $0x88] ss:$16 sps:$4 sm:$0xff]   ;;  %v2136_v42 = vld [vmem:[%s3313_s0 + $0xac] ss:$16 sps:$4 sm:$0xff]   ;;  %v2123_v43 = vld [vmem:[%s3313_s0 + $0x40] ss:$16 sps:$4 sm:$0xff]  }
   0xf   :  { %1063 = vmatprep.subr.bf16.mxu1 %v2427_v0  ;;  %1351 = vmatpush1.bf16.msra.mxu0 %v2094_v9  ;;  %v2126_v44 = vld [vmem:[%s3313_s0 + $0x64] ss:$16 sps:$4 sm:$0xff]   ;;  %v2140_v45 = vld [vmem:[%s3313_s0 + $0xa8] ss:$16 sps:$4 sm:$0xff]   ;;  %v2142_v46 = vld [vmem:[%s3313_s0 + $0xcc] ss:$16 sps:$4 sm:$0xff]  }
  0x10   :  { %1352 = vmatprep.subr.bf16.mxu0 %v2427_v0  ;;  %v2129_v47 = vld [vmem:[%s3313_s0 + $0x60] ss:$16 sps:$4 sm:$0xff]   ;;  %v2132_v48 = vld [vmem:[%s3313_s0 + $0x84] ss:$16 sps:$4 sm:$0xff]   ;;  %v2146_v49 = vld [vmem:[%s3313_s0 + $0xc8] ss:$16 sps:$4 sm:$0xff]  }
  0x11   :  { %v2148_v50 = vld [vmem:[%s3313_s0 + $0xec] ss:$16 sps:$4 sm:$0xff]   ;;  %v2135_v51 = vld [vmem:[%s3313_s0 + $0x80] ss:$16 sps:$4 sm:$0xff]   ;;  %v2138_v52 = vld [vmem:[%s3313_s0 + $0xa4] ss:$16 sps:$4 sm:$0xff]  }
  0x12   :  { %1064 = vmatpush1.bf16.msra.mxu1 %v2085_v8  ;;  %v2152_v53 = vld [vmem:[%s3313_s0 + $0xe8] ss:$16 sps:$4 sm:$0xff]   ;;  %v2154_v54 = vld [vmem:[%s3313_s0 + $0x10c] ss:$16 sps:$4 sm:$0xff]   ;;  %v2141_v55 = vld [vmem:[%s3313_s0 + $0xa0] ss:$16 sps:$4 sm:$0xff]  }
  0x13   :  { %1065 = vmatprep.subr.bf16.mxu1 %v2427_v0  ;;  %1353 = vmatpush1.bf16.msra.mxu0 %v2096_v11  ;;  %v2144_v56 = vld [vmem:[%s3313_s0 + $0xc4] ss:$16 sps:$4 sm:$0xff]   ;;  %v2158_v57 = vld [vmem:[%s3313_s0 + $0x108] ss:$16 sps:$4 sm:$0xff]   ;;  %v2160_v58 = vld [vmem:[%s3313_s0 + $0x12c] ss:$16 sps:$4 sm:$0xff]  }
  0x14   :  { %1354 = vmatprep.subr.bf16.mxu0 %v2427_v0  ;;  %v2147_v59 = vld [vmem:[%s3313_s0 + $0xc0] ss:$16 sps:$4 sm:$0xff]   ;;  %v2150_v60 = vld [vmem:[%s3313_s0 + $0xe4] ss:$16 sps:$4 sm:$0xff]   ;;  %v2164_v61 = vld [vmem:[%s3313_s0 + $0x128] ss:$16 sps:$4 sm:$0xff]  }
  0x15   :  { %v2166_v62 = vld [vmem:[%s3313_s0 + $0x14c] ss:$16 sps:$4 sm:$0xff]   ;;  %v2153_v63 = vld [vmem:[%s3313_s0 + $0xe0] ss:$16 sps:$4 sm:$0xff]   ;;  %v2170_v1 = vld [vmem:[%s3313_s0 + $0x148] ss:$16 sps:$4 sm:$0xff]  }
  0x16   :  { %1066 = vmatpush1.bf16.msra.mxu1 %v2086_v10  ;;  %v2172_v2 = vld [vmem:[%s3313_s0 + $0x16c] ss:$16 sps:$4 sm:$0xff]   ;;  %v2159_v3 = vld [vmem:[%s3313_s0 + $0x100] ss:$16 sps:$4 sm:$0xff]   ;;  %v2162_v4 = vld [vmem:[%s3313_s0 + $0x124] ss:$16 sps:$4 sm:$0xff]  }
  0x17   :  { %1067 = vmatprep.subr.bf16.mxu1 %v2427_v0  ;;  %1355 = vmatpush1.bf16.msra.mxu0 %v2098_v13  ;;  %v2176_v5 = vld [vmem:[%s3313_s0 + $0x168] ss:$16 sps:$4 sm:$0xff]   ;;  %v2178_v6 = vld [vmem:[%s3313_s0 + $0x18c] ss:$16 sps:$4 sm:$0xff]   ;;  %v2165_v7 = vld [vmem:[%s3313_s0 + $0x120] ss:$16 sps:$4 sm:$0xff]  }
  0x18   :  { %1356 = vmatprep.subr.bf16.mxu0 %v2427_v0  ;;  %v2168_v8 = vld [vmem:[%s3313_s0 + $0x144] ss:$16 sps:$4 sm:$0xff]   ;;  %v2182_v9 = vld [vmem:[%s3313_s0 + $0x188] ss:$16 sps:$4 sm:$0xff]   ;;  %v2184_v10 = vld [vmem:[%s3313_s0 + $0x1ac] ss:$16 sps:$4 sm:$0xff]  }
  0x19   :  { %v2171_v11 = vld [vmem:[%s3313_s0 + $0x140] ss:$16 sps:$4 sm:$0xff]   ;;  %v2188_v13 = vld [vmem:[%s3313_s0 + $0x1a8] ss:$16 sps:$4 sm:$0xff]   ;;  %v2190_v14 = vld [vmem:[%s3313_s0 + $0x1cc] ss:$16 sps:$4 sm:$0xff]  }
  0x1a   :  { %1068 = vmatpush1.bf16.msra.mxu1 %v2087_v12  ;;  %v2174_v12 = vld [vmem:[%s3313_s0 + $0x164] ss:$16 sps:$4 sm:$0xff]   ;;  %v2200_v21 = vld [vmem:[%s3313_s0 + $0x1e8] ss:$16 sps:$4 sm:$0xff]  }
  0x1b   :  { %1069 = vmatprep.subr.bf16.mxu1 %v2427_v0  ;;  %1357 = vmatpush1.bf16.msra.mxu0 %v2100_v17  ;;  %v2180_v16 = vld [vmem:[%s3313_s0 + $0x184] ss:$16 sps:$4 sm:$0xff]   ;;  %v2194_v17 = vld [vmem:[%s3313_s0 + $0x1c8] ss:$16 sps:$4 sm:$0xff]  }
  0x1c   :  { %1358 = vmatprep.subr.bf16.mxu0 %v2427_v0 }
  0x1e   :  { %1070 = vmatpush1.bf16.msra.mxu1 %v2089_v15  ;;  %v2177_v15 = vld [vmem:[%s3313_s0 + $0x160] ss:$16 sps:$4 sm:$0xff]  }
  0x1f   :  { %1071 = vmatprep.subr.bf16.mxu1 %v2427_v0  ;;  %1359 = vmatpush1.bf16.msra.mxu0 %v2102_v19  ;;  %v2183_v19 = vld [vmem:[%s3313_s0 + $0x180] ss:$16 sps:$4 sm:$0xff]  }
  0x20   :  { %1360 = vmatprep.subr.bf16.mxu0 %v2427_v0 }
  0x22   :  { %1072 = vmatpush1.bf16.msra.mxu1 %v2091_v18  ;;  %v2196_v18 = vld [vmem:[%s3313_s0 + $0x1ec] ss:$16 sps:$4 sm:$0xff]  }
  0x23   :  { %1073 = vmatprep.subr.bf16.mxu1 %v2427_v0  ;;  %1361 = vmatpush1.bf16.msra.mxu0 %v1053_v23  ;;  %v2189_v23 = vld [vmem:[%s3313_s0 + $0x1a0] ss:$16 sps:$4 sm:$0xff]  }
  0x26   :  { %1074 = vmatpush1.bf16.msra.mxu1 %v2093_v20  ;;  %1377 = vmatmul.mubr.bf16.vlgmr.msra.gmra.mrb[0].mxu0 %v2106_v24  ;;  %v2186_v20 = vld [vmem:[%s3313_s0 + $0x1a4] ss:$16 sps:$4 sm:$0xff]  }
  0x27   :  { %1075 = vmatprep.subr.bf16.mxu1 %v2427_v0  ;;  %1921 = vmatprep.mubr.msk.bf16.mxu0 %vm954_vm0, %v2112_v25  ;;  %v2192_v24 = vld [vmem:[%s3313_s0 + $0x1c4] ss:$16 sps:$4 sm:$0xff]   ;;  %v2206_v25 = vld [vmem:[%s3313_s0 + $0x208] ss:$16 sps:$4 sm:$0xff]  }
  0x2a   :  { %1076 = vmatpush1.bf16.msra.mxu1 %v2095_v22  ;;  %v2202_v22 = vld [vmem:[%s3313_s0 + $0x20c] ss:$16 sps:$4 sm:$0xff]  }
  0x2b   :  { %1077 = vmatprep.subr.bf16.mxu1 %v2427_v0 }
  0x2e   :  { %1078 = vmatpush1.bf16.msra.mxu1 %v2097_v26  ;;  %1385 = vmatmul.mubr.bf16.gmra.mrb[4].mxu0 %v2116_v28  ;;  %v2208_v26 = vld [vmem:[%s3313_s0 + $0x22c] ss:$16 sps:$4 sm:$0xff]   ;;  %v2198_v28 = vld [vmem:[%s3313_s0 + $0x1e4] ss:$16 sps:$4 sm:$0xff]  }
  0x2f   :  { %1079 = vmatprep.subr.bf16.mxu1 %v2427_v0  ;;  %1922 = vmatprep.mubr.msk.bf16.mxu0 %vm954_vm0, %v2118_v29  ;;  %v2212_v29 = vld [vmem:[%s3313_s0 + $0x228] ss:$16 sps:$4 sm:$0xff]  }
  0x32   :  { %1080 = vmatpush1.bf16.msra.mxu1 %v2099_v27  ;;  %v2195_v27 = vld [vmem:[%s3313_s0 + $0x1c0] ss:$16 sps:$4 sm:$0xff]  }
  0x33   :  { %1081 = vmatprep.subr.bf16.mxu1 %v2427_v0 }
  0x36   :  { %1082 = vmatpush1.bf16.msra.mxu1 %v2101_v30  ;;  %1393 = vmatmul.mubr.bf16.gmra.mrb[8].mxu0 %v2122_v32  ;;  %v2214_v30 = vld [vmem:[%s3313_s0 + $0x24c] ss:$16 sps:$4 sm:$0xff]   ;;  %v2204_v32 = vld [vmem:[%s3313_s0 + $0x204] ss:$16 sps:$4 sm:$0xff]  }
  0x37   :  { %1083 = vmatprep.subr.bf16.mxu1 %v2427_v0  ;;  %1923 = vmatprep.mubr.msk.bf16.mxu0 %vm954_vm0, %v2124_v33  ;;  %v2218_v33 = vld [vmem:[%s3313_s0 + $0x248] ss:$16 sps:$4 sm:$0xff]  }
  0x3a   :  { %1084 = vmatpush1.bf16.msra.mxu1 %v2103_v31  ;;  %v2201_v31 = vld [vmem:[%s3313_s0 + $0x1e0] ss:$16 sps:$4 sm:$0xff]  }
  0x3b   :  { %1085 = vmatprep.subr.bf16.mxu1 %v2427_v0  ;;  %v2156_v0 = vld [vmem:[%s3313_s0 + $0x104] ss:$16 sps:$4 sm:$0xff]  }
  0x3e   :  { %1086 = vmatpush1.bf16.msra.mxu1 %v2105_v34  ;;  %1401 = vmatmul.mubr.bf16.gmra.mrb[12].mxu0 %v2128_v37  ;;  %v2220_v34 = vld [vmem:[%s3313_s0 + $0x26c] ss:$16 sps:$4 sm:$0xff]   ;;  %v2224_v37 = vld [vmem:[%s3313_s0 + $0x268] ss:$16 sps:$4 sm:$0xff]  }
  0x3f   :  { %1924 = vmatprep.mubr.msk.bf16.mxu0 %vm954_vm0, %v2130_v38  ;;  %v2226_v38 = vld [vmem:[%s3313_s0 + $0x28c] ss:$16 sps:$4 sm:$0xff]  }
  0x41   :  { %1088 = vmatmul.mubr.bf16.vlgmr.msra.gmra.mrb[0].mxu1 %v2109_v35  ;;  %v2207_v35 = vld [vmem:[%s3313_s0 + $0x200] ss:$16 sps:$4 sm:$0xff]  }
  0x42   :  { %1095 = vmatprep.mubr.bf16.mxu1 %v2114_v36  ;;  %v2210_v36 = vld [vmem:[%s3313_s0 + $0x224] ss:$16 sps:$4 sm:$0xff]  }
  0x46   :  { %1409 = vmatmul.mubr.bf16.gmra.mrb[16].mxu0 %v2134_v41  ;;  %v2230_v41 = vld [vmem:[%s3313_s0 + $0x288] ss:$16 sps:$4 sm:$0xff]  }
  0x47   :  { %1925 = vmatprep.mubr.msk.bf16.mxu0 %vm954_vm0, %v2136_v42  ;;  %v2232_v42 = vld [vmem:[%s3313_s0 + $0x2ac] ss:$16 sps:$4 sm:$0xff]  }
  0x49   :  { %1096 = vmatmul.mubr.bf16.gmra.mrb[4].mxu1 %v2117_v39  ;;  %v2213_v39 = vld [vmem:[%s3313_s0 + $0x220] ss:$16 sps:$4 sm:$0xff]  }
  0x4a   :  { %1103 = vmatprep.mubr.bf16.mxu1 %v2120_v40  ;;  %v2216_v40 = vld [vmem:[%s3313_s0 + $0x244] ss:$16 sps:$4 sm:$0xff]  }
  0x4e   :  { %1417 = vmatmul.mubr.bf16.gmra.mrb[20].mxu0 %v2140_v45  ;;  %v2236_v45 = vld [vmem:[%s3313_s0 + $0x2a8] ss:$16 sps:$4 sm:$0xff]  }
  0x4f   :  { %1926 = vmatprep.mubr.msk.bf16.mxu0 %vm954_vm0, %v2142_v46  ;;  %v2238_v46 = vld [vmem:[%s3313_s0 + $0x2cc] ss:$16 sps:$4 sm:$0xff]  }
  0x51   :  { %1104 = vmatmul.mubr.bf16.gmra.mrb[8].mxu1 %v2123_v43  ;;  %v2219_v43 = vld [vmem:[%s3313_s0 + $0x240] ss:$16 sps:$4 sm:$0xff]  }
  0x52   :  { %1111 = vmatprep.mubr.bf16.mxu1 %v2126_v44  ;;  %v2222_v44 = vld [vmem:[%s3313_s0 + $0x264] ss:$16 sps:$4 sm:$0xff]  }
  0x56   :  { %1425 = vmatmul.mubr.bf16.gmra.mrb[24].mxu0 %v2146_v49  ;;  %v2242_v49 = vld [vmem:[%s3313_s0 + $0x2c8] ss:$16 sps:$4 sm:$0xff]  }
  0x57   :  { %1927 = vmatprep.mubr.msk.bf16.mxu0 %vm954_vm0, %v2148_v50  ;;  %v2244_v50 = vld [vmem:[%s3313_s0 + $0x2ec] ss:$16 sps:$4 sm:$0xff]  }
  0x59   :  { %1112 = vmatmul.mubr.bf16.gmra.mrb[12].mxu1 %v2129_v47  ;;  %v2225_v47 = vld [vmem:[%s3313_s0 + $0x260] ss:$16 sps:$4 sm:$0xff]  }
  0x5a   :  { %1119 = vmatprep.mubr.bf16.mxu1 %v2132_v48  ;;  %v2228_v48 = vld [vmem:[%s3313_s0 + $0x284] ss:$16 sps:$4 sm:$0xff]  }
  0x5e   :  { %1433 = vmatmul.mubr.bf16.gmra.mrb[28].mxu0 %v2152_v53  ;;  %v2248_v53 = vld [vmem:[%s3313_s0 + $0x2e8] ss:$16 sps:$4 sm:$0xff]  }
  0x5f   :  { %1928 = vmatprep.mubr.msk.bf16.mxu0 %vm954_vm0, %v2154_v54  ;;  %v2250_v54 = vld [vmem:[%s3313_s0 + $0x30c] ss:$16 sps:$4 sm:$0xff]  }
  0x61   :  { %1120 = vmatmul.mubr.bf16.gmra.mrb[16].mxu1 %v2135_v51  ;;  %v2231_v51 = vld [vmem:[%s3313_s0 + $0x280] ss:$16 sps:$4 sm:$0xff]  }
  0x62   :  { %1127 = vmatprep.mubr.bf16.mxu1 %v2138_v52  ;;  %v2234_v52 = vld [vmem:[%s3313_s0 + $0x2a4] ss:$16 sps:$4 sm:$0xff]  }
  0x66   :  { %1441 = vmatmul.mubr.bf16.gmra.mrb[32].mxu0 %v2158_v57  ;;  %v2254_v57 = vld [vmem:[%s3313_s0 + $0x308] ss:$16 sps:$4 sm:$0xff]  }
  0x67   :  { %1929 = vmatprep.mubr.msk.bf16.mxu0 %vm954_vm0, %v2160_v58  ;;  %v2256_v58 = vld [vmem:[%s3313_s0 + $0x32c] ss:$16 sps:$4 sm:$0xff]  }
  0x69   :  { %1128 = vmatmul.mubr.bf16.gmra.mrb[20].mxu1 %v2141_v55  ;;  %v2237_v55 = vld [vmem:[%s3313_s0 + $0x2a0] ss:$16 sps:$4 sm:$0xff]  }
  0x6a   :  { %1135 = vmatprep.mubr.bf16.mxu1 %v2144_v56  ;;  %v2240_v56 = vld [vmem:[%s3313_s0 + $0x2c4] ss:$16 sps:$4 sm:$0xff]  }
  0x6e   :  { %1449 = vmatmul.mubr.bf16.gmra.mrb[36].mxu0 %v2164_v61  ;;  %v2260_v61 = vld [vmem:[%s3313_s0 + $0x328] ss:$16 sps:$4 sm:$0xff]  }
  0x6f   :  { %1930 = vmatprep.mubr.msk.bf16.mxu0 %vm954_vm0, %v2166_v62  ;;  %v2262_v62 = vld [vmem:[%s3313_s0 + $0x34c] ss:$16 sps:$4 sm:$0xff]  }
  0x71   :  { %1136 = vmatmul.mubr.bf16.gmra.mrb[24].mxu1 %v2147_v59  ;;  %v2243_v59 = vld [vmem:[%s3313_s0 + $0x2c0] ss:$16 sps:$4 sm:$0xff]  }
  0x72   :  { %1143 = vmatprep.mubr.bf16.mxu1 %v2150_v60  ;;  %v2246_v60 = vld [vmem:[%s3313_s0 + $0x2e4] ss:$16 sps:$4 sm:$0xff]  }
  0x76   :  { %1457 = vmatmul.mubr.bf16.gmra.mrb[40].mxu0 %v2170_v1  ;;  %v2266_v1 = vld [vmem:[%s3313_s0 + $0x348] ss:$16 sps:$4 sm:$0xff]  }
  0x77   :  { %1931 = vmatprep.mubr.msk.bf16.mxu0 %vm954_vm0, %v2172_v2  ;;  %v2268_v2 = vld [vmem:[%s3313_s0 + $0x36c] ss:$16 sps:$4 sm:$0xff]  }
  0x79   :  { %1144 = vmatmul.mubr.bf16.gmra.mrb[28].mxu1 %v2153_v63  ;;  %v2249_v63 = vld [vmem:[%s3313_s0 + $0x2e0] ss:$16 sps:$4 sm:$0xff]  }
  0x7a   :  { %1151 = vmatprep.mubr.bf16.mxu1 %v2156_v0  ;;  %v2252_v0 = vld [vmem:[%s3313_s0 + $0x304] ss:$16 sps:$4 sm:$0xff]  }
  0x7e   :  { %1465 = vmatmul.mubr.bf16.gmra.mrb[44].mxu0 %v2176_v5 }
  0x7f   :  { %1932 = vmatprep.mubr.msk.bf16.mxu0 %vm954_vm0, %v2178_v6 }
  0x81   :  { %1152 = vmatmul.mubr.bf16.gmra.mrb[32].mxu1 %v2159_v3  ;;  %v2255_v3 = vld [vmem:[%s3313_s0 + $0x300] ss:$16 sps:$4 sm:$0xff]  }
  0x82   :  { %1159 = vmatprep.mubr.bf16.mxu1 %v2162_v4  ;;  %v2258_v4 = vld [vmem:[%s3313_s0 + $0x324] ss:$16 sps:$4 sm:$0xff]  }
  0x86   :  { %1473 = vmatmul.mubr.bf16.gmra.mrb[48].mxu0 %v2182_v9  ;;  %v2274_v9 = vld [vmem:[%s3313_s0 + $0x38c] ss:$16 sps:$4 sm:$0xff]  }
  0x87   :  { %1933 = vmatprep.mubr.msk.bf16.mxu0 %vm954_vm0, %v2184_v10 }
  0x89   :  { %1160 = vmatmul.mubr.bf16.gmra.mrb[36].mxu1 %v2165_v7  ;;  %v2272_v7 = vld [vmem:[%s3313_s0 + $0x368] ss:$16 sps:$4 sm:$0xff]  }
  0x8a   :  { %1167 = vmatprep.mubr.bf16.mxu1 %v2168_v8 }
  0x8e   :  { %1481 = vmatmul.mubr.bf16.gmra.mrb[52].mxu0 %v2188_v13 }
  0x8f   :  { %1934 = vmatprep.mubr.msk.bf16.mxu0 %vm954_vm0, %v2190_v14 }
  0x91   :  { %1168 = vmatmul.mubr.bf16.gmra.mrb[40].mxu1 %v2171_v11  ;;  %v2261_v11 = vld [vmem:[%s3313_s0 + $0x320] ss:$16 sps:$4 sm:$0xff]  }
  0x92   :  { %1175 = vmatprep.mubr.bf16.mxu1 %v2174_v12  ;;  %v2264_v12 = vld [vmem:[%s3313_s0 + $0x344] ss:$16 sps:$4 sm:$0xff]  }
  0x96   :  { %1489 = vmatmul.mubr.bf16.gmra.mrb[56].mxu0 %v2194_v17  ;;  %v2280_v17 = vld [vmem:[%s3313_s0 + $0x3ac] ss:$16 sps:$4 sm:$0xff]  }
  0x97   :  { %1935 = vmatprep.mubr.msk.bf16.mxu0 %vm954_vm0, %v2196_v18 }
  0x99   :  { %1176 = vmatmul.mubr.bf16.gmra.mrb[44].mxu1 %v2177_v15  ;;  %v2278_v15 = vld [vmem:[%s3313_s0 + $0x388] ss:$16 sps:$4 sm:$0xff]  }
  0x9a   :  { %1183 = vmatprep.mubr.bf16.mxu1 %v2180_v16 }
  0x9e   :  { %1497 = vmatmul.mubr.bf16.gmra.mrb[60].mxu0 %v2200_v21 }
  0x9f   :  { %1936 = vmatprep.mubr.msk.bf16.mxu0 %vm954_vm0, %v2202_v22 }
  0xa1   :  { %1184 = vmatmul.mubr.bf16.gmra.mrb[48].mxu1 %v2183_v19  ;;  %v2267_v19 = vld [vmem:[%s3313_s0 + $0x340] ss:$16 sps:$4 sm:$0xff]  }
  0xa2   :  { %1191 = vmatprep.mubr.bf16.mxu1 %v2186_v20  ;;  %v2270_v20 = vld [vmem:[%s3313_s0 + $0x364] ss:$16 sps:$4 sm:$0xff]  }
  0xa6   :  { %1505 = vmatmul.mubr.bf16.gmra.mrb[64].mxu0 %v2206_v25  ;;  %v2286_v25 = vld [vmem:[%s3313_s0 + $0x3cc] ss:$16 sps:$4 sm:$0xff]  }
  0xa7   :  { %1937 = vmatprep.mubr.msk.bf16.mxu0 %vm954_vm0, %v2208_v26  ;;  %v2933_v26 = vld [vmem:[%s3314_s2] ss:$0 sm:$0xff] }
  0xa9   :  { %1192 = vmatmul.mubr.bf16.gmra.mrb[52].mxu1 %v2189_v23  ;;  %v2284_v23 = vld [vmem:[%s3313_s0 + $0x3a8] ss:$16 sps:$4 sm:$0xff]  }
  0xaa   :  { %1199 = vmatprep.mubr.bf16.mxu1 %v2192_v24 }
  0xae   :  { %1513 = vmatmul.mubr.bf16.gmra.mrb[68].mxu0 %v2212_v29 }
  0xaf   :  { %1938 = vmatprep.mubr.msk.bf16.mxu0 %vm954_vm0, %v2214_v30 }
  0xb1   :  { %1200 = vmatmul.mubr.bf16.gmra.mrb[56].mxu1 %v2195_v27 }
  0xb2   :  { %1207 = vmatprep.mubr.bf16.mxu1 %v2198_v28 }
  0xb6   :  { %1521 = vmatmul.mubr.bf16.gmra.mrb[72].mxu0 %v2218_v33  ;;  %v2276_v33 = vld [vmem:[%s3313_s0 + $0x384] ss:$16 sps:$4 sm:$0xff]  }
  0xb7   :  { %1939 = vmatprep.mubr.msk.bf16.mxu0 %vm954_vm0, %v2220_v34 }
  0xb9   :  { %1208 = vmatmul.mubr.bf16.gmra.mrb[60].mxu1 %v2201_v31  ;;  %v2273_v31 = vld [vmem:[%s3313_s0 + $0x360] ss:$16 sps:$4 sm:$0xff]  }
  0xba   :  { %1215 = vmatprep.mubr.bf16.mxu1 %v2204_v32 }
  0xbe   :  { %1529 = vmatmul.mubr.bf16.gmra.mrb[76].mxu0 %v2224_v37 }
  0xbf   :  { %1940 = vmatprep.mubr.msk.bf16.mxu0 %vm954_vm0, %v2226_v38 }
  0xc1   :  { %1216 = vmatmul.mubr.bf16.gmra.mrb[64].mxu1 %v2207_v35 }
  0xc2   :  { %1223 = vmatprep.mubr.bf16.mxu1 %v2210_v36 }
  0xc6   :  { %1537 = vmatmul.mubr.bf16.gmra.mrb[80].mxu0 %v2230_v41 }
  0xc7   :  { %1941 = vmatprep.mubr.msk.bf16.mxu0 %vm954_vm0, %v2232_v42  ;;  %v2292_v42 = vld [vmem:[%s3313_s0 + $0x3ec] ss:$16 sps:$4 sm:$0xff]  }
  0xc9   :  { %1224 = vmatmul.mubr.bf16.gmra.mrb[68].mxu1 %v2213_v39  ;;  %v2290_v39 = vld [vmem:[%s3313_s0 + $0x3c8] ss:$16 sps:$4 sm:$0xff]  }
  0xca   :  { %1231 = vmatprep.mubr.bf16.mxu1 %v2216_v40 }
  0xce   :  { %1545 = vmatmul.mubr.bf16.gmra.mrb[84].mxu0 %v2236_v45 }
  0xcf   :  { %1942 = vmatprep.mubr.msk.bf16.mxu0 %vm954_vm0, %v2238_v46 }
  0xd1   :  { %1232 = vmatmul.mubr.bf16.gmra.mrb[72].mxu1 %v2219_v43 }
  0xd2   :  { %1239 = vmatprep.mubr.bf16.mxu1 %v2222_v44 }
  0xd6   :  { %1553 = vmatmul.mubr.bf16.gmra.mrb[88].mxu0 %v2242_v49  ;;  %v2282_v49 = vld [vmem:[%s3313_s0 + $0x3a4] ss:$16 sps:$4 sm:$0xff]  }
  0xd7   :  { %1943 = vmatprep.mubr.msk.bf16.mxu0 %vm954_vm0, %v2244_v50 }
  0xd9   :  { %1240 = vmatmul.mubr.bf16.gmra.mrb[76].mxu1 %v2225_v47  ;;  %v2279_v47 = vld [vmem:[%s3313_s0 + $0x380] ss:$16 sps:$4 sm:$0xff]  }
  0xda   :  { %1247 = vmatprep.mubr.bf16.mxu1 %v2228_v48 }
  0xde   :  { %1561 = vmatmul.mubr.bf16.gmra.mrb[92].mxu0 %v2248_v53 }
  0xdf   :  { %1944 = vmatprep.mubr.msk.bf16.mxu0 %vm954_vm0, %v2250_v54 }
  0xe1   :  { %1248 = vmatmul.mubr.bf16.gmra.mrb[80].mxu1 %v2231_v51 }
  0xe2   :  { %1255 = vmatprep.mubr.bf16.mxu1 %v2234_v52 }
  0xe6   :  { %1569 = vmatmul.mubr.bf16.gmra.mrb[96].mxu0 %v2254_v57 }
  0xe7   :  { %1945 = vmatprep.mubr.msk.bf16.mxu0 %vm954_vm0, %v2256_v58 }
  0xe9   :  { %1256 = vmatmul.mubr.bf16.gmra.mrb[84].mxu1 %v2237_v55  ;;  %v2296_v55 = vld [vmem:[%s3313_s0 + $0x3e8] ss:$16 sps:$4 sm:$0xff]  }
  0xea   :  { %1263 = vmatprep.mubr.bf16.mxu1 %v2240_v56 }
  0xee   :  { %1577 = vmatmul.mubr.bf16.gmra.mrb[100].mxu0 %v2260_v61 }
  0xef   :  { %1946 = vmatprep.mubr.msk.bf16.mxu0 %vm954_vm0, %v2262_v62 }
  0xf1   :  { %1264 = vmatmul.mubr.bf16.gmra.mrb[88].mxu1 %v2243_v59 }
  0xf2   :  { %1271 = vmatprep.mubr.bf16.mxu1 %v2246_v60 }
  0xf6   :  { %1585 = vmatmul.mubr.bf16.gmra.mrb[104].mxu0 %v2266_v1 }
  0xf7   :  { %1947 = vmatprep.mubr.msk.bf16.mxu0 %vm954_vm0, %v2268_v2  ;;  %v2288_v2 = vld [vmem:[%s3313_s0 + $0x3c4] ss:$16 sps:$4 sm:$0xff]  }
  0xf9   :  { %1272 = vmatmul.mubr.bf16.gmra.mrb[92].mxu1 %v2249_v63  ;;  %v1378_v5 = vpop.f32.mrb[0].mxu0 }
  0xfa   :  { %1279 = vmatprep.mubr.bf16.mxu1 %v2252_v0  ;;  %v1380_v6 = vpop.f32.mrb[1].mxu0  ;;  %v2285_v0 = vld [vmem:[%s3313_s0 + $0x3a0] ss:$16 sps:$4 sm:$0xff]  }
  0xfb   :  { %v1381_v8 = vpop.f32.mrb[2].mxu0 }
  0xfc   :  { %v1383_v10 = vpop.f32.mrb[3].mxu0 }
  0xfe   :  { %1593 = vmatmul.mubr.bf16.gmra.mrb[108].mxu0 %v2272_v7 }
  0xff   :  { %1948 = vmatprep.mubr.msk.bf16.mxu0 %vm954_vm0, %v2274_v9 }
 0x101   :  { %1280 = vmatmul.mubr.bf16.gmra.mrb[96].mxu1 %v2255_v3  ;;  %v1386_v13 = vpop.f32.mrb[4].mxu0 }
 0x102   :  { %1287 = vmatprep.mubr.bf16.mxu1 %v2258_v4  ;;  %v1388_v14 = vpop.f32.mrb[5].mxu0 }
 0x103   :  { %v1389_v16 = vpop.f32.mrb[6].mxu0 }
 0x104   :  { %v1391_v18 = vpop.f32.mrb[7].mxu0 }
 0x105   :  { %v2294_v18 = vld [vmem:[%s3313_s0 + $0x3e4] ss:$16 sps:$4 sm:$0xff]  }
 0x106   :  { %1601 = vmatmul.mubr.bf16.gmra.mrb[112].mxu0 %v2278_v15 }
 0x107   :  { %1949 = vmatprep.mubr.msk.bf16.mxu0 %vm954_vm0, %v2280_v17 }
 0x109   :  { %1288 = vmatmul.mubr.bf16.gmra.mrb[100].mxu1 %v2261_v11  ;;  %v2920_v21 = vpop.f32.mrb[8].mxu0 }
 0x10a   :  { %1295 = vmatprep.mubr.bf16.mxu1 %v2264_v12  ;;  %v1396_v22 = vpop.f32.mrb[9].mxu0 }
 0x10b   :  { %v2925_v24 = vpop.f32.mrb[10].mxu0 }
 0x10c   :  { %v1399_v27 = vpop.f32.mrb[11].mxu0 }
 0x10e   :  { %1609 = vmatmul.mubr.bf16.gmra.mrb[116].mxu0 %v2284_v23 }
 0x10f   :  { %1950 = vmatprep.mubr.msk.bf16.mxu0 %vm954_vm0, %v2286_v25 }
 0x111   :  { %1296 = vmatmul.mubr.bf16.gmra.mrb[104].mxu1 %v2267_v19  ;;  %v2944_v37 = vpop.f32.mrb[12].mxu0 }
 0x112   :  { %1303 = vmatprep.mubr.bf16.mxu1 %v2270_v20  ;;  %v1404_v38 = vpop.f32.mrb[13].mxu0 }
 0x113   :  { %v2949_v41 = vpop.f32.mrb[14].mxu0 }
 0x114   :  { %v1089_v28 = vpop.f32.mrb[0].mxu1  ;;  %v1407_v43 = vpop.f32.mrb[15].mxu0 }
 0x115   :  { %v1090_v29 = vadd.f32 %v2933_v26, %v1089_v28  ;;  %v1091_v30 = vpop.f32.mrb[1].mxu1 }
 0x116   :  { %v1092_v32 = vpop.f32.mrb[2].mxu1  ;;  %1617 = vmatmul.mubr.bf16.gmra.mrb[120].mxu0 %v2290_v39 }
 0x117   :  { %v1379_v34 = vadd.f32 %v1378_v5, %v1090_v29  ;;  %v1093_v35 = vadd.f32 %v2933_v26, %v1092_v32  ;;  %v1094_v36 = vpop.f32.mrb[3].mxu1  ;;  %1951 = vmatprep.mubr.msk.bf16.mxu0 %vm954_vm0, %v2292_v42 }
 0x119   :  { %2298 = vtanh.f32 %v1379_v34  ;;  %v1382_v40 = vadd.f32 %v1381_v8, %v1093_v35  ;;  %1304 = vmatmul.mubr.bf16.gmra.mrb[108].mxu1 %v2273_v31  ;;  %v2963_v53 = vpop.f32.mrb[16].mxu0 }
 0x11a   :  { %1311 = vmatprep.mubr.bf16.mxu1 %v2276_v33  ;;  %v1412_v54 = vpop.f32.mrb[17].mxu0  ;;  %v2297_v33 = vld [vmem:[%s3313_s0 + $0x3e0] ss:$16 sps:$4 sm:$0xff]  }
 0x11b   :  { %2300 = vtanh.f32 %v1382_v40  ;;  %v2968_v57 = vpop.f32.mrb[18].mxu0 }
 0x11c   :  { %v1097_v44 = vpop.f32.mrb[4].mxu1  ;;  %v1415_v58 = vpop.f32.mrb[19].mxu0 }
 0x11d   :  { %v1098_v45 = vadd.f32 %v2933_v26, %v1097_v44  ;;  %v1099_v46 = vpop.f32.mrb[5].mxu1 }
 0x11e   :  { %v1100_v48 = vpop.f32.mrb[6].mxu1  ;;  %1625 = vmatmul.mubr.bf16.gmra.mrb[124].mxu0 %v2296_v55 }
 0x11f   :  { %v1387_v50 = vadd.f32 %v1386_v13, %v1098_v45  ;;  %v1101_v51 = vadd.f32 %v2933_v26, %v1100_v48  ;;  %v1102_v52 = vpop.f32.mrb[7].mxu1 }
 0x121   :  { %2302 = vtanh.f32 %v1387_v50  ;;  %v1390_v56 = vadd.f32 %v1389_v16, %v1101_v51  ;;  %1312 = vmatmul.mubr.bf16.gmra.mrb[112].mxu1 %v2279_v47  ;;  %v1418_v6 = vpop.f32.mrb[20].mxu0  ;;  %v2291_v16 = vld [vmem:[%s3313_s0 + $0x3c0] ss:$16 sps:$4 sm:$0xff]  }
 0x122   :  { %1319 = vmatprep.mubr.bf16.mxu1 %v2282_v49  ;;  %v1420_v7 = vpop.f32.mrb[21].mxu0 }
 0x123   :  { %v2299_v59 = vpop.eup %2298  ;;  %2304 = vtanh.f32 %v1390_v56  ;;  %v1421_v9 = vpop.f32.mrb[22].mxu0 }
 0x124   :  { %1698 = vst.msk [vmem:[%s3315_s3] sm:$0xff] %vm1697_vm2, %v2299_v59  ;;  %v1105_v60 = vpop.f32.mrb[8].mxu1  ;;  %v1423_v10 = vpop.f32.mrb[23].mxu0 }
 0x125   :  { %v2301_v61 = vpop.eup %2300  ;;  %v1106_v62 = vadd.f32 %v2933_v26, %v1105_v60  ;;  %v1107_v63 = vpop.f32.mrb[9].mxu1 }
 0x126   :  { %1699 = vst.msk [vmem:[%s3315_s3 + $0x8] sm:$0xff] %vm1697_vm2, %v2301_v61  ;;  %v1108_v1 = vpop.f32.mrb[10].mxu1 }
 0x127   :  { %v1395_v3 = vadd.f32 %v2920_v21, %v1106_v62  ;;  %v1109_v4 = vadd.f32 %v2933_v26, %v1108_v1  ;;  %v1110_v5 = vpop.f32.mrb[11].mxu1 }
 0x129   :  { %2306 = vtanh.f32 %v1395_v3  ;;  %v1398_v8 = vadd.f32 %v2925_v24, %v1109_v4  ;;  %1320 = vmatmul.mubr.bf16.gmra.mrb[116].mxu1 %v2285_v0  ;;  %v1426_v22 = vpop.f32.mrb[24].mxu0 }
 0x12a   :  { %1327 = vmatprep.mubr.bf16.mxu1 %v2288_v2  ;;  %v1428_v23 = vpop.f32.mrb[25].mxu0 }
 0x12b   :  { %v2303_v11 = vpop.eup %2302  ;;  %2308 = vtanh.f32 %v1398_v8  ;;  %v1429_v25 = vpop.f32.mrb[26].mxu0 }
 0x12c   :  { %1700 = vst.msk [vmem:[%s3315_s3 + $0x10] sm:$0xff] %vm1697_vm2, %v2303_v11  ;;  %v1113_v12 = vpop.f32.mrb[12].mxu1  ;;  %v1431_v27 = vpop.f32.mrb[27].mxu0 }
 0x12d   :  { %v2305_v13 = vpop.eup %2304  ;;  %v1114_v14 = vadd.f32 %v2933_v26, %v1113_v12  ;;  %v1115_v15 = vpop.f32.mrb[13].mxu1 }
 0x12e   :  { %1701 = vst.msk [vmem:[%s3315_s3 + $0x18] sm:$0xff] %vm1697_vm2, %v2305_v13  ;;  %v1116_v17 = vpop.f32.mrb[14].mxu1 }
 0x12f   :  { %v1403_v19 = vadd.f32 %v2944_v37, %v1114_v14  ;;  %v1117_v20 = vadd.f32 %v2933_v26, %v1116_v17  ;;  %v1118_v21 = vpop.f32.mrb[15].mxu1 }
 0x131   :  { %2310 = vtanh.f32 %v1403_v19  ;;  %v1406_v24 = vadd.f32 %v2949_v41, %v1117_v20  ;;  %1328 = vmatmul.mubr.bf16.gmra.mrb[120].mxu1 %v2291_v16  ;;  %v1434_v38 = vpop.f32.mrb[28].mxu0 }
 0x132   :  { %1335 = vmatprep.mubr.bf16.mxu1 %v2294_v18  ;;  %v1436_v39 = vpop.f32.mrb[29].mxu0 }
 0x133   :  { %v2307_v28 = vpop.eup %2306  ;;  %2312 = vtanh.f32 %v1406_v24  ;;  %v1437_v41 = vpop.f32.mrb[30].mxu0 }
 0x134   :  { %1702 = vst.msk [vmem:[%s3315_s3 + $0x20] sm:$0xff] %vm1697_vm2, %v2307_v28  ;;  %v1121_v29 = vpop.f32.mrb[16].mxu1  ;;  %v1439_v42 = vpop.f32.mrb[31].mxu0 }
 0x135   :  { %v2309_v30 = vpop.eup %2308  ;;  %v1122_v31 = vadd.f32 %v2933_v26, %v1121_v29  ;;  %v1123_v32 = vpop.f32.mrb[17].mxu1 }
 0x136   :  { %1703 = vst.msk [vmem:[%s3315_s3 + $0x28] sm:$0xff] %vm1697_vm2, %v2309_v30  ;;  %v1124_v34 = vpop.f32.mrb[18].mxu1 }
 0x137   :  { %v1411_v35 = vadd.f32 %v2963_v53, %v1122_v31  ;;  %v1125_v36 = vadd.f32 %v2933_v26, %v1124_v34  ;;  %v1126_v37 = vpop.f32.mrb[19].mxu1 }
 0x139   :  { %2314 = vtanh.f32 %v1411_v35  ;;  %v1414_v40 = vadd.f32 %v2968_v57, %v1125_v36  ;;  %1336 = vmatmul.mubr.bf16.gmra.mrb[124].mxu1 %v2297_v33  ;;  %v1442_v52 = vpop.f32.mrb[32].mxu0 }
 0x13a   :  { %v1444_v53 = vpop.f32.mrb[33].mxu0 }
 0x13b   :  { %v2311_v43 = vpop.eup %2310  ;;  %2316 = vtanh.f32 %v1414_v40  ;;  %v1445_v55 = vpop.f32.mrb[34].mxu0 }
 0x13c   :  { %1704 = vst.msk [vmem:[%s3315_s3 + $0x30] sm:$0xff] %vm1697_vm2, %v2311_v43  ;;  %v1129_v44 = vpop.f32.mrb[20].mxu1  ;;  %v1447_v56 = vpop.f32.mrb[35].mxu0 }
 0x13d   :  { %v2313_v45 = vpop.eup %2312  ;;  %v1130_v46 = vadd.f32 %v2933_v26, %v1129_v44  ;;  %v1131_v47 = vpop.f32.mrb[21].mxu1 }
 0x13e   :  { %1705 = vst.msk [vmem:[%s3315_s3 + $0x38] sm:$0xff] %vm1697_vm2, %v2313_v45  ;;  %v1132_v48 = vpop.f32.mrb[22].mxu1 }
 0x13f   :  { %v1419_v49 = vadd.f32 %v1418_v6, %v1130_v46  ;;  %v1133_v50 = vadd.f32 %v2933_v26, %v1132_v48  ;;  %v1134_v51 = vpop.f32.mrb[23].mxu1 }
 0x141   :  { %2318 = vtanh.f32 %v1419_v49  ;;  %v1422_v54 = vadd.f32 %v1421_v9, %v1133_v50  ;;  %v1450_v2 = vpop.f32.mrb[36].mxu0 }
 0x142   :  { %v1452_v3 = vpop.f32.mrb[37].mxu0 }
 0x143   :  { %v2315_v57 = vpop.eup %2314  ;;  %2320 = vtanh.f32 %v1422_v54  ;;  %v1453_v5 = vpop.f32.mrb[38].mxu0 }
 0x144   :  { %1706 = vst.msk [vmem:[%s3315_s3 + $0x40] sm:$0xff] %vm1697_vm2, %v2315_v57  ;;  %v1137_v58 = vpop.f32.mrb[24].mxu1  ;;  %v1455_v6 = vpop.f32.mrb[39].mxu0 }
 0x145   :  { %v2317_v59 = vpop.eup %2316  ;;  %v1138_v60 = vadd.f32 %v2933_v26, %v1137_v58  ;;  %v1139_v61 = vpop.f32.mrb[25].mxu1 }
 0x146   :  { %1707 = vst.msk [vmem:[%s3315_s3 + $0x48] sm:$0xff] %vm1697_vm2, %v2317_v59  ;;  %v1140_v62 = vpop.f32.mrb[26].mxu1 }
 0x147   :  { %v1427_v63 = vadd.f32 %v1426_v22, %v1138_v60  ;;  %v1141_v0 = vadd.f32 %v2933_v26, %v1140_v62  ;;  %v1142_v1 = vpop.f32.mrb[27].mxu1 }
 0x149   :  { %2322 = vtanh.f32 %v1427_v63  ;;  %v1430_v4 = vadd.f32 %v1429_v25, %v1141_v0  ;;  %v1458_v16 = vpop.f32.mrb[40].mxu0 }
 0x14a   :  { %v1460_v17 = vpop.f32.mrb[41].mxu0 }
 0x14b   :  { %v2319_v7 = vpop.eup %2318  ;;  %2324 = vtanh.f32 %v1430_v4  ;;  %v1461_v19 = vpop.f32.mrb[42].mxu0 }
 0x14c   :  { %1708 = vst.msk [vmem:[%s3315_s3 + $0x50] sm:$0xff] %vm1697_vm2, %v2319_v7  ;;  %v1145_v8 = vpop.f32.mrb[28].mxu1  ;;  %v1463_v20 = vpop.f32.mrb[43].mxu0 }
 0x14d   :  { %v2321_v9 = vpop.eup %2320  ;;  %v1146_v10 = vadd.f32 %v2933_v26, %v1145_v8  ;;  %v1147_v11 = vpop.f32.mrb[29].mxu1 }
 0x14e   :  { %1709 = vst.msk [vmem:[%s3315_s3 + $0x58] sm:$0xff] %vm1697_vm2, %v2321_v9  ;;  %v1148_v12 = vpop.f32.mrb[30].mxu1 }
 0x14f   :  { %v1435_v13 = vadd.f32 %v1434_v38, %v1146_v10  ;;  %v1149_v14 = vadd.f32 %v2933_v26, %v1148_v12  ;;  %v1150_v15 = vpop.f32.mrb[31].mxu1 }
 0x151   :  { %2326 = vtanh.f32 %v1435_v13  ;;  %v1438_v18 = vadd.f32 %v1437_v41, %v1149_v14  ;;  %v1466_v31 = vpop.f32.mrb[44].mxu0 }
 0x152   :  { %v1468_v32 = vpop.f32.mrb[45].mxu0 }
 0x153   :  { %v2323_v21 = vpop.eup %2322  ;;  %2328 = vtanh.f32 %v1438_v18  ;;  %v1469_v34 = vpop.f32.mrb[46].mxu0 }
 0x154   :  { %1710 = vst.msk [vmem:[%s3315_s3 + $0x60] sm:$0xff] %vm1697_vm2, %v2323_v21  ;;  %v1153_v22 = vpop.f32.mrb[32].mxu1  ;;  %v1471_v35 = vpop.f32.mrb[47].mxu0 }
 0x155   :  { %v2325_v23 = vpop.eup %2324  ;;  %v1154_v24 = vadd.f32 %v2933_v26, %v1153_v22  ;;  %v1155_v25 = vpop.f32.mrb[33].mxu1 }
 0x156   :  { %1711 = vst.msk [vmem:[%s3315_s3 + $0x68] sm:$0xff] %vm1697_vm2, %v2325_v23  ;;  %v1156_v27 = vpop.f32.mrb[34].mxu1 }
 0x157   :  { %v1443_v28 = vadd.f32 %v1442_v52, %v1154_v24  ;;  %v1157_v29 = vadd.f32 %v2933_v26, %v1156_v27  ;;  %v1158_v30 = vpop.f32.mrb[35].mxu1 }
 0x159   :  { %2330 = vtanh.f32 %v1443_v28  ;;  %v1446_v33 = vadd.f32 %v1445_v55, %v1157_v29  ;;  %v1474_v45 = vpop.f32.mrb[48].mxu0 }
 0x15a   :  { %v1476_v46 = vpop.f32.mrb[49].mxu0 }
 0x15b   :  { %v2327_v36 = vpop.eup %2326  ;;  %2332 = vtanh.f32 %v1446_v33  ;;  %v1477_v48 = vpop.f32.mrb[50].mxu0 }
 0x15c   :  { %1712 = vst.msk [vmem:[%s3315_s3 + $0x70] sm:$0xff] %vm1697_vm2, %v2327_v36  ;;  %v1161_v37 = vpop.f32.mrb[36].mxu1  ;;  %v1479_v49 = vpop.f32.mrb[51].mxu0 }
 0x15d   :  { %v2329_v38 = vpop.eup %2328  ;;  %v1162_v39 = vadd.f32 %v2933_v26, %v1161_v37  ;;  %v1163_v40 = vpop.f32.mrb[37].mxu1 }
 0x15e   :  { %1713 = vst.msk [vmem:[%s3315_s3 + $0x78] sm:$0xff] %vm1697_vm2, %v2329_v38  ;;  %v1164_v41 = vpop.f32.mrb[38].mxu1 }
 0x15f   :  { %v1451_v42 = vadd.f32 %v1450_v2, %v1162_v39  ;;  %v1165_v43 = vadd.f32 %v2933_v26, %v1164_v41  ;;  %v1166_v44 = vpop.f32.mrb[39].mxu1 }
 0x161   :  { %2334 = vtanh.f32 %v1451_v42  ;;  %v1454_v47 = vadd.f32 %v1453_v5, %v1165_v43  ;;  %v1482_v59 = vpop.f32.mrb[52].mxu0 }
 0x162   :  { %v1484_v60 = vpop.f32.mrb[53].mxu0 }
 0x163   :  { %v2331_v50 = vpop.eup %2330  ;;  %2336 = vtanh.f32 %v1454_v47  ;;  %v1485_v62 = vpop.f32.mrb[54].mxu0 }
 0x164   :  { %1714 = vst.msk [vmem:[%s3315_s3 + $0x80] sm:$0xff] %vm1697_vm2, %v2331_v50  ;;  %v1169_v51 = vpop.f32.mrb[40].mxu1  ;;  %v1487_v63 = vpop.f32.mrb[55].mxu0 }
 0x165   :  { %v2333_v52 = vpop.eup %2332  ;;  %v1170_v53 = vadd.f32 %v2933_v26, %v1169_v51  ;;  %v1171_v54 = vpop.f32.mrb[41].mxu1 }
 0x166   :  { %1715 = vst.msk [vmem:[%s3315_s3 + $0x88] sm:$0xff] %vm1697_vm2, %v2333_v52  ;;  %v1172_v55 = vpop.f32.mrb[42].mxu1 }
 0x167   :  { %v1459_v56 = vadd.f32 %v1458_v16, %v1170_v53  ;;  %v1173_v57 = vadd.f32 %v2933_v26, %v1172_v55  ;;  %v1174_v58 = vpop.f32.mrb[43].mxu1 }
 0x169   :  { %2338 = vtanh.f32 %v1459_v56  ;;  %v1462_v61 = vadd.f32 %v1461_v19, %v1173_v57  ;;  %v1490_v9 = vpop.f32.mrb[56].mxu0 }
 0x16a   :  { %v1492_v10 = vpop.f32.mrb[57].mxu0 }
 0x16b   :  { %v2335_v0 = vpop.eup %2334  ;;  %2340 = vtanh.f32 %v1462_v61  ;;  %v1493_v12 = vpop.f32.mrb[58].mxu0 }
 0x16c   :  { %1716 = vst.msk [vmem:[%s3315_s3 + $0x90] sm:$0xff] %vm1697_vm2, %v2335_v0  ;;  %v1177_v1 = vpop.f32.mrb[44].mxu1  ;;  %v1495_v13 = vpop.f32.mrb[59].mxu0 }
 0x16d   :  { %v2337_v2 = vpop.eup %2336  ;;  %v1178_v3 = vadd.f32 %v2933_v26, %v1177_v1  ;;  %v1179_v4 = vpop.f32.mrb[45].mxu1 }
 0x16e   :  { %1717 = vst.msk [vmem:[%s3315_s3 + $0x98] sm:$0xff] %vm1697_vm2, %v2337_v2  ;;  %v1180_v5 = vpop.f32.mrb[46].mxu1 }
 0x16f   :  { %v1467_v6 = vadd.f32 %v1466_v31, %v1178_v3  ;;  %v1181_v7 = vadd.f32 %v2933_v26, %v1180_v5  ;;  %v1182_v8 = vpop.f32.mrb[47].mxu1 }
 0x171   :  { %2342 = vtanh.f32 %v1467_v6  ;;  %v1470_v11 = vadd.f32 %v1469_v34, %v1181_v7  ;;  %v1498_v23 = vpop.f32.mrb[60].mxu0 }
 0x172   :  { %v1500_v24 = vpop.f32.mrb[61].mxu0 }
 0x173   :  { %v2339_v14 = vpop.eup %2338  ;;  %2344 = vtanh.f32 %v1470_v11  ;;  %v1501_v27 = vpop.f32.mrb[62].mxu0 }
 0x174   :  { %1718 = vst.msk [vmem:[%s3315_s3 + $0xa0] sm:$0xff] %vm1697_vm2, %v2339_v14  ;;  %v1185_v15 = vpop.f32.mrb[48].mxu1  ;;  %v1503_v28 = vpop.f32.mrb[63].mxu0 }
 0x175   :  { %v2341_v16 = vpop.eup %2340  ;;  %v1186_v17 = vadd.f32 %v2933_v26, %v1185_v15  ;;  %v1187_v18 = vpop.f32.mrb[49].mxu1 }
 0x176   :  { %1719 = vst.msk [vmem:[%s3315_s3 + $0xa8] sm:$0xff] %vm1697_vm2, %v2341_v16  ;;  %v1188_v19 = vpop.f32.mrb[50].mxu1 }
 0x177   :  { %v1475_v20 = vadd.f32 %v1474_v45, %v1186_v17  ;;  %v1189_v21 = vadd.f32 %v2933_v26, %v1188_v19  ;;  %v1190_v22 = vpop.f32.mrb[51].mxu1 }
 0x179   :  { %2346 = vtanh.f32 %v1475_v20  ;;  %v1478_v25 = vadd.f32 %v1477_v48, %v1189_v21  ;;  %v1506_v38 = vpop.f32.mrb[64].mxu0 }
 0x17a   :  { %v1508_v39 = vpop.f32.mrb[65].mxu0 }
 0x17b   :  { %v2343_v29 = vpop.eup %2342  ;;  %2348 = vtanh.f32 %v1478_v25  ;;  %v1509_v41 = vpop.f32.mrb[66].mxu0 }
 0x17c   :  { %1720 = vst.msk [vmem:[%s3315_s3 + $0xb0] sm:$0xff] %vm1697_vm2, %v2343_v29  ;;  %v1193_v30 = vpop.f32.mrb[52].mxu1  ;;  %v1511_v42 = vpop.f32.mrb[67].mxu0 }
 0x17d   :  { %v2345_v31 = vpop.eup %2344  ;;  %v1194_v32 = vadd.f32 %v2933_v26, %v1193_v30  ;;  %v1195_v33 = vpop.f32.mrb[53].mxu1 }
 0x17e   :  { %1721 = vst.msk [vmem:[%s3315_s3 + $0xb8] sm:$0xff] %vm1697_vm2, %v2345_v31  ;;  %v1196_v34 = vpop.f32.mrb[54].mxu1 }
 0x17f   :  { %v1483_v35 = vadd.f32 %v1482_v59, %v1194_v32  ;;  %v1197_v36 = vadd.f32 %v2933_v26, %v1196_v34  ;;  %v1198_v37 = vpop.f32.mrb[55].mxu1 }
 0x181   :  { %2350 = vtanh.f32 %v1483_v35  ;;  %v1486_v40 = vadd.f32 %v1485_v62, %v1197_v36  ;;  %v1514_v52 = vpop.f32.mrb[68].mxu0 }
 0x182   :  { %v1516_v53 = vpop.f32.mrb[69].mxu0 }
 0x183   :  { %v2347_v43 = vpop.eup %2346  ;;  %2352 = vtanh.f32 %v1486_v40  ;;  %v1517_v55 = vpop.f32.mrb[70].mxu0 }
 0x184   :  { %1722 = vst.msk [vmem:[%s3315_s3 + $0xc0] sm:$0xff] %vm1697_vm2, %v2347_v43  ;;  %v1201_v44 = vpop.f32.mrb[56].mxu1  ;;  %v1519_v56 = vpop.f32.mrb[71].mxu0 }
 0x185   :  { %v2349_v45 = vpop.eup %2348  ;;  %v1202_v46 = vadd.f32 %v2933_v26, %v1201_v44  ;;  %v1203_v47 = vpop.f32.mrb[57].mxu1 }
 0x186   :  { %1723 = vst.msk [vmem:[%s3315_s3 + $0xc8] sm:$0xff] %vm1697_vm2, %v2349_v45  ;;  %v1204_v48 = vpop.f32.mrb[58].mxu1 }
 0x187   :  { %v1491_v49 = vadd.f32 %v1490_v9, %v1202_v46  ;;  %v1205_v50 = vadd.f32 %v2933_v26, %v1204_v48  ;;  %v1206_v51 = vpop.f32.mrb[59].mxu1 }
 0x189   :  { %2354 = vtanh.f32 %v1491_v49  ;;  %v1494_v54 = vadd.f32 %v1493_v12, %v1205_v50  ;;  %v1522_v2 = vpop.f32.mrb[72].mxu0 }
 0x18a   :  { %v1524_v3 = vpop.f32.mrb[73].mxu0 }
 0x18b   :  { %v2351_v57 = vpop.eup %2350  ;;  %2356 = vtanh.f32 %v1494_v54  ;;  %v1525_v5 = vpop.f32.mrb[74].mxu0 }
 0x18c   :  { %1724 = vst.msk [vmem:[%s3315_s3 + $0xd0] sm:$0xff] %vm1697_vm2, %v2351_v57  ;;  %v1209_v58 = vpop.f32.mrb[60].mxu1  ;;  %v1527_v6 = vpop.f32.mrb[75].mxu0 }
 0x18d   :  { %v2353_v59 = vpop.eup %2352  ;;  %v1210_v60 = vadd.f32 %v2933_v26, %v1209_v58  ;;  %v1211_v61 = vpop.f32.mrb[61].mxu1 }
 0x18e   :  { %1725 = vst.msk [vmem:[%s3315_s3 + $0xd8] sm:$0xff] %vm1697_vm2, %v2353_v59  ;;  %v1212_v62 = vpop.f32.mrb[62].mxu1 }
 0x18f   :  { %v1499_v63 = vadd.f32 %v1498_v23, %v1210_v60  ;;  %v1213_v0 = vadd.f32 %v2933_v26, %v1212_v62  ;;  %v1214_v1 = vpop.f32.mrb[63].mxu1 }
 0x191   :  { %2358 = vtanh.f32 %v1499_v63  ;;  %v1502_v4 = vadd.f32 %v1501_v27, %v1213_v0  ;;  %v1530_v16 = vpop.f32.mrb[76].mxu0 }
 0x192   :  { %v1532_v17 = vpop.f32.mrb[77].mxu0 }
 0x193   :  { %v2355_v7 = vpop.eup %2354  ;;  %2360 = vtanh.f32 %v1502_v4  ;;  %v1533_v19 = vpop.f32.mrb[78].mxu0 }
 0x194   :  { %1726 = vst.msk [vmem:[%s3315_s3 + $0xe0] sm:$0xff] %vm1697_vm2, %v2355_v7  ;;  %v1217_v8 = vpop.f32.mrb[64].mxu1  ;;  %v1535_v20 = vpop.f32.mrb[79].mxu0 }
 0x195   :  { %v2357_v9 = vpop.eup %2356  ;;  %v1218_v10 = vadd.f32 %v2933_v26, %v1217_v8  ;;  %v1219_v11 = vpop.f32.mrb[65].mxu1 }
 0x196   :  { %1727 = vst.msk [vmem:[%s3315_s3 + $0xe8] sm:$0xff] %vm1697_vm2, %v2357_v9  ;;  %v1220_v12 = vpop.f32.mrb[66].mxu1 }
 0x197   :  { %v1507_v13 = vadd.f32 %v1506_v38, %v1218_v10  ;;  %v1221_v14 = vadd.f32 %v2933_v26, %v1220_v12  ;;  %v1222_v15 = vpop.f32.mrb[67].mxu1 }
 0x199   :  { %2362 = vtanh.f32 %v1507_v13  ;;  %v1510_v18 = vadd.f32 %v1509_v41, %v1221_v14  ;;  %v1538_v31 = vpop.f32.mrb[80].mxu0 }
 0x19a   :  { %v1540_v32 = vpop.f32.mrb[81].mxu0 }
 0x19b   :  { %v2359_v21 = vpop.eup %2358  ;;  %2364 = vtanh.f32 %v1510_v18  ;;  %v1541_v34 = vpop.f32.mrb[82].mxu0 }
 0x19c   :  { %1728 = vst.msk [vmem:[%s3315_s3 + $0xf0] sm:$0xff] %vm1697_vm2, %v2359_v21  ;;  %v1225_v22 = vpop.f32.mrb[68].mxu1  ;;  %v1543_v35 = vpop.f32.mrb[83].mxu0 }
 0x19d   :  { %v2361_v23 = vpop.eup %2360  ;;  %v1226_v24 = vadd.f32 %v2933_v26, %v1225_v22  ;;  %v1227_v25 = vpop.f32.mrb[69].mxu1 }
 0x19e   :  { %1729 = vst.msk [vmem:[%s3315_s3 + $0xf8] sm:$0xff] %vm1697_vm2, %v2361_v23  ;;  %v1228_v27 = vpop.f32.mrb[70].mxu1 }
 0x19f   :  { %v1515_v28 = vadd.f32 %v1514_v52, %v1226_v24  ;;  %v1229_v29 = vadd.f32 %v2933_v26, %v1228_v27  ;;  %v1230_v30 = vpop.f32.mrb[71].mxu1 }
 0x1a1   :  { %2366 = vtanh.f32 %v1515_v28  ;;  %v1518_v33 = vadd.f32 %v1517_v55, %v1229_v29  ;;  %v1546_v45 = vpop.f32.mrb[84].mxu0 }
 0x1a2   :  { %v1548_v46 = vpop.f32.mrb[85].mxu0 }
 0x1a3   :  { %v2363_v36 = vpop.eup %2362  ;;  %2368 = vtanh.f32 %v1518_v33  ;;  %v1549_v48 = vpop.f32.mrb[86].mxu0 }
 0x1a4   :  { %1730 = vst.msk [vmem:[%s3315_s3 + $0x100] sm:$0xff] %vm1697_vm2, %v2363_v36  ;;  %v1233_v37 = vpop.f32.mrb[72].mxu1  ;;  %v1551_v49 = vpop.f32.mrb[87].mxu0 }
 0x1a5   :  { %v2365_v38 = vpop.eup %2364  ;;  %v1234_v39 = vadd.f32 %v2933_v26, %v1233_v37  ;;  %v1235_v40 = vpop.f32.mrb[73].mxu1 }
 0x1a6   :  { %1731 = vst.msk [vmem:[%s3315_s3 + $0x108] sm:$0xff] %vm1697_vm2, %v2365_v38  ;;  %v1236_v41 = vpop.f32.mrb[74].mxu1 }
 0x1a7   :  { %v1523_v42 = vadd.f32 %v1522_v2, %v1234_v39  ;;  %v1237_v43 = vadd.f32 %v2933_v26, %v1236_v41  ;;  %v1238_v44 = vpop.f32.mrb[75].mxu1 }
 0x1a9   :  { %2370 = vtanh.f32 %v1523_v42  ;;  %v1526_v47 = vadd.f32 %v1525_v5, %v1237_v43  ;;  %v1554_v59 = vpop.f32.mrb[88].mxu0 }
 0x1aa   :  { %v1556_v60 = vpop.f32.mrb[89].mxu0 }
 0x1ab   :  { %v2367_v50 = vpop.eup %2366  ;;  %2372 = vtanh.f32 %v1526_v47  ;;  %v1557_v62 = vpop.f32.mrb[90].mxu0 }
 0x1ac   :  { %1732 = vst.msk [vmem:[%s3315_s3 + $0x110] sm:$0xff] %vm1697_vm2, %v2367_v50  ;;  %v1241_v51 = vpop.f32.mrb[76].mxu1  ;;  %v1559_v63 = vpop.f32.mrb[91].mxu0 }
 0x1ad   :  { %v2369_v52 = vpop.eup %2368  ;;  %v1242_v53 = vadd.f32 %v2933_v26, %v1241_v51  ;;  %v1243_v54 = vpop.f32.mrb[77].mxu1 }
 0x1ae   :  { %1733 = vst.msk [vmem:[%s3315_s3 + $0x118] sm:$0xff] %vm1697_vm2, %v2369_v52  ;;  %v1244_v55 = vpop.f32.mrb[78].mxu1 }
 0x1af   :  { %v1531_v56 = vadd.f32 %v1530_v16, %v1242_v53  ;;  %v1245_v57 = vadd.f32 %v2933_v26, %v1244_v55  ;;  %v1246_v58 = vpop.f32.mrb[79].mxu1 }
 0x1b1   :  { %2374 = vtanh.f32 %v1531_v56  ;;  %v1534_v61 = vadd.f32 %v1533_v19, %v1245_v57  ;;  %v1562_v9 = vpop.f32.mrb[92].mxu0 }
 0x1b2   :  { %v1564_v10 = vpop.f32.mrb[93].mxu0 }
 0x1b3   :  { %v2371_v0 = vpop.eup %2370  ;;  %2376 = vtanh.f32 %v1534_v61  ;;  %v1565_v12 = vpop.f32.mrb[94].mxu0 }
 0x1b4   :  { %1734 = vst.msk [vmem:[%s3315_s3 + $0x120] sm:$0xff] %vm1697_vm2, %v2371_v0  ;;  %v1249_v1 = vpop.f32.mrb[80].mxu1  ;;  %v1567_v13 = vpop.f32.mrb[95].mxu0 }
 0x1b5   :  { %v2373_v2 = vpop.eup %2372  ;;  %v1250_v3 = vadd.f32 %v2933_v26, %v1249_v1  ;;  %v1251_v4 = vpop.f32.mrb[81].mxu1 }
 0x1b6   :  { %1735 = vst.msk [vmem:[%s3315_s3 + $0x128] sm:$0xff] %vm1697_vm2, %v2373_v2  ;;  %v1252_v5 = vpop.f32.mrb[82].mxu1 }
 0x1b7   :  { %v1539_v6 = vadd.f32 %v1538_v31, %v1250_v3  ;;  %v1253_v7 = vadd.f32 %v2933_v26, %v1252_v5  ;;  %v1254_v8 = vpop.f32.mrb[83].mxu1 }
 0x1b9   :  { %2378 = vtanh.f32 %v1539_v6  ;;  %v1542_v11 = vadd.f32 %v1541_v34, %v1253_v7  ;;  %v1570_v23 = vpop.f32.mrb[96].mxu0 }
 0x1ba   :  { %v1572_v24 = vpop.f32.mrb[97].mxu0 }
 0x1bb   :  { %v2375_v14 = vpop.eup %2374  ;;  %2380 = vtanh.f32 %v1542_v11  ;;  %v1573_v27 = vpop.f32.mrb[98].mxu0 }
 0x1bc   :  { %1736 = vst.msk [vmem:[%s3315_s3 + $0x130] sm:$0xff] %vm1697_vm2, %v2375_v14  ;;  %v1257_v15 = vpop.f32.mrb[84].mxu1  ;;  %v1575_v28 = vpop.f32.mrb[99].mxu0 }
 0x1bd   :  { %v2377_v16 = vpop.eup %2376  ;;  %v1258_v17 = vadd.f32 %v2933_v26, %v1257_v15  ;;  %v1259_v18 = vpop.f32.mrb[85].mxu1 }
 0x1be   :  { %1737 = vst.msk [vmem:[%s3315_s3 + $0x138] sm:$0xff] %vm1697_vm2, %v2377_v16  ;;  %v1260_v19 = vpop.f32.mrb[86].mxu1 }
 0x1bf   :  { %v1547_v20 = vadd.f32 %v1546_v45, %v1258_v17  ;;  %v1261_v21 = vadd.f32 %v2933_v26, %v1260_v19  ;;  %v1262_v22 = vpop.f32.mrb[87].mxu1 }
 0x1c1   :  { %2382 = vtanh.f32 %v1547_v20  ;;  %v1550_v25 = vadd.f32 %v1549_v48, %v1261_v21  ;;  %v1578_v38 = vpop.f32.mrb[100].mxu0 }
 0x1c2   :  { %v1580_v39 = vpop.f32.mrb[101].mxu0 }
 0x1c3   :  { %v2379_v29 = vpop.eup %2378  ;;  %2384 = vtanh.f32 %v1550_v25  ;;  %v1581_v41 = vpop.f32.mrb[102].mxu0 }
 0x1c4   :  { %1738 = vst.msk [vmem:[%s3315_s3 + $0x140] sm:$0xff] %vm1697_vm2, %v2379_v29  ;;  %v1265_v30 = vpop.f32.mrb[88].mxu1  ;;  %v1583_v42 = vpop.f32.mrb[103].mxu0 }
 0x1c5   :  { %v2381_v31 = vpop.eup %2380  ;;  %v1266_v32 = vadd.f32 %v2933_v26, %v1265_v30  ;;  %v1267_v33 = vpop.f32.mrb[89].mxu1 }
 0x1c6   :  { %1739 = vst.msk [vmem:[%s3315_s3 + $0x148] sm:$0xff] %vm1697_vm2, %v2381_v31  ;;  %v1268_v34 = vpop.f32.mrb[90].mxu1 }
 0x1c7   :  { %v1555_v35 = vadd.f32 %v1554_v59, %v1266_v32  ;;  %v1269_v36 = vadd.f32 %v2933_v26, %v1268_v34  ;;  %v1270_v37 = vpop.f32.mrb[91].mxu1 }
 0x1c9   :  { %2386 = vtanh.f32 %v1555_v35  ;;  %v1558_v40 = vadd.f32 %v1557_v62, %v1269_v36  ;;  %v1586_v52 = vpop.f32.mrb[104].mxu0 }
 0x1ca   :  { %v1588_v53 = vpop.f32.mrb[105].mxu0 }
 0x1cb   :  { %v2383_v43 = vpop.eup %2382  ;;  %2388 = vtanh.f32 %v1558_v40  ;;  %v1589_v55 = vpop.f32.mrb[106].mxu0 }
 0x1cc   :  { %1740 = vst.msk [vmem:[%s3315_s3 + $0x150] sm:$0xff] %vm1697_vm2, %v2383_v43  ;;  %v1273_v44 = vpop.f32.mrb[92].mxu1  ;;  %v1591_v56 = vpop.f32.mrb[107].mxu0 }
 0x1cd   :  { %v2385_v45 = vpop.eup %2384  ;;  %v1274_v46 = vadd.f32 %v2933_v26, %v1273_v44  ;;  %v1275_v47 = vpop.f32.mrb[93].mxu1 }
 0x1ce   :  { %1741 = vst.msk [vmem:[%s3315_s3 + $0x158] sm:$0xff] %vm1697_vm2, %v2385_v45  ;;  %v1276_v48 = vpop.f32.mrb[94].mxu1 }
 0x1cf   :  { %v1563_v49 = vadd.f32 %v1562_v9, %v1274_v46  ;;  %v1277_v50 = vadd.f32 %v2933_v26, %v1276_v48  ;;  %v1278_v51 = vpop.f32.mrb[95].mxu1 }
 0x1d1   :  { %2390 = vtanh.f32 %v1563_v49  ;;  %v1566_v54 = vadd.f32 %v1565_v12, %v1277_v50  ;;  %v1594_v2 = vpop.f32.mrb[108].mxu0 }
 0x1d2   :  { %v1596_v3 = vpop.f32.mrb[109].mxu0 }
 0x1d3   :  { %v2387_v57 = vpop.eup %2386  ;;  %2392 = vtanh.f32 %v1566_v54  ;;  %v1597_v5 = vpop.f32.mrb[110].mxu0 }
 0x1d4   :  { %1742 = vst.msk [vmem:[%s3315_s3 + $0x160] sm:$0xff] %vm1697_vm2, %v2387_v57  ;;  %v1281_v58 = vpop.f32.mrb[96].mxu1  ;;  %v1599_v6 = vpop.f32.mrb[111].mxu0 }
 0x1d5   :  { %v2389_v59 = vpop.eup %2388  ;;  %v1282_v60 = vadd.f32 %v2933_v26, %v1281_v58  ;;  %v1283_v61 = vpop.f32.mrb[97].mxu1 }
 0x1d6   :  { %1743 = vst.msk [vmem:[%s3315_s3 + $0x168] sm:$0xff] %vm1697_vm2, %v2389_v59  ;;  %v1284_v62 = vpop.f32.mrb[98].mxu1 }
 0x1d7   :  { %v1571_v63 = vadd.f32 %v1570_v23, %v1282_v60  ;;  %v1285_v0 = vadd.f32 %v2933_v26, %v1284_v62  ;;  %v1286_v1 = vpop.f32.mrb[99].mxu1 }
 0x1d9   :  { %2394 = vtanh.f32 %v1571_v63  ;;  %v1574_v4 = vadd.f32 %v1573_v27, %v1285_v0  ;;  %v1602_v16 = vpop.f32.mrb[112].mxu0 }
 0x1da   :  { %v1604_v17 = vpop.f32.mrb[113].mxu0 }
 0x1db   :  { %v2391_v7 = vpop.eup %2390  ;;  %2396 = vtanh.f32 %v1574_v4  ;;  %v1605_v19 = vpop.f32.mrb[114].mxu0 }
 0x1dc   :  { %1744 = vst.msk [vmem:[%s3315_s3 + $0x170] sm:$0xff] %vm1697_vm2, %v2391_v7  ;;  %v1289_v8 = vpop.f32.mrb[100].mxu1  ;;  %v1607_v20 = vpop.f32.mrb[115].mxu0 }
 0x1dd   :  { %v2393_v9 = vpop.eup %2392  ;;  %v1290_v10 = vadd.f32 %v2933_v26, %v1289_v8  ;;  %v1291_v11 = vpop.f32.mrb[101].mxu1 }
 0x1de   :  { %1745 = vst.msk [vmem:[%s3315_s3 + $0x178] sm:$0xff] %vm1697_vm2, %v2393_v9  ;;  %v1292_v12 = vpop.f32.mrb[102].mxu1 }
 0x1df   :  { %v1579_v13 = vadd.f32 %v1578_v38, %v1290_v10  ;;  %v1293_v14 = vadd.f32 %v2933_v26, %v1292_v12  ;;  %v1294_v15 = vpop.f32.mrb[103].mxu1 }
 0x1e1   :  { %2398 = vtanh.f32 %v1579_v13  ;;  %v1582_v18 = vadd.f32 %v1581_v41, %v1293_v14  ;;  %v1610_v31 = vpop.f32.mrb[116].mxu0 }
 0x1e2   :  { %v1612_v32 = vpop.f32.mrb[117].mxu0 }
 0x1e3   :  { %v2395_v21 = vpop.eup %2394  ;;  %2400 = vtanh.f32 %v1582_v18  ;;  %v1613_v34 = vpop.f32.mrb[118].mxu0 }
 0x1e4   :  { %1746 = vst.msk [vmem:[%s3315_s3 + $0x180] sm:$0xff] %vm1697_vm2, %v2395_v21  ;;  %v1297_v22 = vpop.f32.mrb[104].mxu1  ;;  %v1615_v35 = vpop.f32.mrb[119].mxu0 }
 0x1e5   :  { %v2397_v23 = vpop.eup %2396  ;;  %v1298_v24 = vadd.f32 %v2933_v26, %v1297_v22  ;;  %v1299_v25 = vpop.f32.mrb[105].mxu1 }
 0x1e6   :  { %1747 = vst.msk [vmem:[%s3315_s3 + $0x188] sm:$0xff] %vm1697_vm2, %v2397_v23  ;;  %v1300_v27 = vpop.f32.mrb[106].mxu1 }
 0x1e7   :  { %v1587_v28 = vadd.f32 %v1586_v52, %v1298_v24  ;;  %v1301_v29 = vadd.f32 %v2933_v26, %v1300_v27  ;;  %v1302_v30 = vpop.f32.mrb[107].mxu1  ;;  %v3248_v26 = vld [vmem:[%s3314_s2] ss:$0 sm:$0xff] }
 0x1e9   :  { %2402 = vtanh.f32 %v1587_v28  ;;  %v1590_v33 = vadd.f32 %v1589_v55, %v1301_v29  ;;  %v1618_v45 = vpop.f32.mrb[120].mxu0 }
 0x1ea   :  { %v1620_v46 = vpop.f32.mrb[121].mxu0 }
 0x1eb   :  { %v2399_v36 = vpop.eup %2398  ;;  %2404 = vtanh.f32 %v1590_v33  ;;  %v1621_v48 = vpop.f32.mrb[122].mxu0 }
 0x1ec   :  { %1748 = vst.msk [vmem:[%s3315_s3 + $0x190] sm:$0xff] %vm1697_vm2, %v2399_v36  ;;  %v1305_v37 = vpop.f32.mrb[108].mxu1  ;;  %v1623_v49 = vpop.f32.mrb[123].mxu0 }
 0x1ed   :  { %v2401_v38 = vpop.eup %2400  ;;  %v1306_v39 = vadd.f32 %v3248_v26, %v1305_v37  ;;  %v1307_v40 = vpop.f32.mrb[109].mxu1 }
 0x1ee   :  { %1749 = vst.msk [vmem:[%s3315_s3 + $0x198] sm:$0xff] %vm1697_vm2, %v2401_v38  ;;  %v1308_v41 = vpop.f32.mrb[110].mxu1 }
 0x1ef   :  { %v1595_v42 = vadd.f32 %v1594_v2, %v1306_v39  ;;  %v1309_v43 = vadd.f32 %v3248_v26, %v1308_v41  ;;  %v1310_v44 = vpop.f32.mrb[111].mxu1 }
 0x1f1   :  { %2406 = vtanh.f32 %v1595_v42  ;;  %v1598_v47 = vadd.f32 %v1597_v5, %v1309_v43  ;;  %v1626_v59 = vpop.f32.mrb[124].mxu0 }
 0x1f2   :  { %v1628_v60 = vpop.f32.mrb[125].mxu0 }
 0x1f3   :  { %v2403_v50 = vpop.eup %2402  ;;  %2408 = vtanh.f32 %v1598_v47  ;;  %v1629_v62 = vpop.f32.mrb[126].mxu0 }
 0x1f4   :  { %1750 = vst.msk [vmem:[%s3315_s3 + $0x1a0] sm:$0xff] %vm1697_vm2, %v2403_v50  ;;  %v1313_v51 = vpop.f32.mrb[112].mxu1  ;;  %v1631_v63 = vpop.f32.mrb[127].mxu0 }
 0x1f5   :  { %v2405_v52 = vpop.eup %2404  ;;  %v1314_v53 = vadd.f32 %v3248_v26, %v1313_v51  ;;  %v1315_v54 = vpop.f32.mrb[113].mxu1 }
 0x1f6   :  { %1751 = vst.msk [vmem:[%s3315_s3 + $0x1a8] sm:$0xff] %vm1697_vm2, %v2405_v52  ;;  %v1316_v55 = vpop.f32.mrb[114].mxu1 }
 0x1f7   :  { %v1603_v56 = vadd.f32 %v1602_v16, %v1314_v53  ;;  %v1317_v57 = vadd.f32 %v3248_v26, %v1316_v55  ;;  %v1318_v58 = vpop.f32.mrb[115].mxu1 }
 0x1f9   :  { %2410 = vtanh.f32 %v1603_v56  ;;  %v1606_v61 = vadd.f32 %v1605_v19, %v1317_v57 }
 0x1fb   :  { %v2407_v0 = vpop.eup %2406  ;;  %2412 = vtanh.f32 %v1606_v61 }
 0x1fc   :  { %1752 = vst.msk [vmem:[%s3315_s3 + $0x1b0] sm:$0xff] %vm1697_vm2, %v2407_v0  ;;  %v1321_v1 = vpop.f32.mrb[116].mxu1 }
 0x1fd   :  { %v2409_v2 = vpop.eup %2408  ;;  %v1322_v3 = vadd.f32 %v3248_v26, %v1321_v1  ;;  %v1323_v4 = vpop.f32.mrb[117].mxu1 }
 0x1fe   :  { %1753 = vst.msk [vmem:[%s3315_s3 + $0x1b8] sm:$0xff] %vm1697_vm2, %v2409_v2  ;;  %v1324_v5 = vpop.f32.mrb[118].mxu1 }
 0x1ff   :  { %v1611_v6 = vadd.f32 %v1610_v31, %v1322_v3  ;;  %v1325_v7 = vadd.f32 %v3248_v26, %v1324_v5  ;;  %v1326_v8 = vpop.f32.mrb[119].mxu1 }
 0x201   :  { %2414 = vtanh.f32 %v1611_v6  ;;  %v1614_v9 = vadd.f32 %v1613_v34, %v1325_v7 }
 0x203   :  { %v2411_v10 = vpop.eup %2410  ;;  %2416 = vtanh.f32 %v1614_v9 }
 0x204   :  { %1754 = vst.msk [vmem:[%s3315_s3 + $0x1c0] sm:$0xff] %vm1697_vm2, %v2411_v10  ;;  %v1329_v11 = vpop.f32.mrb[120].mxu1 }
 0x205   :  { %v2413_v12 = vpop.eup %2412  ;;  %v1330_v13 = vadd.f32 %v3248_v26, %v1329_v11  ;;  %v1331_v14 = vpop.f32.mrb[121].mxu1 }
 0x206   :  { %1755 = vst.msk [vmem:[%s3315_s3 + $0x1c8] sm:$0xff] %vm1697_vm2, %v2413_v12  ;;  %v1332_v15 = vpop.f32.mrb[122].mxu1 }
 0x207   :  { %v1619_v16 = vadd.f32 %v1618_v45, %v1330_v13  ;;  %v1333_v17 = vadd.f32 %v3248_v26, %v1332_v15  ;;  %v1334_v18 = vpop.f32.mrb[123].mxu1 }
 0x209   :  { %2418 = vtanh.f32 %v1619_v16  ;;  %v1622_v19 = vadd.f32 %v1621_v48, %v1333_v17 }
 0x20b   :  { %v2415_v20 = vpop.eup %2414  ;;  %2420 = vtanh.f32 %v1622_v19 }
 0x20c   :  { %1756 = vst.msk [vmem:[%s3315_s3 + $0x1d0] sm:$0xff] %vm1697_vm2, %v2415_v20  ;;  %v1337_v21 = vpop.f32.mrb[124].mxu1 }
 0x20d   :  { %v2417_v22 = vpop.eup %2416  ;;  %v1338_v23 = vadd.f32 %v3248_v26, %v1337_v21  ;;  %v1339_v24 = vpop.f32.mrb[125].mxu1 }
 0x20e   :  { %1757 = vst.msk [vmem:[%s3315_s3 + $0x1d8] sm:$0xff] %vm1697_vm2, %v2417_v22  ;;  %v1340_v25 = vpop.f32.mrb[126].mxu1 }
 0x20f   :  { %v1627_v27 = vadd.f32 %v1626_v59, %v1338_v23  ;;  %v1341_v28 = vadd.f32 %v3248_v26, %v1340_v25  ;;  %v1342_v29 = vpop.f32.mrb[127].mxu1 }
 0x211   :  { %2422 = vtanh.f32 %v1627_v27  ;;  %v1630_v30 = vadd.f32 %v1629_v62, %v1341_v28 }
 0x213   :  { %v2419_v31 = vpop.eup %2418  ;;  %2424 = vtanh.f32 %v1630_v30 }
 0x214   :  { %1758 = vst.msk [vmem:[%s3315_s3 + $0x1e0] sm:$0xff] %vm1697_vm2, %v2419_v31 }
 0x215   :  { %v2421_v32 = vpop.eup %2420 }
 0x216   :  { %1759 = vst.msk [vmem:[%s3315_s3 + $0x1e8] sm:$0xff] %vm1697_vm2, %v2421_v32 }
 0x21b   :  { %v2423_v33 = vpop.eup %2422 }
 0x21c   :  { %1760 = vst.msk [vmem:[%s3315_s3 + $0x1f0] sm:$0xff] %vm1697_vm2, %v2423_v33 }
 0x21d   :  { %v2425_v34 = vpop.eup %2424 }
 0x21e   :  { %1761 = vst.msk [vmem:[%s3315_s3 + $0x1f8] sm:$0xff] %vm1697_vm2, %v2425_v34 }

</bundles_post_ra>
